<compile_context>
chip_gen: v6e
topology: v6e:2x2x1
jax: 0.10.0
libtpu: 0.0.40
codegen_flags: <defaults>
</compile_context>

<pallas_src>
import functools

import jax
import jax.numpy as jnp
import numpy as np
from jax.experimental import pallas as pl
from jax.experimental.pallas import tpu as pltpu


def _sra_kernel(x_ref, kvsrc_ref, qw_ref, kw_ref, vw_ref, srw_ref, srb_ref,
                lng_ref, lnb_ref, pw_ref, pb_ref, o_ref, k_scr, v_scr,
                *, num_heads, head_dim, scale, use_sr, kv_from_x, ln_eps):
    f32 = jnp.float32
    bf16 = jnp.bfloat16

    # ---- K / V for this batch element: compute once, at query-tile 0 --------
    @pl.when(pl.program_id(1) == 0)
    def _compute_kv():
        if use_sr:
            src = kvsrc_ref[0]                                    # [NR, C*sr*sr] bf16
            xr = jnp.dot(src, srw_ref[...], preferred_element_type=f32)
            xr = xr + srb_ref[...]                                # [NR, C] f32
            mu = jnp.mean(xr, axis=-1, keepdims=True)
            var = jnp.mean(jnp.square(xr - mu), axis=-1, keepdims=True)
            xr = (xr - mu) * jax.lax.rsqrt(var + ln_eps)
            xr = (xr * lng_ref[...] + lnb_ref[...]).astype(bf16)  # LayerNorm in f32
        elif kv_from_x:
            xr = x_ref[0]                                         # single tile == full x
        else:
            xr = kvsrc_ref[0]                                     # [N, C] bf16
        k_scr[...] = jnp.dot(xr, kw_ref[...],
                             preferred_element_type=f32).astype(bf16)
        v_scr[...] = jnp.dot(xr, vw_ref[...],
                             preferred_element_type=f32).astype(bf16)

    # ---- queries for this tile ----------------------------------------------
    x = x_ref[0]                                                  # [TQ, C] bf16
    tq, C = x.shape
    hd = head_dim

    q = (jnp.dot(x, qw_ref[...], preferred_element_type=f32) * scale).astype(bf16)
    k = k_scr[...]                                                # [NR, C] bf16
    v = v_scr[...]                                                # [NR, C] bf16

    # ---- per-head attention, accumulated straight into the projection -------
    out = jnp.zeros((tq, C), f32)
    for h in range(num_heads):                                    # static unroll
        sl = slice(h * hd, (h + 1) * hd)
        # s = q_h @ k_h.T  (contract head dim of both operands)
        s = jax.lax.dot_general(q[:, sl], k[:, sl], (((1,), (1,)), ((), ())),
                                preferred_element_type=f32)       # [TQ, NR] f32
        s = s - jnp.max(s, axis=-1, keepdims=True)
        p = jnp.exp(s)                                            # unnormalized probs
        inv = pl.reciprocal(jnp.sum(p, axis=-1, keepdims=True), approx=True)
        oh = jnp.dot(p.astype(bf16), v[:, sl],
                     preferred_element_type=f32) * inv            # [TQ, hd] f32
        # fold this head into the output projection (no concat)
        out = out + jnp.dot(oh.astype(bf16), pw_ref[h],
                            preferred_element_type=f32)           # [TQ, C] f32

    out = out + pb_ref[...]
    o_ref[0] = out.astype(o_ref.dtype)


def spatial_reduction_attention(x, H, W, params, *, num_heads, sr_ratio, tq=None):
    """x: [B, N, C] with N == H*W.  Returns [B, N, C]."""
    B, N, C = x.shape
    assert N == H * W and C % num_heads == 0
    hd = C // num_heads
    scale = float(hd) ** -0.5
    use_sr = sr_ratio > 1

    x_bf = x.astype(jnp.bfloat16)                                 # halve HBM->VMEM bytes

    if use_sr:
        assert H % sr_ratio == 0 and W % sr_ratio == 0
        Hr, Wr = H // sr_ratio, W // sr_ratio
        NR, KP = Hr * Wr, C * sr_ratio * sr_ratio
        # glue: extract non-overlapping sr x sr patches, flattened as [C, kh, kw]
        x_img = jnp.transpose(x_bf, (0, 2, 1)).reshape(B, C, H, W)
        xp = x_img.reshape(B, C, Hr, sr_ratio, Wr, sr_ratio)
        kvsrc = jnp.transpose(xp, (0, 2, 4, 1, 3, 5)).reshape(B, NR, KP)
        srw = params["sr_w"].astype(jnp.bfloat16)
        srb = params["sr_b"].astype(jnp.float32)
        lng = params["ln_g"].astype(jnp.float32)
        lnb = params["ln_b"].astype(jnp.float32)
    else:
        NR, KP = N, C
        kvsrc = x_bf
        srw = jnp.zeros((1, 1), jnp.bfloat16)                     # unused dummies
        srb = jnp.zeros((1, 1), jnp.float32)
        lng = jnp.zeros((1, 1), jnp.float32)
        lnb = jnp.zeros((1, 1), jnp.float32)

    # ---- query tile size (multiple of 256 preferred, must divide N) ---------
    if tq is None:
        tq = N
        for cand in (512, 256, 128, 64, 32, 16, 8):
            if N % cand == 0:
                tq = cand
                break
    assert N % tq == 0, "query tile size must divide N"
    nq = N // tq

    # single-tile ordinary attention: reuse x_ref as the kv source (no dup DMA)
    kv_from_x = (not use_sr) and (nq == 1)
    if kv_from_x:
        kvsrc = jnp.zeros((1, 1, 1), jnp.bfloat16)
        kv_block = (1, 1, 1)
        kv_index = lambda b, qi: (0, 0, 0)
    else:
        kv_block = (1, NR, KP)
        kv_index = lambda b, qi: (b, 0, 0)                        # DMA once per batch

    # weights in bf16; kv weight split so k and v are produced lane-dense
    qw = params["q_w"].astype(jnp.bfloat16)
    kw = params["kv_w"][:, :C].astype(jnp.bfloat16)
    vw = params["kv_w"][:, C:].astype(jnp.bfloat16)
    pw = params["proj_w"].astype(jnp.bfloat16).reshape(num_heads, hd, C)
    pb = params["proj_b"].astype(jnp.float32)

    # ---- rough per-step VMEM footprint -> scoped limit ----------------------
    weight_bytes = sum(int(np.prod(a.shape)) * a.dtype.itemsize
                       for a in (qw, kw, vw, srw, srb, lng, lnb, pw, pb))
    stream_bytes = tq * C * 2 + int(np.prod(kvsrc.shape[1:])) * 2 + tq * C * 4
    scratch_bytes = 2 * NR * C * 2
    temp_bytes = 4 * tq * max(NR, C) * 4 + 2 * tq * C * 4
    est = 2 * (weight_bytes + stream_bytes) + scratch_bytes + temp_bytes
    vmem_limit = int(min(64 * 1024 * 1024, max(32 * 1024 * 1024, 2 * est)))

    kernel = functools.partial(_sra_kernel, num_heads=num_heads, head_dim=hd,
                               scale=scale, use_sr=use_sr, kv_from_x=kv_from_x,
                               ln_eps=1e-5)

    return pl.pallas_call(
        kernel,
        out_shape=jax.ShapeDtypeStruct((B, N, C), x.dtype),
        grid=(B, nq),
        in_specs=[
            pl.BlockSpec((1, tq, C), lambda b, qi: (b, qi, 0)),        # x (bf16, tiled)
            pl.BlockSpec(kv_block, kv_index),                          # kv source
            pl.BlockSpec((C, C), lambda b, qi: (0, 0)),                # q weight
            pl.BlockSpec((C, C), lambda b, qi: (0, 0)),                # k weight
            pl.BlockSpec((C, C), lambda b, qi: (0, 0)),                # v weight
            pl.BlockSpec(srw.shape, lambda b, qi: (0, 0)),             # sr conv weight
            pl.BlockSpec(srb.shape, lambda b, qi: (0, 0)),             # sr conv bias
            pl.BlockSpec(lng.shape, lambda b, qi: (0, 0)),             # LN gamma
            pl.BlockSpec(lnb.shape, lambda b, qi: (0, 0)),             # LN beta
            pl.BlockSpec((num_heads, hd, C), lambda b, qi: (0, 0, 0)), # proj weight
            pl.BlockSpec((1, C), lambda b, qi: (0, 0)),                # proj bias
        ],
        out_specs=pl.BlockSpec((1, tq, C), lambda b, qi: (b, qi, 0)),
        scratch_shapes=[pltpu.VMEM((NR, C), jnp.bfloat16),             # K cache
                        pltpu.VMEM((NR, C), jnp.bfloat16)],            # V cache
        compiler_params=pltpu.CompilerParams(
            dimension_semantics=("parallel", "arbitrary"),
            vmem_limit_bytes=vmem_limit),
    )(x_bf, kvsrc, qw, kw, vw, srw, srb, lng, lnb, pw, pb)


def reference(x, H, W, params, *, num_heads, sr_ratio):
    """Pure-JAX (f32) replica of the PyTorch forward (for validation)."""
    B, N, C = x.shape
    hd = C // num_heads
    scale = hd ** -0.5
    q = (x @ params["q_w"]).reshape(B, N, num_heads, hd).transpose(0, 2, 1, 3)
    if sr_ratio > 1:
        Hr, Wr = H // sr_ratio, W // sr_ratio
        x_img = jnp.transpose(x, (0, 2, 1)).reshape(B, C, H, W)
        xp = x_img.reshape(B, C, Hr, sr_ratio, Wr, sr_ratio)
        xp = jnp.transpose(xp, (0, 2, 4, 1, 3, 5)).reshape(B, Hr * Wr, -1)
        x_ = xp @ params["sr_w"] + params["sr_b"]
        mu = x_.mean(-1, keepdims=True)
        var = ((x_ - mu) ** 2).mean(-1, keepdims=True)
        x_ = (x_ - mu) / jnp.sqrt(var + 1e-5) * params["ln_g"] + params["ln_b"]
    else:
        x_ = x
    NR = x_.shape[1]
    kv = (x_ @ params["kv_w"]).reshape(B, NR, 2, num_heads, hd).transpose(2, 0, 3, 1, 4)
    k, v = kv[0], kv[1]
    attn = jax.nn.softmax(q @ k.transpose(0, 1, 3, 2) * scale, axis=-1)
    out = (attn @ v).transpose(0, 2, 1, 3).reshape(B, N, C)
    return out @ params["proj_w"] + params["proj_b"]


def make_params(key, C, sr_ratio):
    KP = C * sr_ratio * sr_ratio if sr_ratio > 1 else C
    ks = jax.random.split(key, 6)
    std = 0.02
    return {
        "q_w": std * jax.random.normal(ks[0], (C, C), jnp.float32),
        "kv_w": std * jax.random.normal(ks[1], (C, 2 * C), jnp.float32),
        "sr_w": std * jax.random.normal(ks[2], (KP, C), jnp.float32),
        "sr_b": std * jax.random.normal(ks[3], (1, C), jnp.float32),
        "ln_g": jnp.ones((1, C), jnp.float32),
        "ln_b": jnp.zeros((1, C), jnp.float32),
        "proj_w": std * jax.random.normal(ks[4], (C, C), jnp.float32),
        "proj_b": std * jax.random.normal(ks[5], (1, C), jnp.float32),
    }


if __name__ == "__main__":
    B, H, W, C = 2, 16, 16, 64
    num_heads = 4
    N = H * W

    key = jax.random.PRNGKey(0)
    kx, kp1, kp2 = jax.random.split(key, 3)
    x = jax.random.normal(kx, (B, N, C), jnp.float32)

    # (sr_ratio, param key, query tile): exercise both the SR path with two
    # query tiles (K/V scratch reuse across tiles) and the ordinary-attention
    # single-tile path (kv taken from x_ref, no duplicate DMA).
    configs = ((2, kp1, 128), (1, kp2, None))

    ok = True
    for sr_ratio, kparam, tq in configs:
        params = make_params(kparam, C, sr_ratio)
        out = spatial_reduction_attention(x, H, W, params, num_heads=num_heads,
                                          sr_ratio=sr_ratio, tq=tq)
        out = jax.block_until_ready(out)
        ref = jax.block_until_ready(
            reference(x, H, W, params, num_heads=num_heads, sr_ratio=sr_ratio))
        np.testing.assert_allclose(np.asarray(out), np.asarray(ref),
                                   rtol=2e-2, atol=2e-2)
        ok = ok and out.shape == (B, N, C)

    if ok:
        print("KERNEL_OK")
</pallas_src>

<mosaic_0001>
module attributes {stable_mosaic.version = 11 : i64} {
  func.func @_sra_kernel(%arg0: i32, %arg1: i32, %arg2: memref<1x128x64xbf16, #tpu.memory_space<vmem>>, %arg3: memref<1x64x256xbf16, #tpu.memory_space<vmem>>, %arg4: memref<64x64xbf16, #tpu.memory_space<vmem>>, %arg5: memref<64x64xbf16, #tpu.memory_space<vmem>>, %arg6: memref<64x64xbf16, #tpu.memory_space<vmem>>, %arg7: memref<256x64xbf16, #tpu.memory_space<vmem>>, %arg8: memref<1x64xf32, #tpu.memory_space<vmem>>, %arg9: memref<1x64xf32, #tpu.memory_space<vmem>>, %arg10: memref<1x64xf32, #tpu.memory_space<vmem>>, %arg11: memref<4x16x64xbf16, #tpu.memory_space<vmem>>, %arg12: memref<1x64xf32, #tpu.memory_space<vmem>>, %arg13: memref<1x128x64xf32, #tpu.memory_space<vmem>>, %arg14: memref<64x64xbf16, #tpu.memory_space<vmem>>, %arg15: memref<64x64xbf16, #tpu.memory_space<vmem>>) attributes {dimension_semantics = [#tpu.dimension_semantics<parallel>, #tpu.dimension_semantics<arbitrary>], iteration_bounds = array<i64: 2, 2>, scalar_prefetch = 0 : i64, scratch_operands = 2 : i64, tpu.core_type = #tpu.core_type<tc>, window_params = [{transform_indices = @transform_0, window_bounds = array<i64: 1, 128, 64>}, {transform_indices = @transform_1, window_bounds = array<i64: 1, 64, 256>}, {pipeline_mode = #tpu.pipeline_mode<synchronous>, transform_indices = @transform_2, window_bounds = array<i64: 64, 64>}, {pipeline_mode = #tpu.pipeline_mode<synchronous>, transform_indices = @transform_3, window_bounds = array<i64: 64, 64>}, {pipeline_mode = #tpu.pipeline_mode<synchronous>, transform_indices = @transform_4, window_bounds = array<i64: 64, 64>}, {pipeline_mode = #tpu.pipeline_mode<synchronous>, transform_indices = @transform_5, window_bounds = array<i64: 256, 64>}, {pipeline_mode = #tpu.pipeline_mode<synchronous>, transform_indices = @transform_6, window_bounds = array<i64: 1, 64>}, {pipeline_mode = #tpu.pipeline_mode<synchronous>, transform_indices = @transform_7, window_bounds = array<i64: 1, 64>}, {pipeline_mode = #tpu.pipeline_mode<synchronous>, transform_indices = @transform_8, window_bounds = array<i64: 1, 64>}, {pipeline_mode = #tpu.pipeline_mode<synchronous>, transform_indices = @transform_9, window_bounds = array<i64: 4, 16, 64>}, {pipeline_mode = #tpu.pipeline_mode<synchronous>, transform_indices = @transform_10, window_bounds = array<i64: 1, 64>}, {transform_indices = @transform_11, window_bounds = array<i64: 1, 128, 64>}]} {
    %c0_i32 = arith.constant 0 : i32
    %0 = arith.cmpi eq, %arg1, %c0_i32 : i32
    %1 = arith.extui %0 : i1 to i32
    %c0_i32_0 = arith.constant 0 : i32
    %2 = arith.cmpi ne, %1, %c0_i32_0 : i32
    scf.if %2 {
      %c0_45 = arith.constant 0 : index
      %c0_46 = arith.constant 0 : index
      %c0_47 = arith.constant 0 : index
      %103 = vector.load %arg3[%c0_45, %c0_46, %c0_47] : memref<1x64x256xbf16, #tpu.memory_space<vmem>>, vector<1x64x256xbf16>
      %104 = vector.shape_cast %103 : vector<1x64x256xbf16> to vector<64x256xbf16>
      %c0_48 = arith.constant 0 : index
      %c0_49 = arith.constant 0 : index
      %105 = vector.load %arg7[%c0_48, %c0_49] : memref<256x64xbf16, #tpu.memory_space<vmem>>, vector<256x64xbf16>
      %cst_50 = arith.constant dense<0.000000e+00> : vector<64x64xf32>
      %106 = tpu.matmul %104, %105, %cst_50 {dimension_numbers = #tpu.dot_dimension_numbers<[1], [0], [0], [1], [0, 0, 1, 1], [], []>} : vector<64x256xbf16>, vector<256x64xbf16>, vector<64x64xf32> -> vector<64x64xf32>
      %c0_51 = arith.constant 0 : index
      %c0_52 = arith.constant 0 : index
      %107 = vector.load %arg8[%c0_51, %c0_52] : memref<1x64xf32, #tpu.memory_space<vmem>>, vector<1x64xf32>
      %108 = vector.broadcast %107 : vector<1x64xf32> to vector<64x64xf32>
      %109 = arith.addf %106, %108 : vector<64x64xf32>
      %cst_53 = arith.constant dense<0.000000e+00> : vector<64xf32>
      %110 = vector.multi_reduction <add>, %109, %cst_53 [1] : vector<64x64xf32> to vector<64xf32>
      %111 = vector.shape_cast %110 : vector<64xf32> to vector<64x1xf32>
      %cst_54 = arith.constant 6.400000e+01 : f32
      %112 = vector.broadcast %cst_54 : f32 to vector<64x1xf32>
      %113 = arith.divf %111, %112 : vector<64x1xf32>
      %114 = vector.broadcast %113 : vector<64x1xf32> to vector<64x64xf32>
      %115 = arith.subf %109, %114 : vector<64x64xf32>
      %116 = arith.mulf %115, %115 : vector<64x64xf32>
      %cst_55 = arith.constant dense<0.000000e+00> : vector<64xf32>
      %117 = vector.multi_reduction <add>, %116, %cst_55 [1] : vector<64x64xf32> to vector<64xf32>
      %118 = vector.shape_cast %117 : vector<64xf32> to vector<64x1xf32>
      %cst_56 = arith.constant 6.400000e+01 : f32
      %119 = vector.broadcast %cst_56 : f32 to vector<64x1xf32>
      %120 = arith.divf %118, %119 : vector<64x1xf32>
      %121 = vector.broadcast %113 : vector<64x1xf32> to vector<64x64xf32>
      %122 = arith.subf %109, %121 : vector<64x64xf32>
      %cst_57 = arith.constant 9.99999974E-6 : f32
      %123 = vector.broadcast %cst_57 : f32 to vector<64x1xf32>
      %124 = arith.addf %120, %123 : vector<64x1xf32>
      %125 = math.rsqrt %124 : vector<64x1xf32>
      %126 = vector.broadcast %125 : vector<64x1xf32> to vector<64x64xf32>
      %127 = arith.mulf %122, %126 : vector<64x64xf32>
      %c0_58 = arith.constant 0 : index
      %c0_59 = arith.constant 0 : index
      %128 = vector.load %arg9[%c0_58, %c0_59] : memref<1x64xf32, #tpu.memory_space<vmem>>, vector<1x64xf32>
      %129 = vector.broadcast %128 : vector<1x64xf32> to vector<64x64xf32>
      %130 = arith.mulf %127, %129 : vector<64x64xf32>
      %c0_60 = arith.constant 0 : index
      %c0_61 = arith.constant 0 : index
      %131 = vector.load %arg10[%c0_60, %c0_61] : memref<1x64xf32, #tpu.memory_space<vmem>>, vector<1x64xf32>
      %132 = vector.broadcast %131 : vector<1x64xf32> to vector<64x64xf32>
      %133 = arith.addf %130, %132 : vector<64x64xf32>
      %134 = arith.truncf %133 : vector<64x64xf32> to vector<64x64xbf16>
      %c0_62 = arith.constant 0 : index
      %c0_63 = arith.constant 0 : index
      %135 = vector.load %arg5[%c0_62, %c0_63] : memref<64x64xbf16, #tpu.memory_space<vmem>>, vector<64x64xbf16>
      %cst_64 = arith.constant dense<0.000000e+00> : vector<64x64xf32>
      %136 = tpu.matmul %134, %135, %cst_64 {dimension_numbers = #tpu.dot_dimension_numbers<[1], [0], [0], [1], [0, 0, 1, 1], [], []>} : vector<64x64xbf16>, vector<64x64xbf16>, vector<64x64xf32> -> vector<64x64xf32>
      %137 = arith.truncf %136 : vector<64x64xf32> to vector<64x64xbf16>
      %c0_65 = arith.constant 0 : index
      %c0_66 = arith.constant 0 : index
      %138 = vector.load %arg14[%c0_65, %c0_66] : memref<64x64xbf16, #tpu.memory_space<vmem>>, vector<64x64xbf16>
      tpu.vector_store %arg14[%c0_65, %c0_66], %137 {strides = array<i32>} : memref<64x64xbf16, #tpu.memory_space<vmem>>, vector<64x64xbf16>,
      %c0_67 = arith.constant 0 : index
      %c0_68 = arith.constant 0 : index
      %139 = vector.load %arg6[%c0_67, %c0_68] : memref<64x64xbf16, #tpu.memory_space<vmem>>, vector<64x64xbf16>
      %cst_69 = arith.constant dense<0.000000e+00> : vector<64x64xf32>
      %140 = tpu.matmul %134, %139, %cst_69 {dimension_numbers = #tpu.dot_dimension_numbers<[1], [0], [0], [1], [0, 0, 1, 1], [], []>} : vector<64x64xbf16>, vector<64x64xbf16>, vector<64x64xf32> -> vector<64x64xf32>
      %141 = arith.truncf %140 : vector<64x64xf32> to vector<64x64xbf16>
      %c0_70 = arith.constant 0 : index
      %c0_71 = arith.constant 0 : index
      %142 = vector.load %arg15[%c0_70, %c0_71] : memref<64x64xbf16, #tpu.memory_space<vmem>>, vector<64x64xbf16>
      tpu.vector_store %arg15[%c0_70, %c0_71], %141 {strides = array<i32>} : memref<64x64xbf16, #tpu.memory_space<vmem>>, vector<64x64xbf16>,
    } else {
    }
    %c0 = arith.constant 0 : index
    %c0_1 = arith.constant 0 : index
    %c0_2 = arith.constant 0 : index
    %3 = vector.load %arg2[%c0, %c0_1, %c0_2] : memref<1x128x64xbf16, #tpu.memory_space<vmem>>, vector<1x128x64xbf16>
    %4 = vector.shape_cast %3 : vector<1x128x64xbf16> to vector<128x64xbf16>
    %c0_3 = arith.constant 0 : index
    %c0_4 = arith.constant 0 : index
    %5 = vector.load %arg4[%c0_3, %c0_4] : memref<64x64xbf16, #tpu.memory_space<vmem>>, vector<64x64xbf16>
    %cst = arith.constant dense<0.000000e+00> : vector<128x64xf32>
    %6 = tpu.matmul %4, %5, %cst {dimension_numbers = #tpu.dot_dimension_numbers<[1], [0], [0], [1], [0, 0, 1, 1], [], []>} : vector<128x64xbf16>, vector<64x64xbf16>, vector<128x64xf32> -> vector<128x64xf32>
    %cst_5 = arith.constant 2.500000e-01 : f32
    %7 = vector.broadcast %cst_5 : f32 to vector<128x64xf32>
    %8 = arith.mulf %6, %7 : vector<128x64xf32>
    %9 = arith.truncf %8 : vector<128x64xf32> to vector<128x64xbf16>
    %c0_6 = arith.constant 0 : index
    %c0_7 = arith.constant 0 : index
    %10 = vector.load %arg14[%c0_6, %c0_7] : memref<64x64xbf16, #tpu.memory_space<vmem>>, vector<64x64xbf16>
    %c0_8 = arith.constant 0 : index
    %c0_9 = arith.constant 0 : index
    %11 = vector.load %arg15[%c0_8, %c0_9] : memref<64x64xbf16, #tpu.memory_space<vmem>>, vector<64x64xbf16>
    %cst_10 = arith.constant 0.000000e+00 : f32
    %12 = vector.broadcast %cst_10 : f32 to vector<128x64xf32>
    %13 = vector.extract_strided_slice %9 {offsets = [0, 0], sizes = [128, 16], strides = [1, 1]} : vector<128x64xbf16> to vector<128x16xbf16>
    %14 = vector.extract_strided_slice %10 {offsets = [0, 0], sizes = [64, 16], strides = [1, 1]} : vector<64x64xbf16> to vector<64x16xbf16>
    %cst_11 = arith.constant dense<0.000000e+00> : vector<128x64xf32>
    %15 = tpu.matmul %13, %14, %cst_11 {dimension_numbers = #tpu.dot_dimension_numbers<[1], [1], [0], [0], [0, 0, 1, 0], [], []>} : vector<128x16xbf16>, vector<64x16xbf16>, vector<128x64xf32> -> vector<128x64xf32>
    %cst_12 = arith.constant dense<0xFF800000> : vector<128xf32>
    %16 = vector.multi_reduction <maximumf>, %15, %cst_12 [1] : vector<128x64xf32> to vector<128xf32>
    %17 = vector.shape_cast %16 : vector<128xf32> to vector<128x1xf32>
    %18 = vector.broadcast %17 : vector<128x1xf32> to vector<128x64xf32>
    %19 = arith.subf %15, %18 : vector<128x64xf32>
    %20 = math.exp %19 : vector<128x64xf32>
    %cst_13 = arith.constant dense<0.000000e+00> : vector<128xf32>
    %21 = vector.multi_reduction <add>, %20, %cst_13 [1] : vector<128x64xf32> to vector<128xf32>
    %22 = vector.shape_cast %21 : vector<128xf32> to vector<128x1xf32>
    %23 = tpu.reciprocal %22 {approx = true} : vector<128x1xf32> -> vector<128x1xf32>
    %24 = arith.truncf %20 : vector<128x64xf32> to vector<128x64xbf16>
    %25 = vector.extract_strided_slice %11 {offsets = [0, 0], sizes = [64, 16], strides = [1, 1]} : vector<64x64xbf16> to vector<64x16xbf16>
    %cst_14 = arith.constant dense<0.000000e+00> : vector<128x16xf32>
    %26 = tpu.matmul %24, %25, %cst_14 {dimension_numbers = #tpu.dot_dimension_numbers<[1], [0], [0], [1], [0, 0, 1, 1], [], []>} : vector<128x64xbf16>, vector<64x16xbf16>, vector<128x16xf32> -> vector<128x16xf32>
    %27 = vector.broadcast %23 : vector<128x1xf32> to vector<128x16xf32>
    %28 = arith.mulf %26, %27 : vector<128x16xf32>
    %29 = arith.truncf %28 : vector<128x16xf32> to vector<128x16xbf16>
    %c0_15 = arith.constant 0 : index
    %c0_16 = arith.constant 0 : index
    %c0_17 = arith.constant 0 : index
    %30 = vector.load %arg11[%c0_15, %c0_16, %c0_17] : memref<4x16x64xbf16, #tpu.memory_space<vmem>>, vector<1x16x64xbf16>
    %31 = vector.shape_cast %30 : vector<1x16x64xbf16> to vector<16x64xbf16>
    %cst_18 = arith.constant dense<0.000000e+00> : vector<128x64xf32>
    %32 = tpu.matmul %29, %31, %cst_18 {dimension_numbers = #tpu.dot_dimension_numbers<[1], [0], [0], [1], [0, 0, 1, 1], [], []>} : vector<128x16xbf16>, vector<16x64xbf16>, vector<128x64xf32> -> vector<128x64xf32>
    %33 = arith.addf %12, %32 : vector<128x64xf32>
    %34 = vector.extract_strided_slice %9 {offsets = [0, 16], sizes = [128, 16], strides = [1, 1]} : vector<128x64xbf16> to vector<128x16xbf16>
    %35 = vector.extract_strided_slice %10 {offsets = [0, 16], sizes = [64, 16], strides = [1, 1]} : vector<64x64xbf16> to vector<64x16xbf16>
    %cst_19 = arith.constant dense<0.000000e+00> : vector<128x64xf32>
    %36 = tpu.matmul %34, %35, %cst_19 {dimension_numbers = #tpu.dot_dimension_numbers<[1], [1], [0], [0], [0, 0, 1, 0], [], []>} : vector<128x16xbf16>, vector<64x16xbf16>, vector<128x64xf32> -> vector<128x64xf32>
    %cst_20 = arith.constant dense<0xFF800000> : vector<128xf32>
    %37 = vector.multi_reduction <maximumf>, %36, %cst_20 [1] : vector<128x64xf32> to vector<128xf32>
    %38 = vector.shape_cast %37 : vector<128xf32> to vector<128x1xf32>
    %39 = vector.broadcast %38 : vector<128x1xf32> to vector<128x64xf32>
    %40 = arith.subf %36, %39 : vector<128x64xf32>
    %41 = math.exp %40 : vector<128x64xf32>
    %cst_21 = arith.constant dense<0.000000e+00> : vector<128xf32>
    %42 = vector.multi_reduction <add>, %41, %cst_21 [1] : vector<128x64xf32> to vector<128xf32>
    %43 = vector.shape_cast %42 : vector<128xf32> to vector<128x1xf32>
    %44 = tpu.reciprocal %43 {approx = true} : vector<128x1xf32> -> vector<128x1xf32>
    %45 = arith.truncf %41 : vector<128x64xf32> to vector<128x64xbf16>
    %46 = vector.extract_strided_slice %11 {offsets = [0, 16], sizes = [64, 16], strides = [1, 1]} : vector<64x64xbf16> to vector<64x16xbf16>
    %cst_22 = arith.constant dense<0.000000e+00> : vector<128x16xf32>
    %47 = tpu.matmul %45, %46, %cst_22 {dimension_numbers = #tpu.dot_dimension_numbers<[1], [0], [0], [1], [0, 0, 1, 1], [], []>} : vector<128x64xbf16>, vector<64x16xbf16>, vector<128x16xf32> -> vector<128x16xf32>
    %48 = vector.broadcast %44 : vector<128x1xf32> to vector<128x16xf32>
    %49 = arith.mulf %47, %48 : vector<128x16xf32>
    %50 = arith.truncf %49 : vector<128x16xf32> to vector<128x16xbf16>
    %c1 = arith.constant 1 : index
    %c0_23 = arith.constant 0 : index
    %c0_24 = arith.constant 0 : index
    %51 = vector.load %arg11[%c1, %c0_23, %c0_24] : memref<4x16x64xbf16, #tpu.memory_space<vmem>>, vector<1x16x64xbf16>
    %52 = vector.shape_cast %51 : vector<1x16x64xbf16> to vector<16x64xbf16>
    %cst_25 = arith.constant dense<0.000000e+00> : vector<128x64xf32>
    %53 = tpu.matmul %50, %52, %cst_25 {dimension_numbers = #tpu.dot_dimension_numbers<[1], [0], [0], [1], [0, 0, 1, 1], [], []>} : vector<128x16xbf16>, vector<16x64xbf16>, vector<128x64xf32> -> vector<128x64xf32>
    %54 = arith.addf %33, %53 : vector<128x64xf32>
    %55 = vector.extract_strided_slice %9 {offsets = [0, 32], sizes = [128, 16], strides = [1, 1]} : vector<128x64xbf16> to vector<128x16xbf16>
    %56 = vector.extract_strided_slice %10 {offsets = [0, 32], sizes = [64, 16], strides = [1, 1]} : vector<64x64xbf16> to vector<64x16xbf16>
    %cst_26 = arith.constant dense<0.000000e+00> : vector<128x64xf32>
    %57 = tpu.matmul %55, %56, %cst_26 {dimension_numbers = #tpu.dot_dimension_numbers<[1], [1], [0], [0], [0, 0, 1, 0], [], []>} : vector<128x16xbf16>, vector<64x16xbf16>, vector<128x64xf32> -> vector<128x64xf32>
    %cst_27 = arith.constant dense<0xFF800000> : vector<128xf32>
    %58 = vector.multi_reduction <maximumf>, %57, %cst_27 [1] : vector<128x64xf32> to vector<128xf32>
    %59 = vector.shape_cast %58 : vector<128xf32> to vector<128x1xf32>
    %60 = vector.broadcast %59 : vector<128x1xf32> to vector<128x64xf32>
    %61 = arith.subf %57, %60 : vector<128x64xf32>
    %62 = math.exp %61 : vector<128x64xf32>
    %cst_28 = arith.constant dense<0.000000e+00> : vector<128xf32>
    %63 = vector.multi_reduction <add>, %62, %cst_28 [1] : vector<128x64xf32> to vector<128xf32>
    %64 = vector.shape_cast %63 : vector<128xf32> to vector<128x1xf32>
    %65 = tpu.reciprocal %64 {approx = true} : vector<128x1xf32> -> vector<128x1xf32>
    %66 = arith.truncf %62 : vector<128x64xf32> to vector<128x64xbf16>
    %67 = vector.extract_strided_slice %11 {offsets = [0, 32], sizes = [64, 16], strides = [1, 1]} : vector<64x64xbf16> to vector<64x16xbf16>
    %cst_29 = arith.constant dense<0.000000e+00> : vector<128x16xf32>
    %68 = tpu.matmul %66, %67, %cst_29 {dimension_numbers = #tpu.dot_dimension_numbers<[1], [0], [0], [1], [0, 0, 1, 1], [], []>} : vector<128x64xbf16>, vector<64x16xbf16>, vector<128x16xf32> -> vector<128x16xf32>
    %69 = vector.broadcast %65 : vector<128x1xf32> to vector<128x16xf32>
    %70 = arith.mulf %68, %69 : vector<128x16xf32>
    %71 = arith.truncf %70 : vector<128x16xf32> to vector<128x16xbf16>
    %c2 = arith.constant 2 : index
    %c0_30 = arith.constant 0 : index
    %c0_31 = arith.constant 0 : index
    %72 = vector.load %arg11[%c2, %c0_30, %c0_31] : memref<4x16x64xbf16, #tpu.memory_space<vmem>>, vector<1x16x64xbf16>
    %73 = vector.shape_cast %72 : vector<1x16x64xbf16> to vector<16x64xbf16>
    %cst_32 = arith.constant dense<0.000000e+00> : vector<128x64xf32>
    %74 = tpu.matmul %71, %73, %cst_32 {dimension_numbers = #tpu.dot_dimension_numbers<[1], [0], [0], [1], [0, 0, 1, 1], [], []>} : vector<128x16xbf16>, vector<16x64xbf16>, vector<128x64xf32> -> vector<128x64xf32>
    %75 = arith.addf %54, %74 : vector<128x64xf32>
    %76 = vector.extract_strided_slice %9 {offsets = [0, 48], sizes = [128, 16], strides = [1, 1]} : vector<128x64xbf16> to vector<128x16xbf16>
    %77 = vector.extract_strided_slice %10 {offsets = [0, 48], sizes = [64, 16], strides = [1, 1]} : vector<64x64xbf16> to vector<64x16xbf16>
    %cst_33 = arith.constant dense<0.000000e+00> : vector<128x64xf32>
    %78 = tpu.matmul %76, %77, %cst_33 {dimension_numbers = #tpu.dot_dimension_numbers<[1], [1], [0], [0], [0, 0, 1, 0], [], []>} : vector<128x16xbf16>, vector<64x16xbf16>, vector<128x64xf32> -> vector<128x64xf32>
    %cst_34 = arith.constant dense<0xFF800000> : vector<128xf32>
    %79 = vector.multi_reduction <maximumf>, %78, %cst_34 [1] : vector<128x64xf32> to vector<128xf32>
    %80 = vector.shape_cast %79 : vector<128xf32> to vector<128x1xf32>
    %81 = vector.broadcast %80 : vector<128x1xf32> to vector<128x64xf32>
    %82 = arith.subf %78, %81 : vector<128x64xf32>
    %83 = math.exp %82 : vector<128x64xf32>
    %cst_35 = arith.constant dense<0.000000e+00> : vector<128xf32>
    %84 = vector.multi_reduction <add>, %83, %cst_35 [1] : vector<128x64xf32> to vector<128xf32>
    %85 = vector.shape_cast %84 : vector<128xf32> to vector<128x1xf32>
    %86 = tpu.reciprocal %85 {approx = true} : vector<128x1xf32> -> vector<128x1xf32>
    %87 = arith.truncf %83 : vector<128x64xf32> to vector<128x64xbf16>
    %88 = vector.extract_strided_slice %11 {offsets = [0, 48], sizes = [64, 16], strides = [1, 1]} : vector<64x64xbf16> to vector<64x16xbf16>
    %cst_36 = arith.constant dense<0.000000e+00> : vector<128x16xf32>
    %89 = tpu.matmul %87, %88, %cst_36 {dimension_numbers = #tpu.dot_dimension_numbers<[1], [0], [0], [1], [0, 0, 1, 1], [], []>} : vector<128x64xbf16>, vector<64x16xbf16>, vector<128x16xf32> -> vector<128x16xf32>
    %90 = vector.broadcast %86 : vector<128x1xf32> to vector<128x16xf32>
    %91 = arith.mulf %89, %90 : vector<128x16xf32>
    %92 = arith.truncf %91 : vector<128x16xf32> to vector<128x16xbf16>
    %c3 = arith.constant 3 : index
    %c0_37 = arith.constant 0 : index
    %c0_38 = arith.constant 0 : index
    %93 = vector.load %arg11[%c3, %c0_37, %c0_38] : memref<4x16x64xbf16, #tpu.memory_space<vmem>>, vector<1x16x64xbf16>
    %94 = vector.shape_cast %93 : vector<1x16x64xbf16> to vector<16x64xbf16>
    %cst_39 = arith.constant dense<0.000000e+00> : vector<128x64xf32>
    %95 = tpu.matmul %92, %94, %cst_39 {dimension_numbers = #tpu.dot_dimension_numbers<[1], [0], [0], [1], [0, 0, 1, 1], [], []>} : vector<128x16xbf16>, vector<16x64xbf16>, vector<128x64xf32> -> vector<128x64xf32>
    %96 = arith.addf %75, %95 : vector<128x64xf32>
    %c0_40 = arith.constant 0 : index
    %c0_41 = arith.constant 0 : index
    %97 = vector.load %arg12[%c0_40, %c0_41] : memref<1x64xf32, #tpu.memory_space<vmem>>, vector<1x64xf32>
    %98 = vector.broadcast %97 : vector<1x64xf32> to vector<128x64xf32>
    %99 = arith.addf %96, %98 : vector<128x64xf32>
    %c0_42 = arith.constant 0 : index
    %c0_43 = arith.constant 0 : index
    %c0_44 = arith.constant 0 : index
    %100 = vector.load %arg13[%c0_42, %c0_43, %c0_44] : memref<1x128x64xf32, #tpu.memory_space<vmem>>, vector<1x128x64xf32>
    %101 = vector.shape_cast %100 : vector<1x128x64xf32> to vector<128x64xf32>
    %102 = vector.shape_cast %99 : vector<128x64xf32> to vector<1x128x64xf32>
    tpu.vector_store %arg13[%c0_42, %c0_43, %c0_44], %102 {strides = array<i32>} : memref<1x128x64xf32, #tpu.memory_space<vmem>>, vector<1x128x64xf32>,
    return
  }
  func.func @transform_0(%arg0: i32, %arg1: i32) -> (i32, i32, i32) {
    %c0_i32 = arith.constant 0 : i32
    %c0_i32_0 = arith.constant 0 : i32
    return %arg0, %arg1, %c0_i32 : i32, i32, i32
  }
  func.func @transform_1(%arg0: i32, %arg1: i32) -> (i32, i32, i32) {
    %c0_i32 = arith.constant 0 : i32
    %c0_i32_0 = arith.constant 0 : i32
    %c0_i32_1 = arith.constant 0 : i32
    return %arg0, %c0_i32, %c0_i32_0 : i32, i32, i32
  }
  func.func @transform_2(%arg0: i32, %arg1: i32) -> (i32, i32) {
    %c0_i32 = arith.constant 0 : i32
    %c0_i32_0 = arith.constant 0 : i32
    %c0_i32_1 = arith.constant 0 : i32
    return %c0_i32, %c0_i32_0 : i32, i32
  }
  func.func @transform_3(%arg0: i32, %arg1: i32) -> (i32, i32) {
    %c0_i32 = arith.constant 0 : i32
    %c0_i32_0 = arith.constant 0 : i32
    %c0_i32_1 = arith.constant 0 : i32
    return %c0_i32, %c0_i32_0 : i32, i32
  }
  func.func @transform_4(%arg0: i32, %arg1: i32) -> (i32, i32) {
    %c0_i32 = arith.constant 0 : i32
    %c0_i32_0 = arith.constant 0 : i32
    %c0_i32_1 = arith.constant 0 : i32
    return %c0_i32, %c0_i32_0 : i32, i32
  }
  func.func @transform_5(%arg0: i32, %arg1: i32) -> (i32, i32) {
    %c0_i32 = arith.constant 0 : i32
    %c0_i32_0 = arith.constant 0 : i32
    %c0_i32_1 = arith.constant 0 : i32
    return %c0_i32, %c0_i32_0 : i32, i32
  }
  func.func @transform_6(%arg0: i32, %arg1: i32) -> (i32, i32) {
    %c0_i32 = arith.constant 0 : i32
    %c0_i32_0 = arith.constant 0 : i32
    %c0_i32_1 = arith.constant 0 : i32
    return %c0_i32, %c0_i32_0 : i32, i32
  }
  func.func @transform_7(%arg0: i32, %arg1: i32) -> (i32, i32) {
    %c0_i32 = arith.constant 0 : i32
    %c0_i32_0 = arith.constant 0 : i32
    %c0_i32_1 = arith.constant 0 : i32
    return %c0_i32, %c0_i32_0 : i32, i32
  }
  func.func @transform_8(%arg0: i32, %arg1: i32) -> (i32, i32) {
    %c0_i32 = arith.constant 0 : i32
    %c0_i32_0 = arith.constant 0 : i32
    %c0_i32_1 = arith.constant 0 : i32
    return %c0_i32, %c0_i32_0 : i32, i32
  }
  func.func @transform_9(%arg0: i32, %arg1: i32) -> (i32, i32, i32) {
    %c0_i32 = arith.constant 0 : i32
    %c0_i32_0 = arith.constant 0 : i32
    %c0_i32_1 = arith.constant 0 : i32
    %c0_i32_2 = arith.constant 0 : i32
    return %c0_i32, %c0_i32_0, %c0_i32_1 : i32, i32, i32
  }
  func.func @transform_10(%arg0: i32, %arg1: i32) -> (i32, i32) {
    %c0_i32 = arith.constant 0 : i32
    %c0_i32_0 = arith.constant 0 : i32
    %c0_i32_1 = arith.constant 0 : i32
    return %c0_i32, %c0_i32_0 : i32, i32
  }
  func.func @transform_11(%arg0: i32, %arg1: i32) -> (i32, i32, i32) {
    %c0_i32 = arith.constant 0 : i32
    %c0_i32_0 = arith.constant 0 : i32
    return %arg0, %arg1, %c0_i32 : i32, i32, i32
  }
}

</mosaic_0001>

<bundles_post_ra>
// kernel: tpu_custom_call.1
= control target key start
LH: loop header
LB: loop body
LE: loop exit
PB: predicated region body
PF: predicated region fallthrough
CT: control target
= control target key end

     0   :  { %s5270_s17 = smov 0   ;;  %s5272_s18 = smov 0   ;;  %s6540_s0 = inlined_call_operand.vmem [shape: bf16[2,256,64], index: 0, kind: input, shape index: {}]   ;;  %s6541_s1 = inlined_call_operand.vmem [shape: bf16[2,64,256], index: 1, kind: input, shape index: {}]   ;;  %s6542_s2 = inlined_call_operand.vmem [shape: bf16[64,64], index: 2, kind: input, shape index: {}]   ;;  %s6543_s3 = inlined_call_operand.vmem [shape: bf16[64,64], index: 3, kind: input, shape index: {}]   ;;  %s6544_s4 = inlined_call_operand.vmem [shape: bf16[64,64], index: 4, kind: input, shape index: {}]   ;;  %s6545_s5 = inlined_call_operand.vmem [shape: bf16[256,64], index: 5, kind: input, shape index: {}]   ;;  %s6546_s6 = inlined_call_operand.vmem [shape: f32[1,64], index: 6, kind: input, shape index: {}]   ;;  %s6547_s7 = inlined_call_operand.vmem [shape: f32[1,64], index: 7, kind: input, shape index: {}]   ;;  %s6548_s8 = inlined_call_operand.vmem [shape: f32[1,64], index: 8, kind: input, shape index: {}]   ;;  %s6549_s9 = inlined_call_operand.vmem [shape: bf16[4,16,64], index: 9, kind: input, shape index: {}]   ;;  %s6550_s10 = inlined_call_operand.vmem [shape: f32[1,64], index: 10, kind: input, shape index: {}]   ;;  %s6551_s11 = inlined_call_operand.vmem [shape: f32[2,256,64], index: 11, kind: output, shape index: {}]  }
   0x1   :  { %s5274_s19 = smov 0   ;;  %s5276_s20 = smov 0  }
   0x2   :  { %s5278_s21 = smov 0  }
   0x3 LB: > { %6553 = sst [smem:[#allocation4_spill]] %s5201_s20  ;;  %s30_s22 = sadd.s32 1, %s5197_s19  ;;  %s5205_s21 = sphi %s5278_s21, %s21_s21   ;;  %s5201_s20 = sphi %s5276_s20, %s6558_s20   ;;  %s5197_s19 = sphi %s5274_s19, %s6560_s19   ;;  %s5193_s18 = sphi %s5272_s18, %s6556_s18   ;;  %s5189_s17 = sphi %s5270_s17, %s6559_s17  }
   0x4   : > { %s33_s23 = sadd.s32 1, %s5201_s20  ;;  %p31_p0 = scmp.ge.s32.totalorder %s30_s22, 2 }
   0x5   : > { %p4017_p1 = scmp.ge.s32.totalorder %s5205_s21, 1  ;;  %p368_p2 = scmp.lt.s32.totalorder %s5205_s21, 5 }
   0x6   : > { %s6562_s22 = smov (%p31_p0, %s30_s22), 0  ;;  %s6564_s23 = smov (!%p31_p0, %s33_s23), %s5201_s20 }
   0x7   : > { %6554 = sst [smem:[#allocation5_spill]] %s6562_s22  ;;  %p369_p3 = pnand %p4017_p1, %p368_p2 }
   0x8   : > { %p35_p4 = scmp.ge.s32.totalorder %s6564_s23, 2  ;;  %s4018_s24 = sshll.u32 (!%p369_p3), %s5189_s17, 4 }
   0x9   : > { %372 = sbr.rel (%p369_p3) target bundleno = 2953 (0xb89), region = 64  ;;  %p422_p5 = scmp.lt.s32.totalorder (!%p369_p3), %s5193_s18, 1 }
   0xa   : > { %s6566_s23 = smov (%p35_p4, %s6564_s23), 0  ;;  %p424_p6 = scmp.lt.s32.totalorder (!%p369_p3), %s4018_s24, 31 }
   0xb   : > { %6555 = sst [smem:[#allocation6_spill]] %s6566_s23  ;;  %p4026_p7 = scmp.ne.s32.totalorder (!%p369_p3), %s5189_s17, 0 }
   0xe   : > { %s6568_s18 = smov (!%p422_p5, %s5193_s18), 1  ;;  %s6570_s24 = smov (!%p424_p6, %s4018_s24), 31 }
   0xf   : > { %s4019_s25 = sshll.u32 %s6568_s18, 5  ;;  %s4223_s26 = sshll.u32 %s6568_s18, 6 }
  0x10   : > { %s427_s27 = sadd.s32 %s4019_s25, %s6570_s24  ;;  %s5306_s30 = scalar_lea.vmem %s6541_s1, %s4223_s26 }
  0x11   : > { %s4020_s12 = sshll.u32 %s427_s27, 2  ;;  %s4025_s13 = sshll.u32 %s427_s27, 3 }
  0x12   : > { %s5311_s16 = scalar_lea.vmem %s6540_s0, %s4020_s12  ;;  %s5316_s20 = scalar_lea.vmem %s6551_s11, %s4025_s13 }
  0x13   : > { %450 = sbr.rel (%p4026_p7) target bundleno = 812 (0x32c), region = 68 }
  0x18   : > { %v4827_v0 = vld [vmem:[%s6545_s5 + $0x78] sm:$0xff]   ;;  %v4829_v2 = vld [vmem:[%s6545_s5 + $0x70] sm:$0xff]   ;;  %v4831_v4 = vld [vmem:[%s6545_s5 + $0x68] sm:$0xff]   ;;  %vm699_vm0 = vcmask 523264   ;;  %vm980_vm1 = vcmask 519168  }
  0x19   : > { %v4828_v1 = vld [vmem:[%s6545_s5 + $0x38] sm:$0xff]   ;;  %4240 = vmatprep.subr.bf16.mxu0 %v4827_v0  ;;  %v4830_v3 = vld [vmem:[%s6545_s5 + $0x30] sm:$0xff]   ;;  %v4832_v5 = vld [vmem:[%s6545_s5 + $0x28] sm:$0xff]  }
  0x1a   : > { %4241 = vmatpush3.bf16.msra.mxu0 %v4828_v1  ;;  %v4833_v6 = vld [vmem:[%s6545_s5 + $0x60] sm:$0xff]   ;;  %v4835_v8 = vld [vmem:[%s6545_s5 + $0x58] sm:$0xff]   ;;  %v4837_v10 = vld [vmem:[%s6545_s5 + $0x50] sm:$0xff]  }
  0x1b   : > { %4242 = vmatprep.subr.bf16.mxu0 %v4829_v2  ;;  %v4834_v7 = vld [vmem:[%s6545_s5 + $0x20] sm:$0xff]   ;;  %v4836_v9 = vld [vmem:[%s6545_s5 + $0x18] sm:$0xff]   ;;  %v4838_v12 = vld [vmem:[%s6545_s5 + $0x10] sm:$0xff]  }
  0x1c   : > { %v4845_v11 = vld [vmem:[%s5306_s30 + $0x4] ss:$8 sps:$4 sm:$0xff]   ;;  %v4843_v17 = vld [vmem:[%s5306_s30] ss:$8 sps:$4 sm:$0xff]   ;;  %v4846_v18 = vld [vmem:[%s5306_s30 + $0x14] ss:$8 sps:$4 sm:$0xff]  }
  0x1d   : > { %666 = vmatprep.mubr.bf16.mxu0 %v4845_v11  ;;  %v4839_v13 = vld [vmem:[%s6545_s5 + $0x48] sm:$0xff]   ;;  %v4841_v15 = vld [vmem:[%s6545_s5 + $0x40] sm:$0xff]   ;;  %v4848_v19 = vld [vmem:[%s5306_s30 + $0x10] ss:$8 sps:$4 sm:$0xff]  }
  0x1e   : > { %4243 = vmatpush3.bf16.msra.mxu0 %v4830_v3  ;;  %v4840_v14 = vld [vmem:[%s6545_s5 + $0x8] sm:$0xff]   ;;  %v4842_v16 = vld [vmem:[%s6545_s5] sm:$0xff]   ;;  %v4852_v22 = vld [vmem:[%s5306_s30 + $0x34] ss:$8 sps:$4 sm:$0xff]  }
  0x1f   : > { %4244 = vmatprep.subr.bf16.mxu0 %v4831_v4  ;;  %v4849_v20 = vld [vmem:[%s5306_s30 + $0x24] ss:$8 sps:$4 sm:$0xff]   ;;  %v4851_v21 = vld [vmem:[%s5306_s30 + $0x20] ss:$8 sps:$4 sm:$0xff]   ;;  %v4854_v23 = vld [vmem:[%s5306_s30 + $0x30] ss:$8 sps:$4 sm:$0xff]  }
  0x20   : > { %v4027_v26 = vld [vmem:[%s6546_s6] ss:$0 sm:$0xff] }
  0x22   : > { %4245 = vmatpush3.bf16.msra.mxu0 %v4832_v5 }
  0x23   : > { %4246 = vmatprep.subr.bf16.mxu0 %v4833_v6 }
  0x26   : > { %4247 = vmatpush3.bf16.msra.mxu0 %v4834_v7 }
  0x27   : > { %4248 = vmatprep.subr.bf16.mxu0 %v4835_v8 }
  0x2a   : > { %4249 = vmatpush3.bf16.msra.mxu0 %v4836_v9 }
  0x2b   : > { %4250 = vmatprep.subr.bf16.mxu0 %v4837_v10 }
  0x2e   : > { %4251 = vmatpush3.bf16.msra.mxu0 %v4838_v12 }
  0x2f   : > { %4252 = vmatprep.subr.bf16.mxu0 %v4839_v13 }
  0x32   : > { %4253 = vmatpush3.bf16.msra.mxu0 %v4840_v14 }
  0x33   : > { %4254 = vmatprep.subr.bf16.mxu0 %v4841_v15 }
  0x36   : > { %4255 = vmatpush3.bf16.msra.mxu0 %v4842_v16 }
  0x39   : > { %667 = vmatmul.mubr.bf16.vlgmr.msra.gmra.mxu0 %v4843_v17 }
  0x3a   : > { %674 = vmatprep.mubr.bf16.mxu0 %v4846_v18 }
  0x41   : > { %675 = vmatmul.mubr.bf16.gmra.mxu0 %v4848_v19 }
  0x42   : > { %682 = vmatprep.mubr.bf16.mxu0 %v4849_v20 }
  0x49   : > { %683 = vmatmul.mubr.bf16.gmra.mxu0 %v4851_v21 }
  0x4a   : > { %690 = vmatprep.mubr.bf16.mxu0 %v4852_v22 }
  0x51   : > { %691 = vmatmul.mubr.bf16.gmra.mxu0 %v4854_v23 }
  0xf9   : > { %v4256_v24 = vpop.f32.mrf.mxu0 }
  0xfb   : > { %v4257_v25 = vpop.f32.mrf.mxu0 }
  0xfc   : > { %v4258_v27 = vadd.f32 %v4257_v25, %v4256_v24 }
  0xfd   : > { %v4259_v28 = vpop.f32.mrf.mxu0 }
  0xfe   : > { %v669_v29 = vadd.f32 %v4258_v27, %v4027_v26 }
  0xff   : > { %v4260_v30 = vpop.f32.mrf.mxu0 }
 0x100   : > { %v4261_v31 = vadd.f32 %v4260_v30, %v4259_v28  ;;  %v700_v32 = vsel %vm699_vm0, %v669_v29, 0.0 }
 0x101   : > { %v4262_v33 = vpop.f32.mrf.mxu0  ;;  %701 = vadd.xlane.f32.xlu0 %v700_v32 }
 0x102   : > { %v672_v34 = vadd.f32 %v4261_v31, %v4027_v26 }
 0x103   : > { %v4263_v35 = vpop.f32.mrf.mxu0 }
 0x104   : > { %v4264_v36 = vadd.f32 %v4263_v35, %v4262_v33  ;;  %v703_v37 = vsel %vm699_vm0, %v672_v34, 0.0 }
 0x105   : > { %v4265_v38 = vpop.f32.mrf.mxu0  ;;  %704 = vadd.xlane.f32.xlu0 %v703_v37 }
 0x106   : > { %v677_v39 = vadd.f32 %v4264_v36, %v4027_v26 }
 0x107   : > { %v4266_v40 = vpop.f32.mrf.mxu0 }
 0x108   : > { %v4267_v41 = vadd.f32 %v4266_v40, %v4265_v38  ;;  %v706_v42 = vsel %vm699_vm0, %v677_v39, 0.0 }
 0x109   : > { %v4268_v43 = vpop.f32.mrf.mxu0  ;;  %707 = vadd.xlane.f32.xlu1 %v706_v42  ;;  %v4856_v42 = vld [vmem:[%s6543_s3 + $0x10] sm:$0xff]  }
 0x10a   : > { %v680_v44 = vadd.f32 %v4267_v41, %v4027_v26  ;;  %v4855_v41 = vld [vmem:[%s6543_s3 + $0x18] sm:$0xff]  }
 0x10b   : > { %v4269_v45 = vpop.f32.mrf.mxu0  ;;  %4440 = vmatprep.subr.bf16.mxu1 %v4855_v41 }
 0x10c   : > { %v4270_v46 = vadd.f32 %v4269_v45, %v4268_v43  ;;  %v709_v47 = vsel %vm699_vm0, %v680_v44, 0.0  ;;  %4441 = vmatpush3.bf16.msra.mxu1 %v4855_v41  ;;  %v4857_v43 = vld [vmem:[%s6543_s3 + $0x8] sm:$0xff]   ;;  %v4859_v45 = vld [vmem:[%s6544_s4 + $0x18] sm:$0xff]  }
 0x10d   : > { %v4271_v48 = vpop.f32.mrf.mxu0  ;;  %710 = vadd.xlane.f32.xlu1 %v709_v47  ;;  %4442 = vmatprep.subr.bf16.mxu1 %v4856_v42 }
 0x10e   : > { %v685_v49 = vadd.f32 %v4270_v46, %v4027_v26 }
 0x10f   : > { %v4272_v50 = vpop.f32.mrf.mxu0 }
 0x110   : > { %v4273_v51 = vadd.f32 %v4272_v50, %v4271_v48  ;;  %v712_v52 = vsel %vm699_vm0, %v685_v49, 0.0  ;;  %4443 = vmatpush3.bf16.msra.mxu1 %v4856_v42 }
 0x111   : > { %v4274_v53 = vpop.f32.mrf.mxu0  ;;  %713 = vadd.xlane.f32.xlu0 %v712_v52  ;;  %4444 = vmatprep.subr.bf16.mxu1 %v4857_v43 }
 0x112   : > { %v688_v54 = vadd.f32 %v4273_v51, %v4027_v26 }
 0x113   : > { %v4275_v55 = vpop.f32.mrf.mxu0 }
 0x114   : > { %v4276_v56 = vadd.f32 %v4275_v55, %v4274_v53  ;;  %v715_v57 = vsel %vm699_vm0, %v688_v54, 0.0  ;;  %4445 = vmatpush3.bf16.msra.mxu1 %v4857_v43 }
 0x115   : > { %v4277_v58 = vpop.f32.mrf.mxu0  ;;  %716 = vadd.xlane.f32.xlu1 %v715_v57 }
 0x116   : > { %v693_v59 = vadd.f32 %v4276_v56, %v4027_v26 }
 0x117   : > { %v4278_v60 = vpop.f32.mrf.mxu0 }
 0x118   : > { %v4279_v61 = vadd.f32 %v4278_v60, %v4277_v58  ;;  %v718_v62 = vsel %vm699_vm0, %v693_v59, 0.0 }
 0x119   : > { %719 = vadd.xlane.f32.xlu0 %v718_v62 }
 0x11a   : > { %v696_v63 = vadd.f32 %v4279_v61, %v4027_v26 }
 0x11c   : > { %v721_v0 = vsel %vm699_vm0, %v696_v63, 0.0 }
 0x11d   : > { %722 = vadd.xlane.f32.xlu1 %v721_v0  ;;  %v4052_v0 = vld [vmem:[%s6547_s7] ss:$0 sm:$0xff] }
 0x18a   : > { %v702_v1 = vpop.xlane.xlu0 %701 }
 0x18b   : > { %v725_v2 = vmul.f32 0.015625, %v702_v1 }
 0x18d   : > { %v5386_v3 = vsub.f32 %v669_v29, %v725_v2 }
 0x18e   : > { %v705_v4 = vpop.xlane.xlu0 %704 }
 0x18f   : > { %v726_v5 = vmul.f32 0.015625, %v705_v4  ;;  %v741_v6 = vmul.f32 %v5386_v3, %v5386_v3 }
 0x191   : > { %v5390_v7 = vsub.f32 %v672_v34, %v726_v5  ;;  %v749_v8 = vsel %vm699_vm0, %v741_v6, 0.0 }
 0x192   : > { %v708_v9 = vpop.xlane.xlu1 %707  ;;  %750 = vadd.xlane.f32.xlu0 %v749_v8 }
 0x193   : > { %v727_v10 = vmul.f32 0.015625, %v708_v9  ;;  %v742_v11 = vmul.f32 %v5390_v7, %v5390_v7  ;;  %v4053_v9 = vld [vmem:[%s6548_s8] ss:$0 sm:$0xff] }
 0x195   : > { %v5395_v12 = vsub.f32 %v677_v39, %v727_v10  ;;  %v752_v13 = vsel %vm699_vm0, %v742_v11, 0.0 }
 0x196   : > { %v711_v14 = vpop.xlane.xlu1 %710  ;;  %753 = vadd.xlane.f32.xlu1 %v752_v13 }
 0x197   : > { %v728_v15 = vmul.f32 0.015625, %v711_v14  ;;  %v743_v16 = vmul.f32 %v5395_v12, %v5395_v12 }
 0x199   : > { %v5400_v17 = vsub.f32 %v680_v44, %v728_v15  ;;  %v755_v18 = vsel %vm699_vm0, %v743_v16, 0.0  ;;  %v4858_v44 = vld [vmem:[%s6543_s3] sm:$0xff]  }
 0x19a   : > { %756 = vadd.xlane.f32.xlu0 %v755_v18  ;;  %v714_v19 = vpop.xlane.xlu0 %713  ;;  %4446 = vmatprep.subr.bf16.mxu1 %v4858_v44 }
 0x19b   : > { %v729_v20 = vmul.f32 0.015625, %v714_v19  ;;  %v744_v21 = vmul.f32 %v5400_v17, %v5400_v17  ;;  %4447 = vmatpush3.bf16.msra.mxu1 %v4858_v44 }
 0x19c   : > { %4456 = vmatprep.subr.bf16.mxu1 %v4859_v45 }
 0x19d   : > { %v5405_v22 = vsub.f32 %v685_v49, %v729_v20  ;;  %v758_v23 = vsel %vm699_vm0, %v744_v21, 0.0 }
 0x19e   : > { %v717_v24 = vpop.xlane.xlu1 %716  ;;  %759 = vadd.xlane.f32.xlu1 %v758_v23 }
 0x19f   : > { %v730_v25 = vmul.f32 0.015625, %v717_v24  ;;  %v745_v26 = vmul.f32 %v5405_v22, %v5405_v22 }
 0x1a1   : > { %v5410_v27 = vsub.f32 %v688_v54, %v730_v25  ;;  %v761_v28 = vsel %vm699_vm0, %v745_v26, 0.0 }
 0x1a2   : > { %762 = vadd.xlane.f32.xlu0 %v761_v28  ;;  %v720_v29 = vpop.xlane.xlu0 %719 }
 0x1a3   : > { %v731_v30 = vmul.f32 0.015625, %v720_v29  ;;  %v746_v31 = vmul.f32 %v5410_v27, %v5410_v27 }
 0x1a5   : > { %v5415_v32 = vsub.f32 %v693_v59, %v731_v30  ;;  %v764_v33 = vsel %vm699_vm0, %v746_v31, 0.0 }
 0x1a6   : > { %v723_v34 = vpop.xlane.xlu1 %722  ;;  %765 = vadd.xlane.f32.xlu1 %v764_v33 }
 0x1a7   : > { %v732_v35 = vmul.f32 0.015625, %v723_v34  ;;  %v747_v36 = vmul.f32 %v5415_v32, %v5415_v32 }
 0x1a9   : > { %v5420_v37 = vsub.f32 %v696_v63, %v732_v35  ;;  %v767_v38 = vsel %vm699_vm0, %v747_v36, 0.0  ;;  %v4861_v36 = vld [vmem:[%s6544_s4 + $0x8] sm:$0xff]  }
 0x1aa   : > { %768 = vadd.xlane.f32.xlu0 %v767_v38 }
 0x1ab   : > { %v748_v39 = vmul.f32 %v5420_v37, %v5420_v37 }
 0x1ad   : > { %v770_v40 = vsel %vm699_vm0, %v748_v39, 0.0 }
 0x1ae   : > { %771 = vadd.xlane.f32.xlu1 %v770_v40 }
 0x21b   : > { %v751_v46 = vpop.xlane.xlu0 %750 }
 0x21c   : > { %v773_v47 = vmul.f32 0.015625, %v751_v46 }
 0x21e   : > { %v781_v48 = vadd.f32 1e-05, %v773_v47 }
 0x21f   : > { %v754_v49 = vpop.xlane.xlu1 %753 }
 0x220   : > { %4863 = vrsqrt.f32 %v781_v48  ;;  %v774_v50 = vmul.f32 0.015625, %v754_v49 }
 0x222   : > { %v782_v51 = vadd.f32 1e-05, %v774_v50 }
 0x223   : > { %v757_v52 = vpop.xlane.xlu0 %756 }
 0x224   : > { %4865 = vrsqrt.f32 %v782_v51  ;;  %v775_v53 = vmul.f32 0.015625, %v757_v52 }
 0x226   : > { %v783_v54 = vadd.f32 1e-05, %v775_v53 }
 0x227   : > { %v760_v55 = vpop.xlane.xlu1 %759 }
 0x228   : > { %4867 = vrsqrt.f32 %v783_v54  ;;  %v776_v56 = vmul.f32 0.015625, %v760_v55 }
 0x22a   : > { %v784_v57 = vadd.f32 1e-05, %v776_v56 }
 0x22b   : > { %v763_v58 = vpop.xlane.xlu0 %762 }
 0x22c   : > { %4869 = vrsqrt.f32 %v784_v57  ;;  %v777_v59 = vmul.f32 0.015625, %v763_v58 }
 0x22d   : > { %v4864_v60 = vpop.eup %4863 }
 0x22e   : > { %v785_v61 = vadd.f32 1e-05, %v777_v59  ;;  %v797_v62 = vmul.f32 %v4864_v60, %v5386_v3 }
 0x22f   : > { %v766_v63 = vpop.xlane.xlu1 %765 }
 0x230   : > { %4871 = vrsqrt.f32 %v785_v61  ;;  %v778_v1 = vmul.f32 0.015625, %v766_v63  ;;  %v812_v6 = vmul.f32 %v4052_v0, %v797_v62 }
 0x231   : > { %v4866_v2 = vpop.eup %4865 }
 0x232   : > { %v786_v4 = vadd.f32 1e-05, %v778_v1  ;;  %v798_v5 = vmul.f32 %v4866_v2, %v5390_v7  ;;  %v827_v14 = vadd.f32 %v4053_v9, %v812_v6 }
 0x233   : > { %v769_v8 = vpop.xlane.xlu0 %768 }
 0x234   : > { %4873 = vrsqrt.f32 %v786_v4  ;;  %v779_v10 = vmul.f32 0.015625, %v769_v8  ;;  %v813_v3 = vmul.f32 %v4052_v0, %v798_v5 }
 0x235   : > { %v4868_v11 = vpop.eup %4867 }
 0x236   : > { %v787_v13 = vadd.f32 1e-05, %v779_v10  ;;  %v828_v15 = vadd.f32 %v4053_v9, %v813_v3  ;;  %v799_v16 = vmul.f32 %v4868_v11, %v5395_v12  ;;  %v4860_v12 = vld [vmem:[%s6544_s4 + $0x10] sm:$0xff]  }
 0x237   : > { %v772_v18 = vpop.xlane.xlu1 %771 }
 0x238   : > { %4875 = vrsqrt.f32 %v787_v13  ;;  %v780_v19 = vmul.f32 0.015625, %v772_v18  ;;  %v835_v20 = vpack.c.bf16 %v828_v15, %v827_v14  ;;  %v814_v24 = vmul.f32 %v4052_v0, %v799_v16 }
 0x239   : > { %v4870_v7 = vpop.eup %4869 }
 0x23a   : > { %v788_v21 = vadd.f32 1e-05, %v780_v19  ;;  %4448 = vmatprep.mubr.msk.bf16.mxu1 %vm699_vm0, %v835_v20  ;;  %v800_v23 = vmul.f32 %v4870_v7, %v5400_v17  ;;  %v829_v28 = vadd.f32 %v4053_v9, %v814_v24 }
 0x23c   : > { %4877 = vrsqrt.f32 %v788_v21  ;;  %v815_v25 = vmul.f32 %v4052_v0, %v800_v23 }
 0x23d   : > { %v4872_v26 = vpop.eup %4871 }
 0x23e   : > { %v830_v29 = vadd.f32 %v4053_v9, %v815_v25  ;;  %v801_v30 = vmul.f32 %v4872_v26, %v5405_v22 }
 0x240   : > { %v836_v31 = vpack.c.bf16 %v830_v29, %v829_v28  ;;  %v816_v35 = vmul.f32 %v4052_v0, %v801_v30 }
 0x241   : > { %v4874_v33 = vpop.eup %4873 }
 0x242   : > { %4449 = vmatmul.mubr.msk.bf16.vlgmr.msra.gmra.mxu1 %vm699_vm0, %v836_v31  ;;  %v802_v34 = vmul.f32 %v4874_v33, %v5410_v27  ;;  %v831_v22 = vadd.f32 %v4053_v9, %v816_v35  ;;  %v4862_v27 = vld [vmem:[%s6544_s4] sm:$0xff]  }
 0x243   : > { %4457 = vmatpush3.bf16.msra.mxu1 %v4859_v45 }
 0x244   : > { %v817_v17 = vmul.f32 %v4052_v0, %v802_v34  ;;  %4458 = vmatprep.subr.bf16.mxu1 %v4860_v12 }
 0x245   : > { %v4876_v38 = vpop.eup %4875 }
 0x246   : > { %v832_v39 = vadd.f32 %v4053_v9, %v817_v17  ;;  %v803_v40 = vmul.f32 %v4876_v38, %v5415_v32 }
 0x247   : > { %4459 = vmatpush3.bf16.msra.mxu1 %v4860_v12 }
 0x248   : > { %v837_v41 = vpack.c.bf16 %v832_v39, %v831_v22  ;;  %4460 = vmatprep.subr.bf16.mxu1 %v4861_v36  ;;  %v818_v44 = vmul.f32 %v4052_v0, %v803_v40 }
 0x249   : > { %v4878_v42 = vpop.eup %4877 }
 0x24a   : > { %4452 = vmatprep.mubr.msk.bf16.mxu1 %vm699_vm0, %v837_v41  ;;  %v804_v43 = vmul.f32 %v4878_v42, %v5420_v37  ;;  %v833_v46 = vadd.f32 %v4053_v9, %v818_v44 }
 0x24b   : > { %4461 = vmatpush3.bf16.msra.mxu1 %v4861_v36 }
 0x24c   : > { %v819_v45 = vmul.f32 %v4052_v0, %v804_v43  ;;  %4462 = vmatprep.subr.bf16.mxu1 %v4862_v27 }
 0x24e   : > { %v834_v47 = vadd.f32 %v4053_v9, %v819_v45 }
 0x24f   : > { %4463 = vmatpush3.bf16.msra.mxu1 %v4862_v27 }
 0x250   : > { %v838_v32 = vpack.c.bf16 %v834_v47, %v833_v46 }
 0x252   : > { %4453 = vmatmul.mubr.msk.bf16.gmra.mxu1 %vm699_vm0, %v838_v32 }
 0x253   : > { %4464 = vmatprep.mubr.msk.bf16.mxu1 %vm699_vm0, %v835_v20 }
 0x25a   : > { %4465 = vmatmul.mubr.msk.bf16.vlgmr.msra.gmra.mxu1 %vm699_vm0, %v836_v31 }
 0x25b   : > { %4468 = vmatprep.mubr.msk.bf16.mxu1 %vm699_vm0, %v837_v41 }
 0x262   : > { %4469 = vmatmul.mubr.msk.bf16.gmra.mxu1 %vm699_vm0, %v838_v32 }
 0x302   : > { %v4450_v48 = vpop.f32.mrf.mxu1 }
 0x303   : > { %v4226_v37 = vpack.c.bf16 %v4450_v48, %v4450_v48 }
 0x304   : > { %v917_v49 = vpop.f32.mrf.mxu1 }
 0x305   : > { %983 = vst.msk [vmem:[#allocation2 + $0x8] sm:$0xf] %vm980_vm1, %v4226_v37  ;;  %v4224_v50 = vpack.c.bf16 %v917_v49, %v917_v49 }
 0x306   : > { %v4451_v51 = vpop.f32.mrf.mxu1 }
 0x307   : > { %981 = vst.msk [vmem:[#allocation2] sm:$0xf] %vm980_vm1, %v4224_v50  ;;  %v4227_v52 = vpack.c.bf16 %v4451_v51, %v4451_v51 }
 0x308   : > { %v920_v53 = vpop.f32.mrf.mxu1 }
 0x309   : > { %984 = vst.msk [vmem:[#allocation2 + $0xc] sm:$0xf] %vm980_vm1, %v4227_v52  ;;  %v4225_v54 = vpack.c.bf16 %v920_v53, %v920_v53 }
 0x30b   : > { %982 = vst.msk [vmem:[#allocation2 + $0x4] sm:$0xf] %vm980_vm1, %v4225_v54 }
 0x312   : > { %v4454_v55 = vpop.f32.mrf.mxu1 }
 0x313   : > { %v4230_v56 = vpack.c.bf16 %v4454_v55, %v4454_v55 }
 0x314   : > { %v933_v57 = vpop.f32.mrf.mxu1 }
 0x315   : > { %987 = vst.msk [vmem:[#allocation2 + $0x18] sm:$0xf] %vm980_vm1, %v4230_v56  ;;  %v4228_v58 = vpack.c.bf16 %v933_v57, %v933_v57 }
 0x316   : > { %v4455_v59 = vpop.f32.mrf.mxu1 }
 0x317   : > { %985 = vst.msk [vmem:[#allocation2 + $0x10] sm:$0xf] %vm980_vm1, %v4228_v58  ;;  %v4231_v60 = vpack.c.bf16 %v4455_v59, %v4455_v59 }
 0x318   : > { %v936_v61 = vpop.f32.mrf.mxu1 }
 0x319   : > { %988 = vst.msk [vmem:[#allocation2 + $0x1c] sm:$0xf] %vm980_vm1, %v4231_v60  ;;  %v4229_v62 = vpack.c.bf16 %v936_v61, %v936_v61 }
 0x31a   : > { %v4466_v63 = vpop.f32.mrf.mxu1 }
 0x31b   : > { %986 = vst.msk [vmem:[#allocation2 + $0x14] sm:$0xf] %vm980_vm1, %v4229_v62  ;;  %v4234_v0 = vpack.c.bf16 %v4466_v63, %v4466_v63 }
 0x31c   : > { %v1055_v1 = vpop.f32.mrf.mxu1 }
 0x31d   : > { %1120 = vst.msk [vmem:[#allocation3 + $0x8] sm:$0xf] %vm980_vm1, %v4234_v0  ;;  %v4232_v2 = vpack.c.bf16 %v1055_v1, %v1055_v1 }
 0x31e   : > { %v4467_v4 = vpop.f32.mrf.mxu1 }
 0x31f   : > { %1118 = vst.msk [vmem:[#allocation3] sm:$0xf] %vm980_vm1, %v4232_v2  ;;  %v4235_v5 = vpack.c.bf16 %v4467_v4, %v4467_v4 }
 0x320   : > { %v1058_v6 = vpop.f32.mrf.mxu1 }
 0x321   : > { %1121 = vst.msk [vmem:[#allocation3 + $0xc] sm:$0xf] %vm980_vm1, %v4235_v5  ;;  %v4233_v8 = vpack.c.bf16 %v1058_v6, %v1058_v6 }
 0x322   : > { %v4470_v9 = vpop.f32.mrf.mxu1 }
 0x323   : > { %1119 = vst.msk [vmem:[#allocation3 + $0x4] sm:$0xf] %vm980_vm1, %v4233_v8  ;;  %v4238_v10 = vpack.c.bf16 %v4470_v9, %v4470_v9 }
 0x324   : > { %v1071_v3 = vpop.f32.mrf.mxu1 }
 0x325   : > { %1124 = vst.msk [vmem:[#allocation3 + $0x18] sm:$0xf] %vm980_vm1, %v4238_v10  ;;  %v4236_v11 = vpack.c.bf16 %v1071_v3, %v1071_v3 }
 0x326   : > { %v4471_v13 = vpop.f32.mrf.mxu1 }
 0x327   : > { %1122 = vst.msk [vmem:[#allocation3 + $0x10] sm:$0xf] %vm980_vm1, %v4236_v11  ;;  %v4239_v14 = vpack.c.bf16 %v4471_v13, %v4471_v13 }
 0x328   : > { %v1074_v15 = vpop.f32.mrf.mxu1 }
 0x329   : > { %1125 = vst.msk [vmem:[#allocation3 + $0x1c] sm:$0xf] %vm980_vm1, %v4239_v14  ;;  %v4237_v16 = vpack.c.bf16 %v1074_v15, %v1074_v15 }
 0x32b   : > { %1123 = vst.msk [vmem:[#allocation3 + $0x14] sm:$0xf] %vm980_vm1, %v4237_v16 }
 0x32c PF: > { %v4879_v18 = vld [vmem:[%s6542_s2 + $0x18] sm:$0xff]   ;;  %v4880_v19 = vld [vmem:[%s6542_s2 + $0x10] sm:$0xff]   ;;  %v4881_v20 = vld [vmem:[%s6542_s2 + $0x8] sm:$0xff]   ;;  %vm1214_vm2 = vcmask 523264   ;;  %vm1396_vm3 = vcmask 130048   ;;  %s5207_s27 = smov 112  }
 0x32d   : > { %4472 = vmatprep.subr.bf16.mxu0 %v4879_v18  ;;  %v4883_v7 = vld [vmem:[%s5311_s16] sm:$0xff]   ;;  %v4884_v23 = vld [vmem:[%s5311_s16 + $0x8] sm:$0xff]   ;;  %v5503_v24 = vld [vmem:[#allocation2 + $0x18] sm:$0xff]   ;;  %s5209_s17 = smov 80  }
 0x32e   : > { %4473 = vmatpush3.bf16.msra.mxu0 %v4879_v18  ;;  %4480 = vmatprep.mubr.msk.bf16.mxu0 %vm1214_vm2, %v4883_v7  ;;  %v4882_v21 = vld [vmem:[%s6542_s2] sm:$0xff]   ;;  %v5505_v25 = vld [vmem:[#allocation2 + $0x10] sm:$0xff]   ;;  %v1431_v26 = vsel %vm1396_vm3, %v5503_v24, 0  ;;  %v5513_v28 = vld [vmem:[#allocation2 + $0x8] sm:$0xff]  }
 0x32f   : > { %4474 = vmatprep.subr.bf16.mxu0 %v4880_v19  ;;  %1899 = vrot.lane.b32.xlu0 %v5503_v24, %s5207_s27  ;;  %v4885_v29 = vld [vmem:[%s5311_s16 + $0x10] sm:$0xff]   ;;  %v1428_v30 = vsel %vm1396_vm3, %v5505_v25, 0  ;;  %v4886_v31 = vld [vmem:[%s5311_s16 + $0x18] sm:$0xff]   ;;  %v4887_v12 = vld [vmem:[%s5311_s16 + $0x20] sm:$0xff]   ;;  %v1425_v33 = vsel %vm1396_vm3, %v5513_v28, 0 }
 0x330   : > { %4768 = vmatprep.subr.msk.bf16.mxu1 %vm1396_vm3, %v5503_v24  ;;  %1895 = vrot.lane.b32.xlu1 %v5513_v28, %s5207_s27  ;;  %v4888_v34 = vld [vmem:[%s5311_s16 + $0x28] sm:$0xff]   ;;  %v4889_v35 = vld [vmem:[%s5311_s16 + $0x30] sm:$0xff]   ;;  %v4890_v17 = vld [vmem:[%s5311_s16 + $0x38] sm:$0xff]   ;;  %s5208_s16 = smov 96  }
 0x331   : > { %4497 = vmatpush3.bf16.xpose.msra.mxu1 %v1431_v26  ;;  %v5540_v36 = vld [vmem:[#allocation2] sm:$0xff]   ;;  %v5579_v6 = vld [vmem:[#allocation3 + $0x18] sm:$0xff]  }
 0x332   : > { %4475 = vmatpush3.bf16.msra.mxu0 %v4880_v19  ;;  %4769 = vmatprep.subr.msk.bf16.mxu1 %vm1396_vm3, %v5505_v25  ;;  %v1422_v38 = vsel %vm1396_vm3, %v5540_v36, 0  ;;  %v5587_v11 = vld [vmem:[#allocation3 + $0x10] sm:$0xff]  }
 0x333   : > { %4476 = vmatprep.subr.bf16.mxu0 %v4881_v20  ;;  %1897 = vrot.lane.b32.xlu0 %v5505_v25, %s5207_s27 }
 0x334   : > { %1893 = vrot.lane.b32.xlu1 %v5540_v36, %s5207_s27 }
 0x336   : > { %4477 = vmatpush3.bf16.msra.mxu0 %v4881_v20 }
 0x337   : > { %4478 = vmatprep.subr.bf16.mxu0 %v4882_v21 }
 0x339   : > { %4499 = vmatpush3.bf16.xpose.msra.mxu1 %v1428_v30 }
 0x33a   : > { %4479 = vmatpush3.bf16.msra.mxu0 %v4882_v21  ;;  %4770 = vmatprep.subr.msk.bf16.mxu1 %vm1396_vm3, %v5513_v28 }
 0x33b   : > { %4520 = vmatprep.subr.bf16.mxu0 %v5579_v6 }
 0x33d   : > { %4481 = vmatmul.mubr.msk.bf16.vlgmr.msra.gmra.mxu0 %vm1214_vm2, %v4884_v23 }
 0x33e   : > { %4484 = vmatprep.mubr.msk.bf16.mxu0 %vm1214_vm2, %v4885_v29  ;;  %4521 = vmatpush3.bf16.msra.mxu0 %v5579_v6 }
 0x33f   : > { %4522 = vmatprep.subr.bf16.mxu0 %v5587_v11 }
 0x341   : > { %4501 = vmatpush3.bf16.xpose.msra.mxu1 %v1425_v33 }
 0x342   : > { %4771 = vmatprep.subr.msk.bf16.mxu1 %vm1396_vm3, %v5540_v36  ;;  %4523 = vmatpush3.bf16.msra.mxu0 %v5587_v11 }
 0x345   : > { %4485 = vmatmul.mubr.msk.bf16.gmra.mxu0 %vm1214_vm2, %v4886_v31 }
 0x346   : > { %4488 = vmatprep.mubr.msk.bf16.mxu0 %vm1214_vm2, %v4887_v12 }
 0x349   : > { %4503 = vmatpush3.bf16.xpose.msra.mxu1 %v1422_v38 }
 0x34d   : > { %4489 = vmatmul.mubr.msk.bf16.gmra.mxu0 %vm1214_vm2, %v4888_v34 }
 0x34e   : > { %4492 = vmatprep.mubr.msk.bf16.mxu0 %vm1214_vm2, %v4889_v35 }
 0x355   : > { %4493 = vmatmul.mubr.msk.bf16.gmra.mxu0 %vm1214_vm2, %v4890_v17 }
 0x3a1   : > { %v1900_v22 = vpop.permute.xlu0 %1899 }
 0x3a2   : > { %4772 = vmatprep.subr.msk.bf16.mxu1 %vm1396_vm3, %v1900_v22  ;;  %v1935_v37 = vsel %vm1396_vm3, %v1900_v22, 0  ;;  %v1896_v61 = vpop.permute.xlu1 %1895 }
 0x3a3   : > { %v1929_v3 = vsel %vm1396_vm3, %v1896_v61, 0 }
 0x3a5   : > { %v1898_v49 = vpop.permute.xlu0 %1897 }
 0x3a6   : > { %v1932_v60 = vsel %vm1396_vm3, %v1898_v49, 0  ;;  %v1894_v13 = vpop.permute.xlu1 %1893 }
 0x3a7   : > { %v1926_v23 = vsel %vm1396_vm3, %v1894_v13, 0 }
 0x3fd   : > { %v4482_v39 = vpop.f32.mrf.mxu0 }
 0x3fe   : > { %v1338_v27 = vmul.f32 0.25, %v4482_v39 }
 0x3ff   : > { %v1273_v40 = vpop.f32.mrf.mxu0 }
 0x400   : > { %v1336_v44 = vmul.f32 0.25, %v1273_v40 }
 0x401   : > { %v4483_v41 = vpop.f32.mrf.mxu0 }
 0x402   : > { %v1339_v42 = vmul.f32 0.25, %v4483_v41 }
 0x403   : > { %v1276_v43 = vpop.f32.mrf.mxu0 }
 0x404   : > { %v5549_v45 = vpack.c.bf16 %v1339_v42, %v1338_v27  ;;  %v1337_v46 = vmul.f32 0.25, %v1276_v43 }
 0x405   : > { %v4486_v47 = vpop.f32.mrf.mxu0 }
 0x406   : > { %v5551_v32 = vpack.c.bf16 %v1337_v46, %v1336_v44  ;;  %1879 = vrot.lane.b32.xlu1 %v5549_v45, %s5207_s27  ;;  %v1342_v51 = vmul.f32 0.25, %v4486_v47 }
 0x407   : > { %v1289_v48 = vpop.f32.mrf.mxu0 }
 0x408   : > { %1877 = vrot.lane.b32.xlu0 %v5551_v32, %s5207_s27  ;;  %4504 = vmatprep.mubr.msk.bf16.mxu1 %vm1396_vm3, %v5551_v32  ;;  %v1340_v54 = vmul.f32 0.25, %v1289_v48 }
 0x409   : > { %v4487_v50 = vpop.f32.mrf.mxu0  ;;  %4505 = vmatmul.mubr.msk.bf16.vlgmr.msra.gmra.mxu1 %vm1396_vm3, %v5549_v45 }
 0x40a   : > { %v1343_v52 = vmul.f32 0.25, %v4487_v50  ;;  %4545 = vmatpush3.bf16.xpose.msra.mxu1 %v1935_v37 }
 0x40b   : > { %v1292_v53 = vpop.f32.mrf.mxu0  ;;  %4773 = vmatprep.subr.msk.bf16.mxu1 %vm1396_vm3, %v1898_v49 }
 0x40c   : > { %v5563_v55 = vpack.c.bf16 %v1343_v52, %v1342_v51  ;;  %v1341_v56 = vmul.f32 0.25, %v1292_v53 }
 0x40d   : > { %v4490_v57 = vpop.f32.mrf.mxu0 }
 0x40e   : > { %v5565_v58 = vpack.c.bf16 %v1341_v56, %v1340_v54  ;;  %1883 = vrot.lane.b32.xlu1 %v5563_v55, %s5207_s27  ;;  %v1346_v63 = vmul.f32 0.25, %v4490_v57 }
 0x40f   : > { %v1305_v59 = vpop.f32.mrf.mxu0 }
 0x410   : > { %1881 = vrot.lane.b32.xlu0 %v5565_v58, %s5207_s27  ;;  %4508 = vmatprep.mubr.msk.bf16.mxu1 %vm1396_vm3, %v5565_v58  ;;  %v1344_v2 = vmul.f32 0.25, %v1305_v59 }
 0x411   : > { %v4491_v62 = vpop.f32.mrf.mxu0  ;;  %4509 = vmatmul.mubr.msk.bf16.gmra.mxu1 %vm1396_vm3, %v5563_v55 }
 0x412   : > { %v1347_v0 = vmul.f32 0.25, %v4491_v62  ;;  %4547 = vmatpush3.bf16.xpose.msra.mxu1 %v1932_v60 }
 0x413   : > { %v1308_v1 = vpop.f32.mrf.mxu0  ;;  %4774 = vmatprep.subr.msk.bf16.mxu1 %vm1396_vm3, %v1896_v61 }
 0x414   : > { %v5577_v4 = vpack.c.bf16 %v1347_v0, %v1346_v63  ;;  %v1345_v5 = vmul.f32 0.25, %v1308_v1 }
 0x415   : > { %v4494_v8 = vpop.f32.mrf.mxu0 }
 0x416   : > { %v5581_v9 = vpack.c.bf16 %v1345_v5, %v1344_v2  ;;  %1887 = vrot.lane.b32.xlu1 %v5577_v4, %s5207_s27  ;;  %v1350_v15 = vmul.f32 0.25, %v4494_v8  ;;  %v5690_v8 = vld [vmem:[#allocation3 + $0x8] sm:$0xff]  }
 0x417   : > { %v1321_v10 = vpop.f32.mrf.mxu0  ;;  %4524 = vmatprep.subr.bf16.mxu0 %v5690_v8 }
 0x418   : > { %1885 = vrot.lane.b32.xlu0 %v5581_v9, %s5207_s27  ;;  %4512 = vmatprep.mubr.msk.bf16.mxu1 %vm1396_vm3, %v5581_v9  ;;  %v1348_v19 = vmul.f32 0.25, %v1321_v10 }
 0x419   : > { %v4495_v14 = vpop.f32.mrf.mxu0  ;;  %4513 = vmatmul.mubr.msk.bf16.gmra.mxu1 %vm1396_vm3, %v5577_v4  ;;  %4525 = vmatpush3.bf16.msra.mxu0 %v5690_v8 }
 0x41a   : > { %v1351_v16 = vmul.f32 0.25, %v4495_v14  ;;  %4549 = vmatpush3.bf16.xpose.msra.mxu1 %v1929_v3  ;;  %v5700_v14 = vld [vmem:[#allocation3] sm:$0xff]  }
 0x41b   : > { %v1324_v18 = vpop.f32.mrf.mxu0  ;;  %4775 = vmatprep.subr.msk.bf16.mxu1 %vm1396_vm3, %v1894_v13  ;;  %4526 = vmatprep.subr.bf16.mxu0 %v5700_v14 }
 0x41c   : > { %v5599_v20 = vpack.c.bf16 %v1351_v16, %v1350_v15  ;;  %v1349_v7 = vmul.f32 0.25, %v1324_v18 }
 0x41d   : > { %4527 = vmatpush3.bf16.msra.mxu0 %v5700_v14 }
 0x41e   : > { %v5601_v21 = vpack.c.bf16 %v1349_v7, %v1348_v19  ;;  %1891 = vrot.lane.b32.xlu1 %v5599_v20, %s5207_s27 }
 0x420   : > { %1889 = vrot.lane.b32.xlu0 %v5601_v21, %s5207_s27  ;;  %4516 = vmatprep.mubr.msk.bf16.mxu1 %vm1396_vm3, %v5601_v21 }
 0x421   : > { %4517 = vmatmul.mubr.msk.bf16.gmra.mxu1 %vm1396_vm3, %v5599_v20 }
 0x422   : > { %4551 = vmatpush3.bf16.xpose.msra.mxu1 %v1926_v23  ;;  %2208 = vrot.lane.b32.xlu1 %v5579_v6, %s5207_s27 }
 0x424   : > { %2206 = vrot.lane.b32.xlu0 %v5587_v11, %s5207_s27 }
 0x478   : > { %v1880_v29 = vpop.permute.xlu1 %1879 }
 0x47a   : > { %v1878_v26 = vpop.permute.xlu0 %1877 }
 0x47b   : > { %4552 = vmatprep.mubr.msk.bf16.mxu1 %vm1396_vm3, %v1878_v26 }
 0x47c   : > { %4553 = vmatmul.mubr.msk.bf16.vlgmr.msra.gmra.mxu1 %vm1396_vm3, %v1880_v29 }
 0x480   : > { %v1884_v31 = vpop.permute.xlu1 %1883 }
 0x482   : > { %v1882_v30 = vpop.permute.xlu0 %1881 }
 0x483   : > { %4556 = vmatprep.mubr.msk.bf16.mxu1 %vm1396_vm3, %v1882_v30 }
 0x484   : > { %4557 = vmatmul.mubr.msk.bf16.gmra.mxu1 %vm1396_vm3, %v1884_v31 }
 0x488   : > { %v1888_v33 = vpop.permute.xlu1 %1887 }
 0x48a   : > { %v1886_v12 = vpop.permute.xlu0 %1885 }
 0x48b   : > { %4560 = vmatprep.mubr.msk.bf16.mxu1 %vm1396_vm3, %v1886_v12 }
 0x48c   : > { %4561 = vmatmul.mubr.msk.bf16.gmra.mxu1 %vm1396_vm3, %v1888_v33 }
 0x490   : > { %v1892_v35 = vpop.permute.xlu1 %1891 }
 0x492   : > { %v1890_v34 = vpop.permute.xlu0 %1889 }
 0x493   : > { %4564 = vmatprep.mubr.msk.bf16.mxu1 %vm1396_vm3, %v1890_v34 }
 0x494   : > { %4565 = vmatmul.mubr.msk.bf16.gmra.mxu1 %vm1396_vm3, %v1892_v35  ;;  %v5650_v37 = vpop.permute.xlu1 %2208 }
 0x495   : > { %4760 = vmatprep.subr.bf16.mxu1 %v5650_v37  ;;  %4568 = vmatprep.subr.bf16.mxu0 %v5650_v37 }
 0x496   : > { %v5657_v51 = vpop.permute.xlu0 %2206  ;;  %4764 = vmatpush3.bf16.msra.mxu1 %v5650_v37 }
 0x497   : > { %4761 = vmatprep.subr.bf16.mxu1 %v5657_v51 }
 0x49a   : > { %4765 = vmatpush3.bf16.msra.mxu1 %v5657_v51 }
 0x4c9   : > { %v5624_v17 = vpop.f32.mrf.mxu1 }
 0x4ca   : > { %v1536_v38 = vsel %vm1214_vm2, %v5624_v17, -inf }
 0x4cb   : > { %v5628_v22 = vpop.f32.mrf.mxu1  ;;  %1537 = vmax.xlane.f32.xlu0 %v1536_v38 }
 0x4cc   : > { %v1530_v40 = vsel %vm1214_vm2, %v5628_v22, -inf }
 0x4cd   : > { %v5630_v39 = vpop.f32.mrf.mxu1 }
 0x4ce   : > { %v1539_v43 = vsel %vm1214_vm2, %v5630_v39, -inf }
 0x4cf   : > { %v5634_v41 = vpop.f32.mrf.mxu1  ;;  %1531 = vmax.xlane.f32.xlu0 %v1530_v40 }
 0x4d0   : > { %v1533_v27 = vsel %vm1214_vm2, %v5634_v41, -inf }
 0x4d1   : > { %v5638_v42 = vpop.f32.mrf.mxu1  ;;  %1534 = vmax.xlane.f32.xlu1 %v1533_v27 }
 0x4d2   : > { %v1548_v46 = vsel %vm1214_vm2, %v5638_v42, -inf }
 0x4d3   : > { %v5642_v44 = vpop.f32.mrf.mxu1  ;;  %1540 = vmax.xlane.f32.xlu0 %v1539_v43 }
 0x4d4   : > { %v1542_v50 = vsel %vm1214_vm2, %v5642_v44, -inf }
 0x4d5   : > { %v5646_v47 = vpop.f32.mrf.mxu1  ;;  %1549 = vmax.xlane.f32.xlu1 %v1548_v46 }
 0x4d6   : > { %v1551_v48 = vsel %vm1214_vm2, %v5646_v47, -inf }
 0x4d7   : > { %v5652_v49 = vpop.f32.mrf.mxu1  ;;  %1552 = vmax.xlane.f32.xlu0 %v1551_v48 }
 0x4d8   : > { %v1545_v53 = vsel %vm1214_vm2, %v5652_v49, -inf }
 0x4d9   : > { %v5660_v52 = vpop.f32.mrf.mxu1  ;;  %1543 = vmax.xlane.f32.xlu1 %v1542_v50 }
 0x4da   : > { %v1560_v56 = vsel %vm1214_vm2, %v5660_v52, -inf }
 0x4db   : > { %v5665_v54 = vpop.f32.mrf.mxu1  ;;  %1546 = vmax.xlane.f32.xlu0 %v1545_v53 }
 0x4dc   : > { %v1554_v61 = vsel %vm1214_vm2, %v5665_v54, -inf }
 0x4dd   : > { %v5670_v57 = vpop.f32.mrf.mxu1  ;;  %1561 = vmax.xlane.f32.xlu1 %v1560_v56 }
 0x4de   : > { %v1563_v59 = vsel %vm1214_vm2, %v5670_v57, -inf }
 0x4df   : > { %v5674_v60 = vpop.f32.mrf.mxu1  ;;  %1564 = vmax.xlane.f32.xlu0 %v1563_v59 }
 0x4e0   : > { %v1557_v63 = vsel %vm1214_vm2, %v5674_v60, -inf }
 0x4e1   : > { %1555 = vmax.xlane.f32.xlu1 %v1554_v61  ;;  %v5678_v62 = vpop.f32.mrf.mxu1 }
 0x4e2   : > { %v1572_v1 = vsel %vm1214_vm2, %v5678_v62, -inf }
 0x4e3   : > { %1558 = vmax.xlane.f32.xlu0 %v1557_v63  ;;  %v5682_v0 = vpop.f32.mrf.mxu1 }
 0x4e4   : > { %v1566_v3 = vsel %vm1214_vm2, %v5682_v0, -inf }
 0x4e5   : > { %1573 = vmax.xlane.f32.xlu1 %v1572_v1  ;;  %v5686_v2 = vpop.f32.mrf.mxu1 }
 0x4e6   : > { %v1575_v5 = vsel %vm1214_vm2, %v5686_v2, -inf }
 0x4e7   : > { %1576 = vmax.xlane.f32.xlu0 %v1575_v5  ;;  %v5692_v10 = vpop.f32.mrf.mxu1 }
 0x4e8   : > { %v1569_v13 = vsel %vm1214_vm2, %v5692_v10, -inf }
 0x4e9   : > { %1567 = vmax.xlane.f32.xlu1 %v1566_v3 }
 0x4eb   : > { %1570 = vmax.xlane.f32.xlu0 %v1569_v13 }
 0x53c   : > { %v5705_v15 = vpop.f32.mrf.mxu1 }
 0x53d   : > { %v2040_v16 = vsel %vm1214_vm2, %v5705_v15, -inf }
 0x53e   : > { %2041 = vmax.xlane.f32.xlu1 %v2040_v16  ;;  %v5709_v18 = vpop.f32.mrf.mxu1 }
 0x53f   : > { %v2034_v7 = vsel %vm1214_vm2, %v5709_v18, -inf }
 0x540   : > { %v5711_v19 = vpop.f32.mrf.mxu1 }
 0x541   : > { %v2043_v23 = vsel %vm1214_vm2, %v5711_v19, -inf }
 0x542   : > { %2035 = vmax.xlane.f32.xlu1 %v2034_v7  ;;  %v5717_v26 = vpop.f32.mrf.mxu1  ;;  %2044 = vmax.xlane.f32.xlu0 %v2043_v23 }
 0x543   : > { %v2037_v31 = vsel %vm1214_vm2, %v5717_v26, -inf }
 0x544   : > { %v5719_v29 = vpop.f32.mrf.mxu1 }
 0x545   : > { %v2052_v30 = vsel %vm1214_vm2, %v5719_v29, -inf }
 0x546   : > { %2053 = vmax.xlane.f32.xlu1 %v2052_v30  ;;  %v5725_v12 = vpop.f32.mrf.mxu1  ;;  %2038 = vmax.xlane.f32.xlu0 %v2037_v31 }
 0x547   : > { %v2046_v34 = vsel %vm1214_vm2, %v5725_v12, -inf }
 0x548   : > { %v5727_v33 = vpop.f32.mrf.mxu1 }
 0x549   : > { %v2055_v35 = vsel %vm1214_vm2, %v5727_v33, -inf }
 0x54a   : > { %2047 = vmax.xlane.f32.xlu1 %v2046_v34  ;;  %v5733_v38 = vpop.f32.mrf.mxu1  ;;  %2056 = vmax.xlane.f32.xlu0 %v2055_v35 }
 0x54b   : > { %v2049_v43 = vsel %vm1214_vm2, %v5733_v38, -inf }
 0x54c   : > { %v5735_v40 = vpop.f32.mrf.mxu1 }
 0x54d   : > { %v2064_v27 = vsel %vm1214_vm2, %v5735_v40, -inf }
 0x54e   : > { %2065 = vmax.xlane.f32.xlu1 %v2064_v27  ;;  %v5741_v46 = vpop.f32.mrf.mxu1  ;;  %2050 = vmax.xlane.f32.xlu0 %v2049_v43 }
 0x54f   : > { %v2058_v50 = vsel %vm1214_vm2, %v5741_v46, -inf }
 0x550   : > { %v5743_v48 = vpop.f32.mrf.mxu1 }
 0x551   : > { %v2067_v53 = vsel %vm1214_vm2, %v5743_v48, -inf }
 0x552   : > { %2059 = vmax.xlane.f32.xlu1 %v2058_v50  ;;  %v5749_v56 = vpop.f32.mrf.mxu1  ;;  %2068 = vmax.xlane.f32.xlu0 %v2067_v53 }
 0x553   : > { %v2061_v1 = vsel %vm1214_vm2, %v5749_v56, -inf }
 0x554   : > { %v1538_v59 = vpop.xlane.xlu0 %1537  ;;  %v5751_v61 = vpop.f32.mrf.mxu1 }
 0x555   : > { %v2076_v63 = vsel %vm1214_vm2, %v5751_v61, -inf  ;;  %v1580_v3 = vsub.f32 %v5624_v17, %v1538_v59 }
 0x556   : > { %2077 = vmax.xlane.f32.xlu1 %v2076_v63  ;;  %v5757_v5 = vpop.f32.mrf.mxu1  ;;  %2062 = vmax.xlane.f32.xlu0 %v2061_v1 }
 0x557   : > { %v2070_v23 = vsel %vm1214_vm2, %v5757_v5, -inf  ;;  %v1598_v17 = vmul.f32 1.442695, %v1580_v3 }
 0x558   : > { %v1532_v13 = vpop.xlane.xlu0 %1531  ;;  %v5760_v16 = vpop.f32.mrf.mxu1 }
 0x559   : > { %v1578_v7 = vsub.f32 %v5628_v22, %v1532_v13  ;;  %v2079_v30 = vsel %vm1214_vm2, %v5760_v16, -inf }
 0x55a   : > { %v1535_v31 = vpop.xlane.xlu1 %1534  ;;  %2071 = vmax.xlane.f32.xlu1 %v2070_v23  ;;  %v5767_v34 = vpop.f32.mrf.mxu1  ;;  %2080 = vmax.xlane.f32.xlu0 %v2079_v30 }
 0x55b   : > { %v1594_v35 = vmul.f32 1.442695, %v1578_v7  ;;  %v1579_v27 = vsub.f32 %v5634_v41, %v1535_v31  ;;  %v2073_v22 = vsel %vm1214_vm2, %v5767_v34, -inf }
 0x55c   : > { %v1541_v43 = vpop.xlane.xlu0 %1540 }
 0x55d   : > { %v1596_v50 = vmul.f32 1.442695, %v1579_v27  ;;  %v1581_v53 = vsub.f32 %v5630_v39, %v1541_v43  ;;  %4903 = vpow2.f32 %v1594_v35 }
 0x55e   : > { %v1550_v59 = vpop.xlane.xlu1 %1549  ;;  %2074 = vmax.xlane.f32.xlu0 %v2073_v22 }
 0x55f   : > { %4905 = vpow2.f32 %v1596_v50  ;;  %v1600_v63 = vmul.f32 1.442695, %v1581_v53  ;;  %v1584_v41 = vsub.f32 %v5638_v42, %v1550_v59 }
 0x560   : > { %4907 = vpow2.f32 %v1598_v17  ;;  %v1553_v1 = vpop.xlane.xlu0 %1552 }
 0x561   : > { %4909 = vpow2.f32 %v1600_v63  ;;  %v1585_v13 = vsub.f32 %v5646_v47, %v1553_v1  ;;  %v1606_v35 = vmul.f32 1.442695, %v1584_v41 }
 0x562   : > { %v1544_v3 = vpop.xlane.xlu1 %1543 }
 0x563   : > { %v1608_v7 = vmul.f32 1.442695, %v1585_v13  ;;  %v1582_v23 = vsub.f32 %v5642_v44, %v1544_v3 }
 0x564   : > { %v1547_v39 = vpop.xlane.xlu0 %1546 }
 0x565   : > { %v1602_v30 = vmul.f32 1.442695, %v1582_v23  ;;  %v1583_v31 = vsub.f32 %v5652_v49, %v1547_v39  ;;  %4911 = vpow2.f32 %v1608_v7 }
 0x566   : > { %v1562_v27 = vpop.xlane.xlu1 %1561 }
 0x567   : > { %v1604_v43 = vmul.f32 1.442695, %v1583_v31  ;;  %4913 = vpow2.f32 %v1602_v30  ;;  %v1588_v42 = vsub.f32 %v5660_v52, %v1562_v27 }
 0x568   : > { %v1565_v17 = vpop.xlane.xlu0 %1564 }
 0x569   : > { %4915 = vpow2.f32 %v1604_v43  ;;  %v1589_v50 = vsub.f32 %v5670_v57, %v1565_v17  ;;  %v1614_v41 = vmul.f32 1.442695, %v1588_v42 }
 0x56a   : > { %4917 = vpow2.f32 %v1606_v35  ;;  %v1556_v47 = vpop.xlane.xlu1 %1555  ;;  %v5779_v53 = vpop.eup %4903 }
 0x56b   : > { %v1616_v44 = vmul.f32 1.442695, %v1589_v50  ;;  %v1586_v22 = vsub.f32 %v5665_v54, %v1556_v47  ;;  %2204 = vrot.lane.b32.xlu1 %v5690_v8, %s5207_s27 }
 0x56c   : > { %v5784_v49 = vpop.eup %4905  ;;  %v1559_v59 = vpop.xlane.xlu0 %1558 }
 0x56d   : > { %v5786_v63 = vpop.eup %4907  ;;  %v1610_v1 = vmul.f32 1.442695, %v1586_v22  ;;  %v1587_v57 = vsub.f32 %v5674_v60, %v1559_v59  ;;  %v1690_v52 = vpack.c.bf16 %v5784_v49, %v5779_v53  ;;  %4919 = vpow2.f32 %v1616_v44 }
 0x56e   : > { %v5791_v13 = vpop.eup %4909  ;;  %v1574_v3 = vpop.xlane.xlu1 %1573 }
 0x56f   : > { %v1691_v54 = vpack.c.bf16 %v5791_v13, %v5786_v63  ;;  %v1612_v7 = vmul.f32 1.442695, %v1587_v57  ;;  %4528 = vmatprep.mubr.msk.bf16.mxu0 %vm1214_vm2, %v1690_v52  ;;  %2638 = vrot.lane.b32.xlu1 %v5503_v24, %s5208_s16  ;;  %4921 = vpow2.f32 %v1610_v1  ;;  %v1592_v39 = vsub.f32 %v5678_v62, %v1574_v3 }
 0x570   : > { %v1577_v60 = vpop.xlane.xlu0 %1576 }
 0x571   : > { %4923 = vpow2.f32 %v1612_v7  ;;  %v1593_v23 = vsub.f32 %v5686_v2, %v1577_v60  ;;  %4529 = vmatmul.mubr.msk.bf16.vlgmr.msra.gmra.mxu0 %vm1214_vm2, %v1691_v54 }
 0x572   : > { %4925 = vpow2.f32 %v1614_v41  ;;  %4569 = vmatpush3.bf16.msra.mxu0 %v5650_v37  ;;  %v1568_v30 = vpop.xlane.xlu1 %1567  ;;  %v5804_v27 = vpop.eup %4911  ;;  %v1622_v37 = vmul.f32 1.442695, %v1592_v39 }
 0x573   : > { %v1624_v31 = vmul.f32 1.442695, %v1593_v23  ;;  %4570 = vmatprep.subr.bf16.mxu0 %v5657_v51  ;;  %v1590_v35 = vsub.f32 %v5682_v0, %v1568_v30 }
 0x574   : > { %v1571_v24 = vpop.xlane.xlu0 %1570  ;;  %2202 = vrot.lane.b32.xlu0 %v5700_v14, %s5207_s27  ;;  %v5808_v2 = vpop.eup %4913 }
 0x575   : > { %v1618_v43 = vmul.f32 1.442695, %v1590_v35  ;;  %v1591_v17 = vsub.f32 %v5692_v10, %v1571_v24  ;;  %4927 = vpow2.f32 %v1624_v31 }
 0x576   : > { %v5811_v62 = vpop.eup %4915  ;;  %4571 = vmatpush3.bf16.msra.mxu0 %v5657_v51 }
 0x577   : > { %v5814_v50 = vpop.eup %4917  ;;  %v1620_v0 = vmul.f32 1.442695, %v1591_v17  ;;  %v1692_v42 = vpack.c.bf16 %v5811_v62, %v5808_v2  ;;  %4929 = vpow2.f32 %v1618_v43 }
 0x578   : > { %v1693_v47 = vpack.c.bf16 %v5804_v27, %v5814_v50 }
 0x579   : > { %4931 = vpow2.f32 %v1620_v0  ;;  %4532 = vmatprep.mubr.msk.bf16.mxu0 %vm1214_vm2, %v1692_v42 }
 0x57a   : > { %4933 = vpow2.f32 %v1622_v37  ;;  %4533 = vmatmul.mubr.msk.bf16.gmra.mxu0 %vm1214_vm2, %v1693_v47  ;;  %v5822_v10 = vpop.eup %4919 }
 0x57c   : > { %v5824_v51 = vpop.eup %4921 }
 0x57e   : > { %v5826_v44 = vpop.eup %4923 }
 0x57f   : > { %v5828_v22 = vpop.eup %4925  ;;  %v1694_v59 = vpack.c.bf16 %v5826_v44, %v5824_v51 }
 0x580   : > { %v1695_v1 = vpack.c.bf16 %v5822_v10, %v5828_v22 }
 0x581   : > { %4536 = vmatprep.mubr.msk.bf16.mxu0 %vm1214_vm2, %v1694_v59 }
 0x582   : > { %4537 = vmatmul.mubr.msk.bf16.gmra.mxu0 %vm1214_vm2, %v1695_v1  ;;  %v5836_v57 = vpop.eup %4927 }
 0x584   : > { %v5838_v52 = vpop.eup %4929 }
 0x586   : > { %v5840_v41 = vpop.eup %4931 }
 0x587   : > { %v5842_v3 = vpop.eup %4933  ;;  %v1696_v54 = vpack.c.bf16 %v5840_v41, %v5838_v52 }
 0x588   : > { %v1697_v7 = vpack.c.bf16 %v5836_v57, %v5842_v3 }
 0x589   : > { %4540 = vmatprep.mubr.msk.bf16.mxu0 %vm1214_vm2, %v1696_v54 }
 0x58a   : > { %4541 = vmatmul.mubr.msk.bf16.gmra.mxu0 %vm1214_vm2, %v1697_v7 }
 0x5c7   : > { %v2042_v60 = vpop.xlane.xlu1 %2041 }
 0x5c8   : > { %v2084_v23 = vsub.f32 %v5705_v15, %v2042_v60 }
 0x5ca   : > { %v2102_v39 = vmul.f32 1.442695, %v2084_v23 }
 0x5cb   : > { %v2036_v30 = vpop.xlane.xlu1 %2035  ;;  %v2045_v31 = vpop.xlane.xlu0 %2044 }
 0x5cc   : > { %4935 = vpow2.f32 %v2102_v39  ;;  %v2082_v35 = vsub.f32 %v5709_v18, %v2036_v30  ;;  %v2085_v24 = vsub.f32 %v5711_v19, %v2045_v31 }
 0x5ce   : > { %v2098_v43 = vmul.f32 1.442695, %v2082_v35  ;;  %v2104_v17 = vmul.f32 1.442695, %v2085_v24 }
 0x5cf   : > { %v2054_v37 = vpop.xlane.xlu1 %2053  ;;  %v2039_v0 = vpop.xlane.xlu0 %2038 }
 0x5d0   : > { %4937 = vpow2.f32 %v2098_v43  ;;  %v2088_v42 = vsub.f32 %v5719_v29, %v2054_v37  ;;  %v2083_v47 = vsub.f32 %v5717_v26, %v2039_v0 }
 0x5d1   : > { %4939 = vpow2.f32 %v2104_v17 }
 0x5d2   : > { %v2110_v59 = vmul.f32 1.442695, %v2088_v42  ;;  %v2100_v15 = vmul.f32 1.442695, %v2083_v47 }
 0x5d3   : > { %v2048_v1 = vpop.xlane.xlu1 %2047  ;;  %v2057_v54 = vpop.xlane.xlu0 %2056 }
 0x5d4   : > { %4941 = vpow2.f32 %v2110_v59  ;;  %v2086_v7 = vsub.f32 %v5725_v12, %v2048_v1  ;;  %v2089_v18 = vsub.f32 %v5727_v33, %v2057_v54 }
 0x5d5   : > { %4943 = vpow2.f32 %v2100_v15 }
 0x5d6   : > { %v2106_v19 = vmul.f32 1.442695, %v2086_v7  ;;  %v2112_v60 = vmul.f32 1.442695, %v2089_v18 }
 0x5d7   : > { %v2066_v23 = vpop.xlane.xlu1 %2065  ;;  %v2051_v39 = vpop.xlane.xlu0 %2050 }
 0x5d8   : > { %4945 = vpow2.f32 %v2106_v19  ;;  %v2092_v29 = vsub.f32 %v5735_v40, %v2066_v23  ;;  %v2087_v26 = vsub.f32 %v5733_v38, %v2051_v39 }
 0x5d9   : > { %v5859_v30 = vpop.eup %4935  ;;  %4947 = vpow2.f32 %v2112_v60 }
 0x5da   : > { %v2118_v31 = vmul.f32 1.442695, %v2092_v29  ;;  %v2108_v35 = vmul.f32 1.442695, %v2087_v26  ;;  %v2136_v12 = vsel %vm1214_vm2, %v5859_v30, 0.0 }
 0x5db   : > { %v2060_v24 = vpop.xlane.xlu1 %2059  ;;  %2137 = vadd.xlane.f32.xlu1 %v2136_v12  ;;  %v2069_v33 = vpop.xlane.xlu0 %2068 }
 0x5dc   : > { %4949 = vpow2.f32 %v2118_v31  ;;  %v2090_v43 = vsub.f32 %v5741_v46, %v2060_v24  ;;  %v2093_v17 = vsub.f32 %v5743_v48, %v2069_v33 }
 0x5dd   : > { %v4938_v37 = vpop.eup %4937  ;;  %4951 = vpow2.f32 %v2108_v35 }
 0x5de   : > { %v5865_v40 = vpop.eup %4939  ;;  %v2114_v38 = vmul.f32 1.442695, %v2090_v43  ;;  %v2120_v0 = vmul.f32 1.442695, %v2093_v17  ;;  %v2130_v42 = vsel %vm1214_vm2, %v4938_v37, 0.0 }
 0x5df   : > { %v2078_v47 = vpop.xlane.xlu1 %2077  ;;  %2131 = vadd.xlane.f32.xlu1 %v2130_v42  ;;  %v2139_v59 = vsel %vm1214_vm2, %v5865_v40, 0.0  ;;  %v2063_v15 = vpop.xlane.xlu0 %2062 }
 0x5e0   : > { %4953 = vpow2.f32 %v2114_v38  ;;  %v2096_v1 = vsub.f32 %v5751_v61, %v2078_v47  ;;  %2140 = vadd.xlane.f32.xlu0 %v2139_v59  ;;  %v2091_v46 = vsub.f32 %v5749_v56, %v2063_v15  ;;  %v4899_v59 = vld [vmem:[%s6549_s9 + $0x8] sm:$0xff]  }
 0x5e1   : > { %v5872_v48 = vpop.eup %4941  ;;  %4955 = vpow2.f32 %v2120_v0 }
 0x5e2   : > { %v4944_v54 = vpop.eup %4943  ;;  %v2126_v7 = vmul.f32 1.442695, %v2096_v1  ;;  %v2116_v18 = vmul.f32 1.442695, %v2091_v46  ;;  %v2148_v19 = vsel %vm1214_vm2, %v5872_v48, 0.0  ;;  %v2195_v1 = vpack.c.bf16 %v5865_v40, %v5859_v30 }
 0x5e3   : > { %2149 = vadd.xlane.f32.xlu1 %v2148_v19  ;;  %v2072_v60 = vpop.xlane.xlu1 %2071  ;;  %v2133_v23 = vsel %vm1214_vm2, %v4944_v54, 0.0  ;;  %v2081_v39 = vpop.xlane.xlu0 %2080  ;;  %v2194_v29 = vpack.c.bf16 %v4944_v54, %v4938_v37 }
 0x5e4   : > { %4957 = vpow2.f32 %v2126_v7  ;;  %v2094_v61 = vsub.f32 %v5757_v5, %v2072_v60  ;;  %2134 = vadd.xlane.f32.xlu0 %v2133_v23  ;;  %v2097_v56 = vsub.f32 %v5760_v16, %v2081_v39 }
 0x5e5   : > { %v4946_v26 = vpop.eup %4945  ;;  %4959 = vpow2.f32 %v2116_v18  ;;  %4576 = vmatprep.mubr.msk.bf16.mxu0 %vm1214_vm2, %v2194_v29 }
 0x5e6   : > { %v4948_v31 = vpop.eup %4947  ;;  %v2122_v35 = vmul.f32 1.442695, %v2094_v61  ;;  %v2128_v12 = vmul.f32 1.442695, %v2097_v56  ;;  %v2142_v24 = vsel %vm1214_vm2, %v4946_v26, 0.0 }
 0x5e7   : > { %2143 = vadd.xlane.f32.xlu1 %v2142_v24  ;;  %v2205_v33 = vpop.permute.xlu1 %2204  ;;  %v2151_v43 = vsel %vm1214_vm2, %v4948_v31, 0.0  ;;  %v2075_v17 = vpop.xlane.xlu0 %2074  ;;  %v2197_v29 = vpack.c.bf16 %v4948_v31, %v5872_v48 }
 0x5e8   : > { %4961 = vpow2.f32 %v2122_v35  ;;  %2152 = vadd.xlane.f32.xlu0 %v2151_v43  ;;  %v2095_v5 = vsub.f32 %v5767_v34, %v2075_v17  ;;  %4572 = vmatprep.subr.bf16.mxu0 %v2205_v33  ;;  %v1644_v43 = vsel %vm1214_vm2, %v5814_v50, 0.0  ;;  %v1647_v50 = vsel %vm1214_vm2, %v5804_v27, 0.0 }
 0x5e9   : > { %v4950_v16 = vpop.eup %4949  ;;  %4963 = vpow2.f32 %v2128_v12  ;;  %4762 = vmatprep.subr.bf16.mxu1 %v2205_v33  ;;  %4573 = vmatpush3.bf16.msra.mxu0 %v2205_v33  ;;  %v1665_v27 = vsel %vm1214_vm2, %v5840_v41, 0.0 }
 0x5ea   : > { %v4952_v37 = vpop.eup %4951  ;;  %v2124_v38 = vmul.f32 1.442695, %v2095_v5  ;;  %4766 = vmatpush3.bf16.msra.mxu1 %v2205_v33  ;;  %v2160_v0 = vsel %vm1214_vm2, %v4950_v16, 0.0  ;;  %v1632_v33 = vsel %vm1214_vm2, %v5786_v63, 0.0  ;;  %v1656_v63 = vsel %vm1214_vm2, %v5828_v22, 0.0 }
 0x5eb   : > { %2161 = vadd.xlane.f32.xlu1 %v2160_v0  ;;  %v2145_v42 = vsel %vm1214_vm2, %v4952_v37, 0.0  ;;  %v2203_v47 = vpop.permute.xlu0 %2202  ;;  %v2196_v7 = vpack.c.bf16 %v4952_v37, %v4946_v26  ;;  %v5904_v31 = vpop.permute.xlu1 %2638  ;;  %v1659_v22 = vsel %vm1214_vm2, %v5822_v10, 0.0  ;;  %v5160_v37 = vld [vmem:[#allocation2 + $0x10] sm:$0xff]  }
 0x5ec   : > { %4965 = vpow2.f32 %v2124_v38  ;;  %2146 = vadd.xlane.f32.xlu0 %v2145_v42  ;;  %4574 = vmatprep.subr.bf16.mxu0 %v2203_v47 }
 0x5ed   : > { %v4954_v34 = vpop.eup %4953  ;;  %4763 = vmatprep.subr.bf16.mxu1 %v2203_v47  ;;  %4575 = vmatpush3.bf16.msra.mxu0 %v2203_v47 }
 0x5ee   : > { %v4956_v15 = vpop.eup %4955  ;;  %4767 = vmatpush3.bf16.msra.mxu1 %v2203_v47  ;;  %v2154_v46 = vsel %vm1214_vm2, %v4954_v34, 0.0 }
 0x5ef   : > { %2155 = vadd.xlane.f32.xlu1 %v2154_v46  ;;  %v2163_v54 = vsel %vm1214_vm2, %v4956_v15, 0.0  ;;  %4592 = vmatprep.subr.bf16.mxu1 %v4899_v59  ;;  %v2199_v48 = vpack.c.bf16 %v4956_v15, %v4950_v16  ;;  %v5159_v16 = vld [vmem:[#allocation2 + $0x18] sm:$0xff]  }
 0x5f0   : > { %2164 = vadd.xlane.f32.xlu0 %v2163_v54  ;;  %4577 = vmatmul.mubr.msk.bf16.vlgmr.msra.gmra.mxu0 %vm1214_vm2, %v2195_v1 }
 0x5f1   : > { %v4958_v18 = vpop.eup %4957  ;;  %4580 = vmatprep.mubr.msk.bf16.mxu0 %vm1214_vm2, %v2196_v7 }
 0x5f2   : > { %v4960_v19 = vpop.eup %4959  ;;  %v2172_v60 = vsel %vm1214_vm2, %v4958_v18, 0.0 }
 0x5f3   : > { %2173 = vadd.xlane.f32.xlu1 %v2172_v60  ;;  %v2157_v30 = vsel %vm1214_vm2, %v4960_v19, 0.0  ;;  %v2198_v56 = vpack.c.bf16 %v4960_v19, %v4954_v34 }
 0x5f4   : > { %2158 = vadd.xlane.f32.xlu0 %v2157_v30 }
 0x5f5   : > { %v4962_v40 = vpop.eup %4961 }
 0x5f6   : > { %v4964_v23 = vpop.eup %4963  ;;  %v2166_v39 = vsel %vm1214_vm2, %v4962_v40, 0.0 }
 0x5f7   : > { %2167 = vadd.xlane.f32.xlu1 %v2166_v39  ;;  %v2175_v61 = vsel %vm1214_vm2, %v4964_v23, 0.0  ;;  %v2201_v24 = vpack.c.bf16 %v4964_v23, %v4958_v18 }
 0x5f8   : > { %2176 = vadd.xlane.f32.xlu0 %v2175_v61  ;;  %4581 = vmatmul.mubr.msk.bf16.gmra.mxu0 %vm1214_vm2, %v2197_v29 }
 0x5f9   : > { %v4966_v26 = vpop.eup %4965  ;;  %4584 = vmatprep.mubr.msk.bf16.mxu0 %vm1214_vm2, %v2198_v56 }
 0x5fa   : > { %v2169_v35 = vsel %vm1214_vm2, %v4966_v26, 0.0  ;;  %v2200_v12 = vpack.c.bf16 %v4966_v26, %v4962_v40 }
 0x5fc   : > { %2170 = vadd.xlane.f32.xlu0 %v2169_v35  ;;  %4588 = vmatprep.mubr.msk.bf16.mxu1 %vm1214_vm2, %v2200_v12 }
 0x5fd   : > { %4589 = vmatmul.mubr.msk.bf16.vlgmr.msra.gmra.mxu1 %vm1214_vm2, %v2201_v24 }
 0x5fe   : > { %4593 = vmatpush3.bf16.msra.mxu1 %v4899_v59 }
 0x5ff   : > { %4776 = vmatprep.subr.msk.bf16.mxu1 %vm1396_vm3, %v5904_v31 }
 0x600   : > { %4585 = vmatmul.mubr.msk.bf16.gmra.mxu0 %vm1214_vm2, %v2199_v48 }
 0x608   : > { %2634 = vrot.lane.b32.xlu1 %v5513_v28, %s5208_s16  ;;  %v1626_v28 = vsel %vm1214_vm2, %v5779_v53, 0.0  ;;  %v1650_v53 = vsel %vm1214_vm2, %v5824_v51, 0.0  ;;  %v1653_v51 = vsel %vm1214_vm2, %v5826_v44, 0.0  ;;  %v1671_v44 = vsel %vm1214_vm2, %v5836_v57, 0.0 }
 0x60c   : > { %2632 = vrot.lane.b32.xlu1 %v5540_v36, %s5208_s16  ;;  %v1638_v36 = vsel %vm1214_vm2, %v5808_v2, 0.0  ;;  %v1641_v2 = vsel %vm1214_vm2, %v5811_v62, 0.0  ;;  %v1668_v62 = vsel %vm1214_vm2, %v5842_v3, 0.0 }
 0x610   : > { %2618 = vrot.lane.b32.xlu1 %v5549_v45, %s5208_s16 }
 0x612   : > { %2636 = vrot.lane.b32.xlu0 %v5505_v25, %s5208_s16  ;;  %v1629_v25 = vsel %vm1214_vm2, %v5784_v49, 0.0  ;;  %v1635_v49 = vsel %vm1214_vm2, %v5791_v13, 0.0  ;;  %v1662_v13 = vsel %vm1214_vm2, %v5838_v52, 0.0  ;;  %v4900_v52 = vld [vmem:[%s6549_s9] sm:$0xff]  }
 0x613   : > { %4610 = vmatprep.subr.bf16.mxu0 %v4900_v52 }
 0x614   : > { %2622 = vrot.lane.b32.xlu1 %v5563_v55, %s5208_s16  ;;  %4611 = vmatpush3.bf16.msra.mxu0 %v4900_v52 }
 0x616   : > { %2616 = vrot.lane.b32.xlu0 %v5551_v32, %s5208_s16 }
 0x618   : > { %2626 = vrot.lane.b32.xlu1 %v5577_v4, %s5208_s16 }
 0x61a   : > { %2620 = vrot.lane.b32.xlu0 %v5565_v58, %s5208_s16 }
 0x61c   : > { %2630 = vrot.lane.b32.xlu1 %v5599_v20, %s5208_s16 }
 0x61e   : > { %2624 = vrot.lane.b32.xlu0 %v5581_v9, %s5208_s16 }
 0x622   : > { %2628 = vrot.lane.b32.xlu0 %v5601_v21, %s5208_s16 }
 0x631   : > { %v5970_v10 = vpop.f32.mrf.mxu0 }
 0x633   : > { %v5972_v41 = vpop.f32.mrf.mxu0 }
 0x635   : > { %v5976_v17 = vpop.f32.mrf.mxu0 }
 0x637   : > { %v5980_v5 = vpop.f32.mrf.mxu0 }
 0x640   : > { %1630 = vadd.xlane.f32.xlu1 %v1629_v25 }
 0x641   : > { %1627 = vadd.xlane.f32.xlu0 %v1626_v28 }
 0x644   : > { %1639 = vadd.xlane.f32.xlu1 %v1638_v36 }
 0x645   : > { %1633 = vadd.xlane.f32.xlu0 %v1632_v33 }
 0x648   : > { %1645 = vadd.xlane.f32.xlu1 %v1644_v43 }
 0x649   : > { %1636 = vadd.xlane.f32.xlu0 %v1635_v49 }
 0x64c   : > { %1651 = vadd.xlane.f32.xlu1 %v1650_v53 }
 0x64d   : > { %1642 = vadd.xlane.f32.xlu0 %v1641_v2 }
 0x650   : > { %1657 = vadd.xlane.f32.xlu1 %v1656_v63 }
 0x651   : > { %1648 = vadd.xlane.f32.xlu0 %v1647_v50 }
 0x654   : > { %1663 = vadd.xlane.f32.xlu1 %v1662_v13 }
 0x655   : > { %1654 = vadd.xlane.f32.xlu0 %v1653_v51 }
 0x658   : > { %1669 = vadd.xlane.f32.xlu1 %v1668_v62 }
 0x659   : > { %1660 = vadd.xlane.f32.xlu0 %v1659_v22 }
 0x65d   : > { %1666 = vadd.xlane.f32.xlu0 %v1665_v27 }
 0x661   : > { %1672 = vadd.xlane.f32.xlu0 %v1671_v44 }
 0x664   : > { %v2138_v3 = vpop.xlane.xlu1 %2137 }
 0x668   : > { %v2132_v57 = vpop.xlane.xlu1 %2131 }
 0x669   : > { %2947 = vrot.lane.b32.xlu1 %v5579_v6, %s5208_s16  ;;  %v2141_v6 = vpop.xlane.xlu0 %2140  ;;  %4967 = vrcp.f32 %v2132_v57 }
 0x66a   : > { %4969 = vrcp.f32 %v2141_v6 }
 0x66c   : > { %v2150_v38 = vpop.xlane.xlu1 %2149 }
 0x66d   : > { %2943 = vrot.lane.b32.xlu1 %v5690_v8, %s5208_s16  ;;  %v5983_v8 = vpop.f32.mrf.mxu0 }
 0x66f   : > { %v5986_v0 = vpop.f32.mrf.mxu0 }
 0x670   : > { %v2144_v42 = vpop.xlane.xlu1 %2143 }
 0x671   : > { %3266 = vrot.lane.b32.xlu1 %v5159_v16, %s5209_s17  ;;  %v5988_v47 = vpop.f32.mrf.mxu0 }
 0x673   : > { %v5990_v59 = vpop.f32.mrf.mxu0 }
 0x674   : > { %v2162_v34 = vpop.xlane.xlu1 %2161 }
 0x675   : > { %3264 = vrot.lane.b32.xlu1 %v5160_v37, %s5209_s17  ;;  %v5992_v1 = vpop.f32.mrf.mxu0  ;;  %v2674_v37 = vsel %vm1396_vm3, %v5904_v31, 0 }
 0x676   : > { %v4968_v36 = vpop.eup %4967 }
 0x677   : > { %2945 = vrot.lane.b32.xlu0 %v5587_v11, %s5208_s16  ;;  %v2135_v11 = vpop.xlane.xlu0 %2134  ;;  %v5994_v54 = vpop.f32.mrf.mxu0 }
 0x678   : > { %v2156_v46 = vpop.xlane.xlu1 %2155  ;;  %4971 = vrcp.f32 %v2135_v11  ;;  %v4970_v49 = vpop.eup %4969 }
 0x679   : > { %v5996_v18 = vpop.f32.mrf.mxu0  ;;  %4973 = vrcp.f32 %v2138_v3 }
 0x67a   : > { %4975 = vrcp.f32 %v2144_v42 }
 0x67b   : > { %2941 = vrot.lane.b32.xlu0 %v5700_v14, %s5208_s16  ;;  %v2153_v14 = vpop.xlane.xlu0 %2152  ;;  %v6000_v30 = vpop.f32.mrf.mxu0 }
 0x67c   : > { %v5998_v19 = vpop.xlane.xlu1 %2173  ;;  %4977 = vrcp.f32 %v2153_v14 }
 0x67d   : > { %v6002_v23 = vpop.f32.mrf.mxu0 }
 0x67f   : > { %v2147_v15 = vpop.xlane.xlu0 %2146  ;;  %v6004_v29 = vpop.f32.mrf.mxu0 }
 0x680   : > { %v2168_v40 = vpop.xlane.xlu1 %2167  ;;  %4979 = vrcp.f32 %v2147_v15 }
 0x681   : > { %v6008_v26 = vpop.f32.mrf.mxu0  ;;  %4981 = vrcp.f32 %v2150_v38 }
 0x682   : > { %4983 = vrcp.f32 %v2156_v46 }
 0x683   : > { %v2165_v7 = vpop.xlane.xlu0 %2164  ;;  %v6012_v12 = vpop.f32.mrf.mxu0 }
 0x684   : > { %v6006_v61 = vpop.permute.xlu1 %2634  ;;  %4985 = vrcp.f32 %v2165_v7 }
 0x685   : > { %v4972_v53 = vpop.eup %4971 }
 0x686   : > { %v4974_v50 = vpop.eup %4973 }
 0x687   : > { %v2159_v60 = vpop.xlane.xlu0 %2158  ;;  %v4976_v6 = vpop.eup %4975 }
 0x688   : > { %v6010_v35 = vpop.permute.xlu1 %2632  ;;  %4987 = vrcp.f32 %v2159_v60 }
 0x689   : > { %v4978_v38 = vpop.eup %4977 }
 0x68b   : > { %v2177_v39 = vpop.xlane.xlu0 %2176 }
 0x68c   : > { %v6014_v28 = vpop.permute.xlu1 %2618 }
 0x68d   : > { %v4980_v42 = vpop.eup %4979 }
 0x68e   : > { %v4982_v15 = vpop.eup %4981 }
 0x68f   : > { %v2171_v56 = vpop.xlane.xlu0 %2170 }
 0x690   : > { %4989 = vrcp.f32 %v2171_v56  ;;  %v6018_v27 = vpop.permute.xlu1 %2622 }
 0x691   : > { %4991 = vrcp.f32 %v2162_v34 }
 0x692   : > { %4993 = vrcp.f32 %v2168_v40 }
 0x693   : > { %v2637_v24 = vpop.permute.xlu0 %2636  ;;  %4995 = vrcp.f32 %v2177_v39 }
 0x694   : > { %v6027_v46 = vpop.permute.xlu1 %2626  ;;  %4997 = vrcp.f32 %v5998_v19 }
 0x697   : > { %v6016_v33 = vpop.permute.xlu0 %2616 }
 0x69b   : > { %v6020_v44 = vpop.permute.xlu0 %2620 }
 0x69f   : > { %v6029_v56 = vpop.permute.xlu0 %2624 }
 0x6b0   : > { %v4578_v48 = vpop.f32.mrf.mxu0 }
 0x6b1   : > { %v2337_v62 = vmul.f32 %v4974_v50, %v4578_v48 }
 0x6b2   : > { %v2272_v25 = vpop.f32.mrf.mxu0 }
 0x6b3   : > { %v2335_v13 = vmul.f32 %v4968_v36, %v2272_v25 }
 0x6b4   : > { %v4579_v43 = vpop.f32.mrf.mxu0 }
 0x6b5   : > { %v2338_v2 = vmul.f32 %v4970_v49, %v4579_v43 }
 0x6b6   : > { %v2275_v63 = vpop.f32.mrf.mxu0 }
 0x6b7   : > { %v2336_v51 = vmul.f32 %v4972_v53, %v2275_v63  ;;  %v2352_v3 = vpack.c.bf16 %v2338_v2, %v2337_v62  ;;  %v2671_v53 = vsel %vm1396_vm3, %v2637_v24, 0  ;;  %v4984_v2 = vpop.eup %4983 }
 0x6b8   : > { %v4582_v22 = vpop.f32.mrf.mxu0  ;;  %v4986_v63 = vpop.eup %4985 }
 0x6b9   : > { %v2351_v52 = vpack.c.bf16 %v2336_v51, %v2335_v13  ;;  %v2341_v48 = vmul.f32 %v4982_v15, %v4582_v22  ;;  %v4988_v39 = vpop.eup %4987  ;;  %v6035_v51 = vpop.permute.xlu1 %2630 }
 0x6ba   : > { %v2288_v57 = vpop.f32.mrf.mxu0  ;;  %v4990_v62 = vpop.eup %4989 }
 0x6bb   : > { %4594 = vmatprep.mubr.msk.bf16.mxu1 %vm1396_vm3, %v2351_v52  ;;  %v2339_v7 = vmul.f32 %v4976_v6, %v2288_v57  ;;  %v6037_v22 = vpop.permute.xlu0 %2628 }
 0x6bc   : > { %v4583_v16 = vpop.f32.mrf.mxu0  ;;  %4595 = vmatmul.mubr.msk.bf16.vlgmr.msra.gmra.mxu1 %vm1396_vm3, %v2352_v3 }
 0x6bd   : > { %4629 = vmatpush3.bf16.xpose.msra.mxu1 %v2674_v37  ;;  %v4590_v11 = vpop.f32.mrf.mxu1  ;;  %v2342_v14 = vmul.f32 %v4978_v38, %v4583_v16 }
 0x6be   : > { %v2291_v34 = vpop.f32.mrf.mxu0  ;;  %4777 = vmatprep.subr.msk.bf16.mxu1 %vm1396_vm3, %v2637_v24  ;;  %v4992_v24 = vpop.eup %4991 }
 0x6bf   : > { %v2340_v60 = vmul.f32 %v4980_v42, %v2291_v34  ;;  %v2320_v40 = vpop.f32.mrf.mxu1  ;;  %v2354_v43 = vpack.c.bf16 %v2342_v14, %v2341_v48  ;;  %v4994_v16 = vpop.eup %4993 }
 0x6c0   : > { %v4586_v25 = vpop.f32.mrf.mxu0  ;;  %v2347_v38 = vmul.f32 %v4994_v16, %v2320_v40  ;;  %v4996_v48 = vpop.eup %4995 }
 0x6c1   : > { %v2353_v31 = vpack.c.bf16 %v2340_v60, %v2339_v7  ;;  %v4591_v36 = vpop.f32.mrf.mxu1  ;;  %v2345_v37 = vmul.f32 %v4992_v24, %v4586_v25  ;;  %v2668_v7 = vsel %vm1396_vm3, %v6006_v61, 0 }
 0x6c2   : > { %v2304_v49 = vpop.f32.mrf.mxu0  ;;  %v2350_v40 = vmul.f32 %v4996_v48, %v4591_v36 }
 0x6c3   : > { %4598 = vmatprep.mubr.msk.bf16.mxu1 %vm1396_vm3, %v2353_v31  ;;  %v2323_v50 = vpop.f32.mrf.mxu1  ;;  %v2343_v3 = vmul.f32 %v4984_v2, %v2304_v49 }
 0x6c4   : > { %v4587_v13 = vpop.f32.mrf.mxu0  ;;  %4599 = vmatmul.mubr.msk.bf16.gmra.mxu1 %vm1396_vm3, %v2354_v43  ;;  %v2348_v57 = vmul.f32 %v4990_v62, %v2323_v50  ;;  %v4998_v43 = vpop.eup %4997 }
 0x6c5   : > { %4631 = vmatpush3.bf16.xpose.msra.mxu1 %v2671_v53  ;;  %v2346_v19 = vmul.f32 %v4986_v63, %v4587_v13  ;;  %v2349_v49 = vmul.f32 %v4998_v43, %v4590_v11  ;;  %v2665_v63 = vsel %vm1396_vm3, %v6010_v35, 0 }
 0x6c6   : > { %v2307_v52 = vpop.f32.mrf.mxu0  ;;  %4778 = vmatprep.subr.msk.bf16.mxu1 %vm1396_vm3, %v6006_v61  ;;  %v2357_v60 = vpack.c.bf16 %v2348_v57, %v2347_v38 }
 0x6c7   : > { %v2344_v6 = vmul.f32 %v4988_v39, %v2307_v52  ;;  %v2356_v34 = vpack.c.bf16 %v2346_v19, %v2345_v37  ;;  %v2358_v53 = vpack.c.bf16 %v2350_v40, %v2349_v49 }
 0x6c9   : > { %v2355_v42 = vpack.c.bf16 %v2344_v6, %v2343_v3  ;;  %v1631_v14 = vpop.xlane.xlu1 %1630 }
 0x6ca   : > { %4999 = vrcp.f32 %v1631_v14  ;;  %v1628_v15 = vpop.xlane.xlu0 %1627 }
 0x6cb   : > { %5001 = vrcp.f32 %v1628_v15  ;;  %4602 = vmatprep.mubr.msk.bf16.mxu1 %vm1396_vm3, %v2355_v42 }
 0x6cc   : > { %4603 = vmatmul.mubr.msk.bf16.gmra.mxu1 %vm1396_vm3, %v2356_v34 }
 0x6cd   : > { %v1640_v31 = vpop.xlane.xlu1 %1639  ;;  %4606 = vmatprep.mubr.msk.bf16.mxu1 %vm1396_vm3, %v2357_v60  ;;  %4633 = vmatpush3.bf16.xpose.msra.mxu1 %v2668_v7 }
 0x6ce   : > { %v1634_v25 = vpop.xlane.xlu0 %1633  ;;  %4779 = vmatprep.subr.msk.bf16.mxu1 %vm1396_vm3, %v6010_v35 }
 0x6cf   : > { %5003 = vrcp.f32 %v1634_v25 }
 0x6d1   : > { %v1646_v61 = vpop.xlane.xlu1 %1645 }
 0x6d2   : > { %v1637_v2 = vpop.xlane.xlu0 %1636 }
 0x6d3   : > { %5005 = vrcp.f32 %v1637_v2 }
 0x6d4   : > { %4607 = vmatmul.mubr.msk.bf16.gmra.mxu1 %vm1396_vm3, %v2358_v53  ;;  %5007 = vrcp.f32 %v1640_v31 }
 0x6d5   : > { %v1652_v50 = vpop.xlane.xlu1 %1651  ;;  %4635 = vmatpush3.bf16.xpose.msra.mxu1 %v2665_v63  ;;  %4636 = vmatprep.mubr.msk.bf16.mxu1 %vm1396_vm3, %v6016_v33 }
 0x6d6   : > { %v1643_v36 = vpop.xlane.xlu0 %1642 }
 0x6d7   : > { %v5000_v13 = vpop.eup %4999  ;;  %5009 = vrcp.f32 %v1643_v36 }
 0x6d8   : > { %v5002_v11 = vpop.eup %5001  ;;  %v1844_v39 = vmul.f32 %v5000_v13, %v5980_v5  ;;  %5011 = vrcp.f32 %v1646_v61 }
 0x6d9   : > { %v1843_v62 = vmul.f32 %v5002_v11, %v5972_v41  ;;  %v1658_v19 = vpop.xlane.xlu1 %1657 }
 0x6da   : > { %v1649_v35 = vpop.xlane.xlu0 %1648 }
 0x6db   : > { %5013 = vrcp.f32 %v1649_v35  ;;  %v1859_v52 = vpack.c.bf16 %v1844_v39, %v1843_v62 }
 0x6dc   : > { %4637 = vmatmul.mubr.msk.bf16.vlgmr.msra.gmra.mxu1 %vm1396_vm3, %v6014_v28  ;;  %5015 = vrcp.f32 %v1652_v50  ;;  %v5004_v33 = vpop.eup %5003 }
 0x6dd   : > { %4612 = vmatprep.mubr.msk.bf16.mxu0 %vm1396_vm3, %v1859_v52  ;;  %4640 = vmatprep.mubr.msk.bf16.mxu1 %vm1396_vm3, %v6020_v44  ;;  %v1664_v3 = vpop.xlane.xlu1 %1663  ;;  %v1845_v41 = vmul.f32 %v5004_v33, %v5970_v10 }
 0x6de   : > { %v1655_v24 = vpop.xlane.xlu0 %1654 }
 0x6df   : > { %5017 = vrcp.f32 %v1655_v24 }
 0x6e0   : > { %v5006_v5 = vpop.eup %5005  ;;  %5019 = vrcp.f32 %v1658_v19 }
 0x6e1   : > { %v1846_v57 = vmul.f32 %v5006_v5, %v5976_v17  ;;  %v5008_v6 = vpop.eup %5007  ;;  %v1670_v38 = vpop.xlane.xlu1 %1669 }
 0x6e2   : > { %v1661_v16 = vpop.xlane.xlu0 %1660  ;;  %v1847_v44 = vmul.f32 %v5008_v6, %v5986_v0 }
 0x6e3   : > { %v1860_v37 = vpack.c.bf16 %v1846_v57, %v1845_v41  ;;  %5021 = vrcp.f32 %v1661_v16 }
 0x6e4   : > { %v5010_v28 = vpop.eup %5009  ;;  %4641 = vmatmul.mubr.msk.bf16.gmra.mxu1 %vm1396_vm3, %v6018_v27  ;;  %5023 = vrcp.f32 %v1664_v3 }
 0x6e5   : > { %4613 = vmatmul.mubr.msk.bf16.vlgmr.msra.gmra.mxu0 %vm1396_vm3, %v1860_v37  ;;  %4644 = vmatprep.mubr.msk.bf16.mxu1 %vm1396_vm3, %v6029_v56  ;;  %v1848_v10 = vmul.f32 %v5010_v28, %v5990_v59  ;;  %v5012_v17 = vpop.eup %5011  ;;  %v2948_v63 = vpop.permute.xlu1 %2947 }
 0x6e6   : > { %v1667_v42 = vpop.xlane.xlu0 %1666  ;;  %v1849_v27 = vmul.f32 %v5012_v17, %v5983_v8  ;;  %4652 = vmatprep.subr.bf16.mxu0 %v2948_v63 }
 0x6e7   : > { %5025 = vrcp.f32 %v1667_v42  ;;  %v1861_v14 = vpack.c.bf16 %v1848_v10, %v1847_v44  ;;  %4653 = vmatpush3.bf16.msra.mxu0 %v2948_v63 }
 0x6e8   : > { %v5014_v34 = vpop.eup %5013  ;;  %5027 = vrcp.f32 %v1670_v38 }
 0x6e9   : > { %4616 = vmatprep.mubr.msk.bf16.mxu0 %vm1396_vm3, %v1861_v14  ;;  %v1850_v15 = vmul.f32 %v5014_v34, %v5988_v47  ;;  %v5016_v7 = vpop.eup %5015 }
 0x6ea   : > { %v1673_v60 = vpop.xlane.xlu0 %1672  ;;  %v1851_v59 = vmul.f32 %v5016_v7, %v5994_v54 }
 0x6eb   : > { %5029 = vrcp.f32 %v1673_v60  ;;  %v1862_v56 = vpack.c.bf16 %v1850_v15, %v1849_v27 }
 0x6ec   : > { %v5018_v0 = vpop.eup %5017  ;;  %4645 = vmatmul.mubr.msk.bf16.gmra.mxu1 %vm1396_vm3, %v6027_v46 }
 0x6ed   : > { %4617 = vmatmul.mubr.msk.bf16.gmra.mxu0 %vm1396_vm3, %v1862_v56  ;;  %4648 = vmatprep.mubr.msk.bf16.mxu1 %vm1396_vm3, %v6037_v22  ;;  %v1852_v48 = vmul.f32 %v5018_v0, %v6000_v30  ;;  %v5020_v8 = vpop.eup %5019 }
 0x6ee   : > { %v1853_v40 = vmul.f32 %v5020_v8, %v5992_v1 }
 0x6ef   : > { %v1863_v31 = vpack.c.bf16 %v1852_v48, %v1851_v59 }
 0x6f0   : > { %v5022_v47 = vpop.eup %5021 }
 0x6f1   : > { %4620 = vmatprep.mubr.msk.bf16.mxu0 %vm1396_vm3, %v1863_v31  ;;  %v1854_v25 = vmul.f32 %v5022_v47, %v5996_v18  ;;  %v5024_v43 = vpop.eup %5023 }
 0x6f2   : > { %v1855_v54 = vmul.f32 %v5024_v43, %v6004_v29  ;;  %v2944_v29 = vpop.permute.xlu1 %2943 }
 0x6f3   : > { %v1864_v46 = vpack.c.bf16 %v1854_v25, %v1853_v40 }
 0x6f4   : > { %v5026_v49 = vpop.eup %5025  ;;  %4649 = vmatmul.mubr.msk.bf16.gmra.mxu1 %vm1396_vm3, %v6035_v51  ;;  %v2946_v51 = vpop.permute.xlu0 %2945 }
 0x6f5   : > { %4621 = vmatmul.mubr.msk.bf16.gmra.mxu0 %vm1396_vm3, %v1864_v46  ;;  %v1856_v30 = vmul.f32 %v5026_v49, %v6012_v12  ;;  %v5028_v22 = vpop.eup %5027  ;;  %4654 = vmatprep.subr.bf16.mxu0 %v2946_v51 }
 0x6f6   : > { %v1857_v1 = vmul.f32 %v5028_v22, %v6002_v23  ;;  %4655 = vmatpush3.bf16.msra.mxu0 %v2946_v51  ;;  %v6091_v50 = vpop.permute.xlu1 %3266 }
 0x6f7   : > { %v1865_v61 = vpack.c.bf16 %v1856_v30, %v1855_v54  ;;  %4656 = vmatprep.subr.bf16.mxu0 %v2944_v29 }
 0x6f8   : > { %v5030_v53 = vpop.eup %5029  ;;  %v2942_v12 = vpop.permute.xlu0 %2941 }
 0x6f9   : > { %4624 = vmatprep.mubr.msk.bf16.mxu0 %vm1396_vm3, %v1865_v61  ;;  %v1858_v18 = vmul.f32 %v5030_v53, %v6008_v26 }
 0x6fa   : > { %4657 = vmatpush3.bf16.msra.mxu0 %v2944_v29 }
 0x6fb   : > { %v1866_v2 = vpack.c.bf16 %v1858_v18, %v1857_v1  ;;  %4658 = vmatprep.subr.bf16.mxu0 %v2942_v12 }
 0x6fd   : > { %4625 = vmatmul.mubr.msk.bf16.gmra.mxu0 %vm1396_vm3, %v1866_v2 }
 0x6fe   : > { %4659 = vmatpush3.bf16.msra.mxu0 %v2942_v12 }
 0x6ff   : > { %4780 = vmatprep.subr.msk.bf16.mxu0 %vm1396_vm3, %v6091_v50 }
 0x77c   : > { %v4596_v23 = vpop.f32.mrf.mxu1 }
 0x77e   : > { %v2426_v26 = vpop.f32.mrf.mxu1 }
 0x780   : > { %v4597_v36 = vpop.f32.mrf.mxu1 }
 0x782   : > { %v2429_v13 = vpop.f32.mrf.mxu1 }
 0x784   : > { %v4600_v11 = vpop.f32.mrf.mxu1 }
 0x786   : > { %v2442_v39 = vpop.f32.mrf.mxu1 }
 0x788   : > { %v4601_v62 = vpop.f32.mrf.mxu1 }
 0x78a   : > { %v2445_v19 = vpop.f32.mrf.mxu1 }
 0x78c   : > { %v4604_v35 = vpop.f32.mrf.mxu1 }
 0x78e   : > { %v6095_v52 = vpop.f32.mrf.mxu1 }
 0x790   : > { %v6097_v33 = vpop.f32.mrf.mxu1 }
 0x792   : > { %v6099_v24 = vpop.f32.mrf.mxu1 }
 0x794   : > { %v6101_v5 = vpop.f32.mrf.mxu1 }
 0x796   : > { %v6103_v3 = vpop.f32.mrf.mxu1 }
 0x798   : > { %v6105_v41 = vpop.f32.mrf.mxu1 }
 0x79a   : > { %v6107_v57 = vpop.f32.mrf.mxu1 }
 0x79c   : > { %v6109_v6 = vpop.f32.mrf.mxu1 }
 0x79d   : > { %v2779_v16 = vsel %vm1214_vm2, %v6109_v6, -inf }
 0x79e   : > { %2780 = vmax.xlane.f32.xlu1 %v2779_v16  ;;  %v6113_v37 = vpop.f32.mrf.mxu1 }
 0x79f   : > { %v2773_v44 = vsel %vm1214_vm2, %v6113_v37, -inf }
 0x7a0   : > { %v6115_v28 = vpop.f32.mrf.mxu1 }
 0x7a1   : > { %v2782_v10 = vsel %vm1214_vm2, %v6115_v28, -inf }
 0x7a2   : > { %2774 = vmax.xlane.f32.xlu1 %v2773_v44  ;;  %2783 = vmax.xlane.f32.xlu0 %v2782_v10  ;;  %v6121_v17 = vpop.f32.mrf.mxu1 }
 0x7a3   : > { %v2776_v14 = vsel %vm1214_vm2, %v6121_v17, -inf }
 0x7a4   : > { %v6123_v38 = vpop.f32.mrf.mxu1 }
 0x7a5   : > { %v4614_v42 = vpop.f32.mrf.mxu0  ;;  %v2791_v34 = vsel %vm1214_vm2, %v6123_v38, -inf }
 0x7a6   : > { %v6129_v27 = vadd.f32 %v4614_v42, %v4596_v23  ;;  %2777 = vmax.xlane.f32.xlu0 %v2776_v14  ;;  %2792 = vmax.xlane.f32.xlu1 %v2791_v34  ;;  %v6131_v15 = vpop.f32.mrf.mxu1 }
 0x7a7   : > { %v2553_v7 = vpop.f32.mrf.mxu0  ;;  %v2785_v59 = vsel %vm1214_vm2, %v6131_v15, -inf }
 0x7a8   : > { %v6133_v60 = vadd.f32 %v2553_v7, %v2426_v26  ;;  %v6135_v56 = vpop.f32.mrf.mxu1 }
 0x7a9   : > { %v4615_v0 = vpop.f32.mrf.mxu0  ;;  %v2794_v48 = vsel %vm1214_vm2, %v6135_v56, -inf }
 0x7aa   : > { %v6141_v8 = vadd.f32 %v4615_v0, %v4597_v36  ;;  %2786 = vmax.xlane.f32.xlu1 %v2785_v59  ;;  %2795 = vmax.xlane.f32.xlu0 %v2794_v48  ;;  %v6143_v31 = vpop.f32.mrf.mxu1 }
 0x7ab   : > { %v2556_v47 = vpop.f32.mrf.mxu0  ;;  %v2788_v46 = vsel %vm1214_vm2, %v6143_v31, -inf }
 0x7ac   : > { %v6145_v40 = vadd.f32 %v2556_v47, %v2429_v13  ;;  %v6147_v25 = vpop.f32.mrf.mxu1 }
 0x7ad   : > { %v4618_v43 = vpop.f32.mrf.mxu0  ;;  %v2803_v49 = vsel %vm1214_vm2, %v6147_v25, -inf }
 0x7ae   : > { %v6153_v54 = vadd.f32 %v4618_v43, %v4600_v11  ;;  %2789 = vmax.xlane.f32.xlu0 %v2788_v46  ;;  %2804 = vmax.xlane.f32.xlu1 %v2803_v49  ;;  %v6155_v30 = vpop.f32.mrf.mxu1  ;;  %v5161_v46 = vld [vmem:[#allocation2] sm:$0xff]  }
 0x7af   : > { %v2569_v22 = vpop.f32.mrf.mxu0  ;;  %v2797_v18 = vsel %vm1214_vm2, %v6155_v30, -inf }
 0x7b0   : > { %v6157_v61 = vadd.f32 %v2569_v22, %v2442_v39  ;;  %v6159_v53 = vpop.f32.mrf.mxu1 }
 0x7b1   : > { %v4619_v1 = vpop.f32.mrf.mxu0  ;;  %v2806_v2 = vsel %vm1214_vm2, %v6159_v53, -inf }
 0x7b2   : > { %v6165_v63 = vadd.f32 %v4619_v1, %v4601_v62  ;;  %2798 = vmax.xlane.f32.xlu1 %v2797_v18  ;;  %2807 = vmax.xlane.f32.xlu0 %v2806_v2  ;;  %v6167_v51 = vpop.f32.mrf.mxu1 }
 0x7b3   : > { %v2572_v29 = vpop.f32.mrf.mxu0  ;;  %v2800_v36 = vsel %vm1214_vm2, %v6167_v51, -inf }
 0x7b4   : > { %v6169_v12 = vadd.f32 %v2572_v29, %v2445_v19  ;;  %v6171_v23 = vpop.f32.mrf.mxu1 }
 0x7b5   : > { %v4622_v26 = vpop.f32.mrf.mxu0  ;;  %v2815_v13 = vsel %vm1214_vm2, %v6171_v23, -inf }
 0x7b6   : > { %v6177_v11 = vadd.f32 %v4622_v26, %v4604_v35  ;;  %2801 = vmax.xlane.f32.xlu0 %v2800_v36  ;;  %2816 = vmax.xlane.f32.xlu1 %v2815_v13  ;;  %v6179_v39 = vpop.f32.mrf.mxu1 }
 0x7b7   : > { %v2585_v62 = vpop.f32.mrf.mxu0  ;;  %v2809_v10 = vsel %vm1214_vm2, %v6179_v39, -inf }
 0x7b8   : > { %v6182_v16 = vadd.f32 %v2585_v62, %v6095_v52  ;;  %v6184_v19 = vpop.f32.mrf.mxu1 }
 0x7b9   : > { %v4623_v44 = vpop.f32.mrf.mxu0  ;;  %v2818_v42 = vsel %vm1214_vm2, %v6184_v19, -inf }
 0x7ba   : > { %v6191_v35 = vadd.f32 %v4623_v44, %v6097_v33  ;;  %2810 = vmax.xlane.f32.xlu1 %v2809_v10  ;;  %2819 = vmax.xlane.f32.xlu0 %v2818_v42  ;;  %v6193_v14 = vpop.f32.mrf.mxu1 }
 0x7bb   : > { %v2588_v34 = vpop.f32.mrf.mxu0  ;;  %v2812_v0 = vsel %vm1214_vm2, %v6193_v14, -inf }
 0x7bc   : > { %v6196_v52 = vadd.f32 %v2588_v34, %v6099_v24  ;;  %v5162_v24 = vld [vmem:[#allocation2 + $0x8] sm:$0xff]  }
 0x7bd   : > { %v4626_v7 = vpop.f32.mrf.mxu0 }
 0x7be   : > { %v6201_v59 = vadd.f32 %v4626_v7, %v6101_v5  ;;  %2813 = vmax.xlane.f32.xlu0 %v2812_v0  ;;  %v5163_v5 = vld [vmem:[#allocation3 + $0x18] sm:$0xff]  }
 0x7bf   : > { %v2601_v48 = vpop.f32.mrf.mxu0 }
 0x7c0   : > { %v6204_v33 = vadd.f32 %v2601_v48, %v6103_v3 }
 0x7c1   : > { %v4627_v47 = vpop.f32.mrf.mxu0 }
 0x7c2   : > { %v6207_v43 = vadd.f32 %v4627_v47, %v6105_v41 }
 0x7cb   : > { %3260 = vrot.lane.b32.xlu1 %v5161_v46, %s5209_s17 }
 0x7cf   : > { %3246 = vrot.lane.b32.xlu1 %v5549_v45, %s5209_s17  ;;  %v5164_v45 = vld [vmem:[#allocation3 + $0x10] sm:$0xff]  }
 0x7d3   : > { %3250 = vrot.lane.b32.xlu1 %v5563_v55, %s5209_s17  ;;  %v6229_v55 = vpop.permute.xlu1 %3264 }
 0x7d4   : > { %3262 = vrot.lane.b32.xlu0 %v5162_v24, %s5209_s17 }
 0x7d7   : > { %3254 = vrot.lane.b32.xlu1 %v5577_v4, %s5209_s17 }
 0x7d8   : > { %3244 = vrot.lane.b32.xlu0 %v5551_v32, %s5209_s17 }
 0x7db   : > { %3258 = vrot.lane.b32.xlu1 %v5599_v20, %s5209_s17 }
 0x7dc   : > { %3248 = vrot.lane.b32.xlu0 %v5565_v58, %s5209_s17 }
 0x7df   : > { %3575 = vrot.lane.b32.xlu1 %v5163_v5, %s5209_s17 }
 0x7e0   : > { %3252 = vrot.lane.b32.xlu0 %v5581_v9, %s5209_s17 }
 0x7e4   : > { %3256 = vrot.lane.b32.xlu0 %v5601_v21, %s5209_s17 }
 0x7e8   : > { %3573 = vrot.lane.b32.xlu0 %v5164_v45, %s5209_s17 }
 0x827   : > { %v2781_v32 = vpop.xlane.xlu1 %2780 }
 0x828   : > { %v2823_v4 = vsub.f32 %v6109_v6, %v2781_v32 }
 0x82a   : > { %v2841_v20 = vmul.f32 1.442695, %v2823_v4 }
 0x82b   : > { %v2775_v3 = vpop.xlane.xlu1 %2774  ;;  %v2784_v58 = vpop.xlane.xlu0 %2783 }
 0x82c   : > { %5031 = vpow2.f32 %v2841_v20  ;;  %v2821_v41 = vsub.f32 %v6113_v37, %v2775_v3  ;;  %v2824_v49 = vsub.f32 %v6115_v28, %v2784_v58 }
 0x82e   : > { %v2837_v9 = vmul.f32 1.442695, %v2821_v41  ;;  %v2843_v22 = vmul.f32 1.442695, %v2824_v49 }
 0x82f   : > { %v2793_v1 = vpop.xlane.xlu1 %2792  ;;  %v2778_v21 = vpop.xlane.xlu0 %2777 }
 0x830   : > { %5033 = vpow2.f32 %v2837_v9  ;;  %v2827_v18 = vsub.f32 %v6123_v38, %v2793_v1  ;;  %v2822_v2 = vsub.f32 %v6121_v17, %v2778_v21 }
 0x831   : > { %5035 = vpow2.f32 %v2843_v22 }
 0x832   : > { %v2839_v29 = vmul.f32 1.442695, %v2822_v2  ;;  %v2849_v6 = vmul.f32 1.442695, %v2827_v18  ;;  %v3302_v2 = vsel %vm1396_vm3, %v6091_v50, 0 }
 0x833   : > { %v2787_v26 = vpop.xlane.xlu1 %2786  ;;  %v2796_v36 = vpop.xlane.xlu0 %2795 }
 0x834   : > { %v2825_v13 = vsub.f32 %v6131_v15, %v2787_v26  ;;  %v2828_v37 = vsub.f32 %v6135_v56, %v2796_v36  ;;  %5037 = vpow2.f32 %v2839_v29 }
 0x835   : > { %5039 = vpow2.f32 %v2849_v6 }
 0x836   : > { %v2851_v28 = vmul.f32 1.442695, %v2828_v37  ;;  %v2845_v62 = vmul.f32 1.442695, %v2825_v13 }
 0x837   : > { %v2805_v44 = vpop.xlane.xlu1 %2804  ;;  %v2790_v10 = vpop.xlane.xlu0 %2789 }
 0x838   : > { %v2831_v42 = vsub.f32 %v6147_v25, %v2805_v44  ;;  %v2826_v38 = vsub.f32 %v6143_v31, %v2790_v10  ;;  %5041 = vpow2.f32 %v2851_v28 }
 0x839   : > { %v5032_v17 = vpop.eup %5031  ;;  %5043 = vpow2.f32 %v2845_v62 }
 0x83a   : > { %v2847_v34 = vmul.f32 1.442695, %v2826_v38  ;;  %v2875_v7 = vsel %vm1214_vm2, %v5032_v17, 0.0  ;;  %v2857_v0 = vmul.f32 1.442695, %v2831_v42 }
 0x83b   : > { %v2799_v15 = vpop.xlane.xlu1 %2798  ;;  %2876 = vadd.xlane.f32.xlu0 %v2875_v7  ;;  %v2808_v56 = vpop.xlane.xlu0 %2807 }
 0x83c   : > { %v2829_v48 = vsub.f32 %v6155_v30, %v2799_v15  ;;  %v2832_v47 = vsub.f32 %v6159_v53, %v2808_v56  ;;  %5045 = vpow2.f32 %v2847_v34 }
 0x83d   : > { %v5034_v46 = vpop.eup %5033  ;;  %5047 = vpow2.f32 %v2857_v0 }
 0x83e   : > { %v2859_v24 = vmul.f32 1.442695, %v2832_v47  ;;  %v2869_v25 = vsel %vm1214_vm2, %v5034_v46, 0.0  ;;  %v5036_v31 = vpop.eup %5035  ;;  %v2853_v5 = vmul.f32 1.442695, %v2829_v48 }
 0x83f   : > { %v2817_v45 = vpop.xlane.xlu1 %2816  ;;  %2870 = vadd.xlane.f32.xlu0 %v2869_v25  ;;  %v2802_v32 = vpop.xlane.xlu0 %2801  ;;  %v2878_v53 = vsel %vm1214_vm2, %v5036_v31, 0.0  ;;  %v2934_v21 = vpack.c.bf16 %v5036_v31, %v5032_v17 }
 0x840   : > { %v2835_v4 = vsub.f32 %v6171_v23, %v2817_v45  ;;  %v2830_v20 = vsub.f32 %v6167_v51, %v2802_v32  ;;  %5049 = vpow2.f32 %v2859_v24 }
 0x841   : > { %v5038_v3 = vpop.eup %5037  ;;  %5051 = vpow2.f32 %v2853_v5 }
 0x842   : > { %v2855_v30 = vmul.f32 1.442695, %v2830_v20  ;;  %v2865_v58 = vmul.f32 1.442695, %v2835_v4  ;;  %v2872_v49 = vsel %vm1214_vm2, %v5038_v3, 0.0  ;;  %v2933_v22 = vpack.c.bf16 %v5038_v3, %v5034_v46  ;;  %v5040_v1 = vpop.eup %5039 }
 0x843   : > { %v2811_v41 = vpop.xlane.xlu1 %2810  ;;  %2879 = vadd.xlane.f32.xlu0 %v2878_v53  ;;  %v2820_v9 = vpop.xlane.xlu0 %2819  ;;  %2873 = vadd.xlane.f32.xlu1 %v2872_v49  ;;  %v2887_v26 = vsel %vm1214_vm2, %v5040_v1, 0.0 }
 0x844   : > { %v2833_v18 = vsub.f32 %v6179_v39, %v2811_v41  ;;  %v2836_v51 = vsub.f32 %v6184_v19, %v2820_v9  ;;  %5053 = vpow2.f32 %v2855_v30  ;;  %4660 = vmatprep.mubr.msk.bf16.mxu0 %vm1214_vm2, %v2933_v22 }
 0x845   : > { %v5042_v23 = vpop.eup %5041  ;;  %4661 = vmatmul.mubr.msk.bf16.vlgmr.msra.gmra.mxu0 %vm1214_vm2, %v2934_v21  ;;  %5055 = vpow2.f32 %v2865_v58 }
 0x846   : > { %v2867_v29 = vmul.f32 1.442695, %v2836_v51  ;;  %v2861_v6 = vmul.f32 1.442695, %v2833_v18  ;;  %4695 = vmatpush3.bf16.xpose.msra.mxu0 %v3302_v2  ;;  %v2890_v39 = vsel %vm1214_vm2, %v5042_v23, 0.0  ;;  %v5044_v13 = vpop.eup %5043  ;;  %v2936_v42 = vpack.c.bf16 %v5042_v23, %v5040_v1  ;;  %v4901_v23 = vld [vmem:[%s6549_s9 + $0x10] sm:$0xff]  }
 0x847   : > { %v2814_v36 = vpop.xlane.xlu0 %2813  ;;  %4781 = vmatprep.subr.msk.bf16.mxu0 %vm1396_vm3, %v6229_v55  ;;  %2888 = vadd.xlane.f32.xlu1 %v2887_v26  ;;  %v2881_v28 = vsel %vm1214_vm2, %v5044_v13, 0.0  ;;  %v3261_v31 = vpop.permute.xlu1 %3260 }
 0x848   : > { %v2834_v19 = vsub.f32 %v6193_v14, %v2814_v36  ;;  %5057 = vpow2.f32 %v2867_v29  ;;  %2891 = vadd.xlane.f32.xlu0 %v2890_v39  ;;  %v3299_v14 = vsel %vm1396_vm3, %v6229_v55, 0  ;;  %v3293_v53 = vsel %vm1396_vm3, %v3261_v31, 0  ;;  %4676 = vmatprep.subr.bf16.mxu1 %v4901_v23 }
 0x849   : > { %v5046_v50 = vpop.eup %5045  ;;  %5059 = vpow2.f32 %v2861_v6  ;;  %4677 = vmatpush3.bf16.msra.mxu1 %v4901_v23 }
 0x84a   : > { %v2863_v37 = vmul.f32 1.442695, %v2834_v19  ;;  %v2884_v62 = vsel %vm1214_vm2, %v5046_v50, 0.0  ;;  %v2935_v44 = vpack.c.bf16 %v5046_v50, %v5044_v13  ;;  %v5048_v10 = vpop.eup %5047 }
 0x84b   : > { %2882 = vadd.xlane.f32.xlu1 %v2881_v28  ;;  %v3263_v17 = vpop.permute.xlu0 %3262  ;;  %v2899_v34 = vsel %vm1214_vm2, %v5048_v10, 0.0  ;;  %v3247_v49 = vpop.permute.xlu1 %3246 }
 0x84c   : > { %5061 = vpow2.f32 %v2863_v37  ;;  %2885 = vadd.xlane.f32.xlu0 %v2884_v62  ;;  %4664 = vmatprep.mubr.msk.bf16.mxu0 %vm1214_vm2, %v2935_v44  ;;  %v3296_v46 = vsel %vm1396_vm3, %v3263_v17, 0  ;;  %v6294_v44 = vpop.f32.mrf.mxu0 }
 0x84d   : > { %v5050_v38 = vpop.eup %5049  ;;  %4665 = vmatmul.mubr.msk.bf16.gmra.mxu0 %vm1214_vm2, %v2936_v42 }
 0x84e   : > { %4697 = vmatpush3.bf16.xpose.msra.mxu0 %v3299_v14  ;;  %v2902_v7 = vsel %vm1214_vm2, %v5050_v38, 0.0  ;;  %v5052_v0 = vpop.eup %5051  ;;  %v2938_v24 = vpack.c.bf16 %v5050_v38, %v5048_v10 }
 0x84f   : > { %2900 = vadd.xlane.f32.xlu1 %v2899_v34  ;;  %4782 = vmatprep.subr.msk.bf16.mxu0 %vm1396_vm3, %v3263_v17  ;;  %v2893_v56 = vsel %vm1214_vm2, %v5052_v0, 0.0  ;;  %v3245_v41 = vpop.permute.xlu0 %3244  ;;  %v3251_v22 = vpop.permute.xlu1 %3250 }
 0x850   : > { %2903 = vadd.xlane.f32.xlu0 %v2902_v7 }
 0x851   : > { %v5054_v15 = vpop.eup %5053 }
 0x852   : > { %v2896_v48 = vsel %vm1214_vm2, %v5054_v15, 0.0  ;;  %v2937_v47 = vpack.c.bf16 %v5054_v15, %v5052_v0  ;;  %v5056_v55 = vpop.eup %5055 }
 0x853   : > { %2894 = vadd.xlane.f32.xlu1 %v2893_v56  ;;  %v2911_v5 = vsel %vm1214_vm2, %v5056_v55, 0.0  ;;  %v3249_v9 = vpop.permute.xlu0 %3248  ;;  %v3255_v21 = vpop.permute.xlu1 %3254 }
 0x854   : > { %2897 = vadd.xlane.f32.xlu0 %v2896_v48  ;;  %4668 = vmatprep.mubr.msk.bf16.mxu0 %vm1214_vm2, %v2937_v47 }
 0x855   : > { %v5058_v25 = vpop.eup %5057  ;;  %4669 = vmatmul.mubr.msk.bf16.gmra.mxu0 %vm1214_vm2, %v2938_v24 }
 0x856   : > { %4699 = vmatpush3.bf16.xpose.msra.mxu0 %v3296_v46  ;;  %v2914_v45 = vsel %vm1214_vm2, %v5058_v25, 0.0  ;;  %v5060_v32 = vpop.eup %5059  ;;  %v2940_v58 = vpack.c.bf16 %v5058_v25, %v5056_v55 }
 0x857   : > { %2912 = vadd.xlane.f32.xlu1 %v2911_v5  ;;  %4783 = vmatprep.subr.msk.bf16.mxu0 %vm1396_vm3, %v3261_v31  ;;  %v2905_v30 = vsel %vm1214_vm2, %v5060_v32, 0.0  ;;  %v3253_v1 = vpop.permute.xlu0 %3252  ;;  %v3259_v51 = vpop.permute.xlu1 %3258 }
 0x858   : > { %2915 = vadd.xlane.f32.xlu0 %v2914_v45 }
 0x859   : > { %v5062_v4 = vpop.eup %5061 }
 0x85a   : > { %v2908_v20 = vsel %vm1214_vm2, %v5062_v4, 0.0  ;;  %v2939_v3 = vpack.c.bf16 %v5062_v4, %v5060_v32 }
 0x85b   : > { %2906 = vadd.xlane.f32.xlu1 %v2905_v30  ;;  %v3257_v18 = vpop.permute.xlu0 %3256  ;;  %v3576_v2 = vpop.permute.xlu1 %3575 }
 0x85c   : > { %4672 = vmatprep.mubr.msk.bf16.mxu0 %vm1214_vm2, %v2939_v3  ;;  %2909 = vadd.xlane.f32.xlu0 %v2908_v20 }
 0x85d   : > { %4673 = vmatmul.mubr.msk.bf16.gmra.mxu0 %vm1214_vm2, %v2940_v58  ;;  %4718 = vmatprep.subr.bf16.mxu1 %v3576_v2 }
 0x85e   : > { %4701 = vmatpush3.bf16.xpose.msra.mxu0 %v3293_v53  ;;  %4702 = vmatprep.mubr.msk.bf16.mxu0 %vm1396_vm3, %v3245_v41 }
 0x85f   : > { %v6292_v29 = vpop.permute.xlu0 %3573 }
 0x865   : > { %4703 = vmatmul.mubr.msk.bf16.vlgmr.msra.gmra.mxu0 %vm1396_vm3, %v3247_v49 }
 0x866   : > { %4706 = vmatprep.mubr.msk.bf16.mxu0 %vm1396_vm3, %v3249_v9 }
 0x86d   : > { %4707 = vmatmul.mubr.msk.bf16.gmra.mxu0 %vm1396_vm3, %v3251_v22 }
 0x86e   : > { %4710 = vmatprep.mubr.msk.bf16.mxu0 %vm1396_vm3, %v3253_v1 }
 0x875   : > { %4711 = vmatmul.mubr.msk.bf16.gmra.mxu0 %vm1396_vm3, %v3255_v21 }
 0x876   : > { %4714 = vmatprep.mubr.msk.bf16.mxu0 %vm1396_vm3, %v3257_v18 }
 0x87d   : > { %4715 = vmatmul.mubr.msk.bf16.gmra.mxu0 %vm1396_vm3, %v3259_v51 }
 0x8c4   : > { %v2877_v6 = vpop.xlane.xlu0 %2876 }
 0x8c8   : > { %v2871_v26 = vpop.xlane.xlu0 %2870 }
 0x8c9   : > { %5063 = vrcp.f32 %v2871_v26 }
 0x8cc   : > { %v2874_v39 = vpop.xlane.xlu1 %2873  ;;  %v2880_v36 = vpop.xlane.xlu0 %2879 }
 0x8cd   : > { %5065 = vrcp.f32 %v2880_v36 }
 0x8ce   : > { %5067 = vrcp.f32 %v2874_v39 }
 0x8cf   : > { %5069 = vrcp.f32 %v2877_v6 }
 0x8d0   : > { %v2889_v13 = vpop.xlane.xlu1 %2888 }
 0x8d1   : > { %v2892_v19 = vpop.xlane.xlu0 %2891 }
 0x8d2   : > { %5071 = vrcp.f32 %v2892_v19 }
 0x8d4   : > { %v2883_v50 = vpop.xlane.xlu1 %2882 }
 0x8d5   : > { %v2886_v37 = vpop.xlane.xlu0 %2885  ;;  %5073 = vrcp.f32 %v2883_v50 }
 0x8d6   : > { %5075 = vrcp.f32 %v2886_v37  ;;  %v5064_v17 = vpop.eup %5063 }
 0x8d7   : > { %5077 = vrcp.f32 %v2889_v13 }
 0x8d8   : > { %v2901_v28 = vpop.xlane.xlu1 %2900 }
 0x8d9   : > { %v2904_v62 = vpop.xlane.xlu0 %2903 }
 0x8da   : > { %v5066_v7 = vpop.eup %5065  ;;  %5079 = vrcp.f32 %v2904_v62 }
 0x8db   : > { %v5068_v0 = vpop.eup %5067 }
 0x8dc   : > { %v2895_v42 = vpop.xlane.xlu1 %2894  ;;  %v5070_v48 = vpop.eup %5069 }
 0x8dd   : > { %v2898_v38 = vpop.xlane.xlu0 %2897  ;;  %5081 = vrcp.f32 %v2895_v42 }
 0x8de   : > { %5083 = vrcp.f32 %v2898_v38 }
 0x8df   : > { %5085 = vrcp.f32 %v2901_v28  ;;  %v5072_v4 = vpop.eup %5071 }
 0x8e0   : > { %v2913_v47 = vpop.xlane.xlu1 %2912 }
 0x8e1   : > { %v2916_v24 = vpop.xlane.xlu0 %2915 }
 0x8e2   : > { %v5074_v3 = vpop.eup %5073  ;;  %5087 = vrcp.f32 %v2916_v24 }
 0x8e3   : > { %v5076_v53 = vpop.eup %5075 }
 0x8e4   : > { %v2907_v30 = vpop.xlane.xlu1 %2906  ;;  %v5078_v9 = vpop.eup %5077 }
 0x8e5   : > { %v2910_v58 = vpop.xlane.xlu0 %2909  ;;  %5089 = vrcp.f32 %v2907_v30 }
 0x8e6   : > { %5091 = vrcp.f32 %v2910_v58 }
 0x8e7   : > { %5093 = vrcp.f32 %v2913_v47  ;;  %v5080_v6 = vpop.eup %5079 }
 0x8ea   : > { %v5082_v39 = vpop.eup %5081 }
 0x8eb   : > { %v5084_v36 = vpop.eup %5083 }
 0x8ec   : > { %v5086_v50 = vpop.eup %5085 }
 0x905   : > { %v4662_v10 = vpop.f32.mrf.mxu0 }
 0x906   : > { %v3076_v25 = vmul.f32 %v5070_v48, %v4662_v10 }
 0x907   : > { %v3011_v14 = vpop.f32.mrf.mxu0 }
 0x908   : > { %v3074_v55 = vmul.f32 %v5064_v17, %v3011_v14  ;;  %v5088_v14 = vpop.eup %5087 }
 0x909   : > { %v4663_v34 = vpop.f32.mrf.mxu0 }
 0x90a   : > { %v3077_v15 = vmul.f32 %v5066_v7, %v4663_v34  ;;  %v5090_v34 = vpop.eup %5089 }
 0x90b   : > { %v3014_v56 = vpop.f32.mrf.mxu0  ;;  %v5092_v7 = vpop.eup %5091 }
 0x90c   : > { %v3075_v46 = vmul.f32 %v5068_v0, %v3014_v56  ;;  %v3091_v45 = vpack.c.bf16 %v3077_v15, %v3076_v25  ;;  %v5094_v56 = vpop.eup %5093 }
 0x90d   : > { %v4666_v31 = vpop.f32.mrf.mxu0 }
 0x90e   : > { %v3090_v5 = vpack.c.bf16 %v3075_v46, %v3074_v55  ;;  %v3080_v21 = vmul.f32 %v5078_v9, %v4666_v31 }
 0x90f   : > { %v3027_v32 = vpop.f32.mrf.mxu0 }
 0x910   : > { %4678 = vmatprep.mubr.msk.bf16.mxu1 %vm1396_vm3, %v3090_v5  ;;  %v3078_v22 = vmul.f32 %v5074_v3, %v3027_v32 }
 0x911   : > { %v4667_v20 = vpop.f32.mrf.mxu0  ;;  %4679 = vmatmul.mubr.msk.bf16.vlgmr.msra.gmra.mxu1 %vm1396_vm3, %v3091_v45 }
 0x912   : > { %4719 = vmatpush3.bf16.msra.mxu1 %v3576_v2  ;;  %v3081_v41 = vmul.f32 %v5072_v4, %v4667_v20 }
 0x913   : > { %v3030_v49 = vpop.f32.mrf.mxu0  ;;  %4720 = vmatprep.subr.bf16.mxu1 %v6292_v29 }
 0x914   : > { %v3079_v1 = vmul.f32 %v5076_v53, %v3030_v49  ;;  %v3093_v23 = vpack.c.bf16 %v3081_v41, %v3080_v21 }
 0x915   : > { %v4670_v18 = vpop.f32.mrf.mxu0 }
 0x916   : > { %v3092_v51 = vpack.c.bf16 %v3079_v1, %v3078_v22  ;;  %4721 = vmatpush3.bf16.msra.mxu1 %v6292_v29  ;;  %v3084_v62 = vmul.f32 %v5086_v50, %v4670_v18 }
 0x917   : > { %v3043_v2 = vpop.f32.mrf.mxu0 }
 0x918   : > { %4682 = vmatprep.mubr.msk.bf16.mxu1 %vm1396_vm3, %v3092_v51  ;;  %v3082_v37 = vmul.f32 %v5082_v39, %v3043_v2 }
 0x919   : > { %v4671_v26 = vpop.f32.mrf.mxu0  ;;  %4683 = vmatmul.mubr.msk.bf16.gmra.mxu1 %vm1396_vm3, %v3093_v23 }
 0x91a   : > { %v3085_v13 = vmul.f32 %v5080_v6, %v4671_v26 }
 0x91b   : > { %v3046_v19 = vpop.f32.mrf.mxu0 }
 0x91c   : > { %v3083_v28 = vmul.f32 %v5084_v36, %v3046_v19  ;;  %v3095_v29 = vpack.c.bf16 %v3085_v13, %v3084_v62 }
 0x91d   : > { %v4674_v10 = vpop.f32.mrf.mxu0 }
 0x91e   : > { %v3094_v42 = vpack.c.bf16 %v3083_v28, %v3082_v37  ;;  %v3088_v55 = vmul.f32 %v5094_v56, %v4674_v10 }
 0x91f   : > { %v3059_v38 = vpop.f32.mrf.mxu0 }
 0x920   : > { %4686 = vmatprep.mubr.msk.bf16.mxu1 %vm1396_vm3, %v3094_v42  ;;  %v3086_v48 = vmul.f32 %v5090_v34, %v3059_v38  ;;  %v5165_v42 = vld [vmem:[#allocation3 + $0x8] sm:$0xff]  }
 0x921   : > { %v4675_v17 = vpop.f32.mrf.mxu0  ;;  %4687 = vmatmul.mubr.msk.bf16.gmra.mxu1 %vm1396_vm3, %v3095_v29  ;;  %v5166_v29 = vld [vmem:[#allocation3] sm:$0xff]  }
 0x922   : > { %v3089_v0 = vmul.f32 %v5088_v14, %v4675_v17 }
 0x923   : > { %v3062_v15 = vpop.f32.mrf.mxu0 }
 0x924   : > { %v3087_v47 = vmul.f32 %v5092_v7, %v3062_v15  ;;  %v3097_v31 = vpack.c.bf16 %v3089_v0, %v3088_v55 }
 0x925   : > { %v4704_v46 = vpop.f32.mrf.mxu0 }
 0x926   : > { %v3096_v24 = vpack.c.bf16 %v3087_v47, %v3086_v48  ;;  %v3407_v25 = vsel %vm1214_vm2, %v4704_v46, -inf }
 0x927   : > { %3408 = vmax.xlane.f32.xlu1 %v3407_v25  ;;  %v3338_v5 = vpop.f32.mrf.mxu0 }
 0x928   : > { %4690 = vmatprep.mubr.msk.bf16.mxu1 %vm1396_vm3, %v3096_v24  ;;  %v3401_v32 = vsel %vm1214_vm2, %v3338_v5, -inf }
 0x929   : > { %4691 = vmatmul.mubr.msk.bf16.gmra.mxu1 %vm1396_vm3, %v3097_v31  ;;  %v6307_v45 = vpop.f32.mrf.mxu0 }
 0x92a   : > { %v3410_v4 = vsel %vm1214_vm2, %v6307_v45, -inf }
 0x92b   : > { %3402 = vmax.xlane.f32.xlu1 %v3401_v32  ;;  %3411 = vmax.xlane.f32.xlu0 %v3410_v4  ;;  %v3341_v20 = vpop.f32.mrf.mxu0 }
 0x92c   : > { %v3404_v30 = vsel %vm1214_vm2, %v3341_v20, -inf }
 0x92d   : > { %v4708_v3 = vpop.f32.mrf.mxu0 }
 0x92e   : > { %v3419_v53 = vsel %vm1214_vm2, %v4708_v3, -inf }
 0x92f   : > { %3405 = vmax.xlane.f32.xlu0 %v3404_v30  ;;  %3420 = vmax.xlane.f32.xlu1 %v3419_v53  ;;  %v3354_v58 = vpop.f32.mrf.mxu0 }
 0x930   : > { %v3413_v49 = vsel %vm1214_vm2, %v3354_v58, -inf }
 0x931   : > { %v6314_v41 = vpop.f32.mrf.mxu0 }
 0x932   : > { %v3422_v9 = vsel %vm1214_vm2, %v6314_v41, -inf }
 0x933   : > { %3414 = vmax.xlane.f32.xlu1 %v3413_v49  ;;  %3423 = vmax.xlane.f32.xlu0 %v3422_v9  ;;  %v3357_v22 = vpop.f32.mrf.mxu0 }
 0x934   : > { %v3416_v21 = vsel %vm1214_vm2, %v3357_v22, -inf }
 0x935   : > { %v6319_v1 = vpop.f32.mrf.mxu0 }
 0x936   : > { %v3431_v18 = vsel %vm1214_vm2, %v6319_v1, -inf }
 0x937   : > { %3417 = vmax.xlane.f32.xlu0 %v3416_v21  ;;  %3432 = vmax.xlane.f32.xlu1 %v3431_v18  ;;  %v6324_v51 = vpop.f32.mrf.mxu0 }
 0x938   : > { %v3425_v2 = vsel %vm1214_vm2, %v6324_v51, -inf }
 0x939   : > { %v6326_v23 = vpop.f32.mrf.mxu0 }
 0x93a   : > { %v3434_v6 = vsel %vm1214_vm2, %v6326_v23, -inf }
 0x93b   : > { %3426 = vmax.xlane.f32.xlu1 %v3425_v2  ;;  %3435 = vmax.xlane.f32.xlu0 %v3434_v6  ;;  %v6332_v26 = vpop.f32.mrf.mxu0 }
 0x93c   : > { %v3428_v36 = vsel %vm1214_vm2, %v6332_v26, -inf }
 0x93d   : > { %v6334_v39 = vpop.f32.mrf.mxu0 }
 0x93e   : > { %v3443_v13 = vsel %vm1214_vm2, %v6334_v39, -inf }
 0x93f   : > { %3429 = vmax.xlane.f32.xlu0 %v3428_v36  ;;  %3444 = vmax.xlane.f32.xlu1 %v3443_v13  ;;  %v6340_v19 = vpop.f32.mrf.mxu0 }
 0x940   : > { %v3437_v37 = vsel %vm1214_vm2, %v6340_v19, -inf }
 0x941   : > { %v6342_v50 = vpop.f32.mrf.mxu0 }
 0x942   : > { %v3446_v28 = vsel %vm1214_vm2, %v6342_v50, -inf }
 0x943   : > { %3438 = vmax.xlane.f32.xlu1 %v3437_v37  ;;  %3447 = vmax.xlane.f32.xlu0 %v3446_v28  ;;  %v6348_v62 = vpop.f32.mrf.mxu0 }
 0x944   : > { %v3440_v10 = vsel %vm1214_vm2, %v6348_v62, -inf }
 0x947   : > { %3441 = vmax.xlane.f32.xlu0 %v3440_v10 }
 0x954   : > { %3571 = vrot.lane.b32.xlu1 %v5165_v42, %s5209_s17 }
 0x95d   : > { %3569 = vrot.lane.b32.xlu0 %v5166_v29, %s5209_s17 }
 0x9b0   : > { %v3409_v38 = vpop.xlane.xlu1 %3408 }
 0x9b1   : > { %v3451_v14 = vsub.f32 %v4704_v46, %v3409_v38 }
 0x9b3   : > { %v3469_v0 = vmul.f32 1.442695, %v3451_v14 }
 0x9b4   : > { %v3403_v17 = vpop.xlane.xlu1 %3402  ;;  %v3412_v34 = vpop.xlane.xlu0 %3411 }
 0x9b5   : > { %v3449_v7 = vsub.f32 %v3338_v5, %v3403_v17  ;;  %v3452_v56 = vsub.f32 %v6307_v45, %v3412_v34 }
 0x9b7   : > { %v3465_v15 = vmul.f32 1.442695, %v3449_v7  ;;  %v3471_v31 = vmul.f32 1.442695, %v3452_v56 }
 0x9b8   : > { %v3421_v48 = vpop.xlane.xlu1 %3420  ;;  %v3406_v47 = vpop.xlane.xlu0 %3405 }
 0x9b9   : > { %5095 = vpow2.f32 %v3465_v15  ;;  %v3450_v55 = vsub.f32 %v3341_v20, %v3406_v47  ;;  %v3455_v24 = vsub.f32 %v4708_v3, %v3421_v48 }
 0x9ba   : > { %5097 = vpow2.f32 %v3469_v0 }
 0x9bb   : > { %v3467_v25 = vmul.f32 1.442695, %v3450_v55  ;;  %v3477_v46 = vmul.f32 1.442695, %v3455_v24 }
 0x9bc   : > { %v3415_v32 = vpop.xlane.xlu1 %3414  ;;  %v3424_v4 = vpop.xlane.xlu0 %3423 }
 0x9bd   : > { %v3453_v30 = vsub.f32 %v3354_v58, %v3415_v32  ;;  %5099 = vpow2.f32 %v3467_v25  ;;  %v3456_v5 = vsub.f32 %v6314_v41, %v3424_v4 }
 0x9be   : > { %5101 = vpow2.f32 %v3471_v31 }
 0x9bf   : > { %v3473_v53 = vmul.f32 1.442695, %v3453_v30  ;;  %v3479_v3 = vmul.f32 1.442695, %v3456_v5 }
 0x9c0   : > { %v3433_v49 = vpop.xlane.xlu1 %3432  ;;  %v3418_v9 = vpop.xlane.xlu0 %3417 }
 0x9c1   : > { %5103 = vpow2.f32 %v3473_v53  ;;  %v3454_v45 = vsub.f32 %v3357_v22, %v3418_v9  ;;  %v3459_v20 = vsub.f32 %v6319_v1, %v3433_v49 }
 0x9c2   : > { %5105 = vpow2.f32 %v3477_v46 }
 0x9c3   : > { %v3475_v21 = vmul.f32 1.442695, %v3454_v45  ;;  %v3485_v36 = vmul.f32 1.442695, %v3459_v20 }
 0x9c4   : > { %v3427_v18 = vpop.xlane.xlu1 %3426  ;;  %v3436_v2 = vpop.xlane.xlu0 %3435 }
 0x9c5   : > { %v3457_v6 = vsub.f32 %v6324_v51, %v3427_v18  ;;  %5107 = vpow2.f32 %v3475_v21  ;;  %v3460_v22 = vsub.f32 %v6326_v23, %v3436_v2 }
 0x9c6   : > { %v5096_v58 = vpop.eup %5095  ;;  %5109 = vpow2.f32 %v3479_v3 }
 0x9c7   : > { %v3481_v13 = vmul.f32 1.442695, %v3457_v6  ;;  %v3497_v37 = vsel %vm1214_vm2, %v5096_v58, 0.0  ;;  %v6359_v41 = vpop.eup %5097  ;;  %v3487_v14 = vmul.f32 1.442695, %v3460_v22 }
 0x9c8   : > { %v3445_v28 = vpop.xlane.xlu1 %3444  ;;  %3498 = vadd.xlane.f32.xlu1 %v3497_v37  ;;  %v3430_v1 = vpop.xlane.xlu0 %3429  ;;  %v3503_v38 = vsel %vm1214_vm2, %v6359_v41, 0.0 }
 0x9c9   : > { %5111 = vpow2.f32 %v3481_v13  ;;  %v3458_v10 = vsub.f32 %v6332_v26, %v3430_v1  ;;  %v3463_v51 = vsub.f32 %v6334_v39, %v3445_v28 }
 0x9ca   : > { %v5100_v42 = vpop.eup %5099  ;;  %5113 = vpow2.f32 %v3485_v36 }
 0x9cb   : > { %v3483_v29 = vmul.f32 1.442695, %v3458_v10  ;;  %v3500_v34 = vsel %vm1214_vm2, %v5100_v42, 0.0  ;;  %v3561_v7 = vpack.c.bf16 %v5100_v42, %v5096_v58  ;;  %v5102_v0 = vpop.eup %5101  ;;  %v3493_v39 = vmul.f32 1.442695, %v3463_v51 }
 0x9cc   : > { %3504 = vadd.xlane.f32.xlu1 %v3503_v38  ;;  %v3439_v17 = vpop.xlane.xlu1 %3438  ;;  %v3448_v23 = vpop.xlane.xlu0 %3447  ;;  %3501 = vadd.xlane.f32.xlu0 %v3500_v34  ;;  %v3506_v25 = vsel %vm1214_vm2, %v5102_v0, 0.0  ;;  %v3562_v3 = vpack.c.bf16 %v5102_v0, %v6359_v41 }
 0x9cd   : > { %v3461_v15 = vsub.f32 %v6340_v19, %v3439_v17  ;;  %5115 = vpow2.f32 %v3483_v29  ;;  %4726 = vmatprep.mubr.msk.bf16.mxu1 %vm1214_vm2, %v3561_v7  ;;  %v3464_v55 = vsub.f32 %v6342_v50, %v3448_v23 }
 0x9ce   : > { %v5104_v26 = vpop.eup %5103  ;;  %5117 = vpow2.f32 %v3487_v14 }
 0x9cf   : > { %v3489_v56 = vmul.f32 1.442695, %v3461_v15  ;;  %v3509_v48 = vsel %vm1214_vm2, %v5104_v26, 0.0  ;;  %v6370_v47 = vpop.eup %5105  ;;  %v3495_v5 = vmul.f32 1.442695, %v3464_v55 }
 0x9d0   : > { %3510 = vadd.xlane.f32.xlu1 %v3509_v48  ;;  %v3572_v24 = vpop.permute.xlu1 %3571  ;;  %v3442_v31 = vpop.xlane.xlu0 %3441  ;;  %3507 = vadd.xlane.f32.xlu0 %v3506_v25  ;;  %v3515_v50 = vsel %vm1214_vm2, %v6370_v47, 0.0 }
 0x9d1   : > { %5119 = vpow2.f32 %v3489_v56  ;;  %v3462_v19 = vsub.f32 %v6348_v62, %v3442_v31  ;;  %v4680_v32 = vpop.f32.mrf.mxu1  ;;  %4722 = vmatprep.subr.bf16.mxu1 %v3572_v24 }
 0x9d2   : > { %v6376_v4 = vadd.f32 %v4680_v32, %v6129_v27  ;;  %4723 = vmatpush3.bf16.msra.mxu1 %v3572_v24  ;;  %v5108_v30 = vpop.eup %5107  ;;  %5121 = vpow2.f32 %v3493_v39 }
 0x9d3   : > { %v3491_v46 = vmul.f32 1.442695, %v3462_v19  ;;  %v3165_v53 = vpop.f32.mrf.mxu1  ;;  %v3512_v62 = vsel %vm1214_vm2, %v5108_v30, 0.0  ;;  %v5110_v45 = vpop.eup %5109  ;;  %v3563_v36 = vpack.c.bf16 %v5108_v30, %v5104_v26 }
 0x9d4   : > { %v6381_v49 = vadd.f32 %v3165_v53, %v6133_v60  ;;  %3516 = vadd.xlane.f32.xlu1 %v3515_v50  ;;  %v3570_v9 = vpop.permute.xlu0 %3569  ;;  %3513 = vadd.xlane.f32.xlu0 %v3512_v62  ;;  %v3518_v58 = vsel %vm1214_vm2, %v5110_v45, 0.0  ;;  %v3564_v38 = vpack.c.bf16 %v5110_v45, %v6370_v47 }
 0x9d5   : > { %5123 = vpow2.f32 %v3491_v46  ;;  %v4681_v27 = vpop.f32.mrf.mxu1  ;;  %4724 = vmatprep.subr.bf16.mxu1 %v3570_v9  ;;  %v4902_v46 = vld [vmem:[%s6549_s9 + $0x18] sm:$0xff]  }
 0x9d6   : > { %v5112_v20 = vpop.eup %5111  ;;  %v6385_v21 = vadd.f32 %v4681_v27, %v6141_v8  ;;  %4725 = vmatpush3.bf16.msra.mxu1 %v3570_v9  ;;  %5125 = vpow2.f32 %v3495_v5  ;;  %4742 = vmatprep.subr.bf16.mxu0 %v4902_v46 }
 0x9d7   : > { %v3168_v18 = vpop.f32.mrf.mxu1  ;;  %v3521_v60 = vsel %vm1214_vm2, %v5112_v20, 0.0  ;;  %v5114_v2 = vpop.eup %5113  ;;  %4743 = vmatpush3.bf16.msra.mxu0 %v4902_v46 }
 0x9d8   : > { %v6390_v6 = vadd.f32 %v3168_v18, %v6145_v40  ;;  %3522 = vadd.xlane.f32.xlu1 %v3521_v60  ;;  %3519 = vadd.xlane.f32.xlu0 %v3518_v58  ;;  %v3527_v22 = vsel %vm1214_vm2, %v5114_v2, 0.0 }
 0x9d9   : > { %v4684_v13 = vpop.f32.mrf.mxu1  ;;  %4727 = vmatmul.mubr.msk.bf16.vlgmr.msra.gmra.mxu1 %vm1214_vm2, %v3562_v3 }
 0x9da   : > { %v6395_v8 = vadd.f32 %v4684_v13, %v6153_v54  ;;  %4730 = vmatprep.mubr.msk.bf16.mxu1 %vm1214_vm2, %v3563_v36  ;;  %v5116_v37 = vpop.eup %5115 }
 0x9db   : > { %v3181_v41 = vpop.f32.mrf.mxu1  ;;  %v3524_v28 = vsel %vm1214_vm2, %v5116_v37, 0.0  ;;  %v5118_v1 = vpop.eup %5117  ;;  %v3565_v34 = vpack.c.bf16 %v5116_v37, %v5112_v20 }
 0x9dc   : > { %v6400_v40 = vadd.f32 %v3181_v41, %v6157_v61  ;;  %3528 = vadd.xlane.f32.xlu1 %v3527_v22  ;;  %3525 = vadd.xlane.f32.xlu0 %v3524_v28  ;;  %v3530_v61 = vsel %vm1214_vm2, %v5118_v1, 0.0 }
 0x9dd   : > { %v4685_v10 = vpop.f32.mrf.mxu1 }
 0x9de   : > { %v5120_v42 = vpop.eup %5119  ;;  %v6404_v51 = vadd.f32 %v4685_v10, %v6165_v63 }
 0x9df   : > { %v3184_v54 = vpop.f32.mrf.mxu1  ;;  %v3533_v29 = vsel %vm1214_vm2, %v5120_v42, 0.0  ;;  %v5122_v14 = vpop.eup %5121 }
 0x9e0   : > { %v6409_v17 = vadd.f32 %v3184_v54, %v6169_v12  ;;  %3534 = vadd.xlane.f32.xlu1 %v3533_v29  ;;  %3531 = vadd.xlane.f32.xlu0 %v3530_v61  ;;  %v3539_v15 = vsel %vm1214_vm2, %v5122_v14, 0.0 }
 0x9e1   : > { %v4688_v23 = vpop.f32.mrf.mxu1  ;;  %4731 = vmatmul.mubr.msk.bf16.gmra.mxu1 %vm1214_vm2, %v3564_v38 }
 0x9e2   : > { %v5124_v7 = vpop.eup %5123  ;;  %v6414_v63 = vadd.f32 %v4688_v23, %v6177_v11  ;;  %4734 = vmatprep.mubr.msk.bf16.mxu1 %vm1214_vm2, %v3565_v34  ;;  %v3566_v11 = vpack.c.bf16 %v5118_v1, %v5114_v2 }
 0x9e3   : > { %v3197_v0 = vpop.f32.mrf.mxu1  ;;  %v3536_v12 = vsel %vm1214_vm2, %v5124_v7, 0.0  ;;  %v5126_v39 = vpop.eup %5125  ;;  %v3567_v25 = vpack.c.bf16 %v5124_v7, %v5120_v42 }
 0x9e4   : > { %v6420_v26 = vadd.f32 %v3197_v0, %v6182_v16  ;;  %3540 = vadd.xlane.f32.xlu1 %v3539_v15  ;;  %3537 = vadd.xlane.f32.xlu0 %v3536_v12  ;;  %v3542_v24 = vsel %vm1214_vm2, %v5126_v39, 0.0  ;;  %v3568_v30 = vpack.c.bf16 %v5126_v39, %v5122_v14 }
 0x9e5   : > { %v4689_v56 = vpop.f32.mrf.mxu1 }
 0x9e6   : > { %v6423_v48 = vadd.f32 %v4689_v56, %v6191_v35 }
 0x9e7   : > { %v3200_v47 = vpop.f32.mrf.mxu1 }
 0x9e8   : > { %v6426_v55 = vadd.f32 %v3200_v47, %v6196_v52  ;;  %3543 = vadd.xlane.f32.xlu0 %v3542_v24 }
 0x9e9   : > { %v4692_v31 = vpop.f32.mrf.mxu1  ;;  %4735 = vmatmul.mubr.msk.bf16.gmra.mxu1 %vm1214_vm2, %v3566_v11 }
 0x9ea   : > { %v6431_v16 = vadd.f32 %v4692_v31, %v6201_v59  ;;  %4738 = vmatprep.mubr.msk.bf16.mxu1 %vm1214_vm2, %v3567_v25 }
 0x9eb   : > { %v3213_v19 = vpop.f32.mrf.mxu1 }
 0x9ec   : > { %v6435_v35 = vadd.f32 %v3213_v19, %v6204_v33 }
 0x9ed   : > { %v4693_v32 = vpop.f32.mrf.mxu1 }
 0x9ee   : > { %v6438_v52 = vadd.f32 %v4693_v32, %v6207_v43 }
 0x9ef   : > { %v6444_v20 = vpop.f32.mrf.mxu1 }
 0x9f1   : > { %4739 = vmatmul.mubr.msk.bf16.gmra.mxu1 %vm1214_vm2, %v3568_v30 }
 0xa51   : > { %v3499_v53 = vpop.xlane.xlu1 %3498 }
 0xa52   : > { %5127 = vrcp.f32 %v3499_v53 }
 0xa55   : > { %v3502_v59 = vpop.xlane.xlu0 %3501  ;;  %v3505_v5 = vpop.xlane.xlu1 %3504 }
 0xa59   : > { %v3508_v50 = vpop.xlane.xlu0 %3507  ;;  %v3511_v33 = vpop.xlane.xlu1 %3510 }
 0xa5a   : > { %5129 = vrcp.f32 %v3508_v50 }
 0xa5b   : > { %5131 = vrcp.f32 %v3502_v59 }
 0xa5c   : > { %5133 = vrcp.f32 %v3505_v5 }
 0xa5d   : > { %v3514_v62 = vpop.xlane.xlu0 %3513  ;;  %v3517_v45 = vpop.xlane.xlu1 %3516  ;;  %5135 = vrcp.f32 %v3511_v33 }
 0xa5f   : > { %v5128_v58 = vpop.eup %5127 }
 0xa61   : > { %v3520_v9 = vpop.xlane.xlu0 %3519  ;;  %v3523_v27 = vpop.xlane.xlu1 %3522 }
 0xa62   : > { %5137 = vrcp.f32 %v3520_v9 }
 0xa63   : > { %5139 = vrcp.f32 %v3514_v62 }
 0xa64   : > { %5141 = vrcp.f32 %v3517_v45 }
 0xa65   : > { %v3526_v43 = vpop.xlane.xlu0 %3525  ;;  %v3529_v2 = vpop.xlane.xlu1 %3528  ;;  %5143 = vrcp.f32 %v3523_v27 }
 0xa67   : > { %v5130_v13 = vpop.eup %5129 }
 0xa68   : > { %v5132_v37 = vpop.eup %5131 }
 0xa69   : > { %v3532_v18 = vpop.xlane.xlu0 %3531  ;;  %v5134_v28 = vpop.eup %5133 }
 0xa6a   : > { %5145 = vrcp.f32 %v3532_v18  ;;  %v3535_v38 = vpop.xlane.xlu1 %3534  ;;  %v5136_v23 = vpop.eup %5135 }
 0xa6b   : > { %5147 = vrcp.f32 %v3526_v43 }
 0xa6c   : > { %5149 = vrcp.f32 %v3529_v2 }
 0xa6d   : > { %v3538_v1 = vpop.xlane.xlu0 %3537  ;;  %5151 = vrcp.f32 %v3535_v38 }
 0xa6e   : > { %v3541_v11 = vpop.xlane.xlu1 %3540 }
 0xa6f   : > { %v5138_v0 = vpop.eup %5137 }
 0xa70   : > { %v5140_v12 = vpop.eup %5139 }
 0xa71   : > { %v3544_v15 = vpop.xlane.xlu0 %3543  ;;  %v5142_v47 = vpop.eup %5141 }
 0xa72   : > { %5153 = vrcp.f32 %v3544_v15  ;;  %v5144_v59 = vpop.eup %5143 }
 0xa73   : > { %5155 = vrcp.f32 %v3538_v1 }
 0xa74   : > { %5157 = vrcp.f32 %v3541_v11 }
 0xa77   : > { %v5146_v50 = vpop.eup %5145 }
 0xa78   : > { %v5148_v5 = vpop.eup %5147 }
 0xa79   : > { %v5150_v9 = vpop.eup %5149 }
 0xa99   : > { %v4728_v3 = vpop.f32.mrf.mxu1 }
 0xa9a   : > { %v3704_v54 = vmul.f32 %v5134_v28, %v4728_v3 }
 0xa9b   : > { %v3639_v60 = vpop.f32.mrf.mxu1 }
 0xa9c   : > { %v3702_v10 = vmul.f32 %v5128_v58, %v3639_v60  ;;  %v5152_v58 = vpop.eup %5151 }
 0xa9d   : > { %v4729_v36 = vpop.f32.mrf.mxu1 }
 0xa9e   : > { %v3705_v41 = vmul.f32 %v5130_v13, %v4729_v36  ;;  %v5154_v13 = vpop.eup %5153 }
 0xa9f   : > { %v3642_v22 = vpop.f32.mrf.mxu1 }
 0xaa0   : > { %v3703_v42 = vmul.f32 %v5132_v37, %v3642_v22  ;;  %v3719_v61 = vpack.c.bf16 %v3705_v41, %v3704_v54  ;;  %v5156_v37 = vpop.eup %5155 }
 0xaa1   : > { %v4732_v29 = vpop.f32.mrf.mxu1  ;;  %v5158_v28 = vpop.eup %5157 }
 0xaa2   : > { %v3718_v14 = vpack.c.bf16 %v3703_v42, %v3702_v10  ;;  %v3708_v31 = vmul.f32 %v5142_v47, %v4732_v29 }
 0xaa3   : > { %v3655_v34 = vpop.f32.mrf.mxu1 }
 0xaa4   : > { %4744 = vmatprep.mubr.msk.bf16.mxu0 %vm1396_vm3, %v3718_v14  ;;  %v3706_v24 = vmul.f32 %v5136_v23, %v3655_v34  ;;  %v6457_v14 = vld [vmem:[%s6550_s10] ss:$0 sm:$0xff] }
 0xaa5   : > { %v4733_v7 = vpop.f32.mrf.mxu1  ;;  %4745 = vmatmul.mubr.msk.bf16.vlgmr.msra.gmra.mxu0 %vm1396_vm3, %v3719_v61 }
 0xaa6   : > { %v3709_v39 = vmul.f32 %v5138_v0, %v4733_v7 }
 0xaa7   : > { %v3658_v56 = vpop.f32.mrf.mxu1 }
 0xaa8   : > { %v3707_v25 = vmul.f32 %v5140_v12, %v3658_v56  ;;  %v3721_v30 = vpack.c.bf16 %v3709_v39, %v3708_v31 }
 0xaa9   : > { %v4736_v19 = vpop.f32.mrf.mxu1 }
 0xaaa   : > { %v3720_v32 = vpack.c.bf16 %v3707_v25, %v3706_v24  ;;  %v3712_v27 = vmul.f32 %v5150_v9, %v4736_v19 }
 0xaab   : > { %v3671_v46 = vpop.f32.mrf.mxu1 }
 0xaac   : > { %4748 = vmatprep.mubr.msk.bf16.mxu0 %vm1396_vm3, %v3720_v32  ;;  %v3710_v45 = vmul.f32 %v5144_v59, %v3671_v46 }
 0xaad   : > { %v4737_v53 = vpop.f32.mrf.mxu1  ;;  %4749 = vmatmul.mubr.msk.bf16.gmra.mxu0 %vm1396_vm3, %v3721_v30 }
 0xaae   : > { %v3713_v62 = vmul.f32 %v5146_v50, %v4737_v53 }
 0xaaf   : > { %v3674_v33 = vpop.f32.mrf.mxu1 }
 0xab0   : > { %v3711_v43 = vmul.f32 %v5148_v5, %v3674_v33  ;;  %v3723_v60 = vpack.c.bf16 %v3713_v62, %v3712_v27 }
 0xab1   : > { %v4740_v3 = vpop.f32.mrf.mxu1 }
 0xab2   : > { %v3722_v18 = vpack.c.bf16 %v3711_v43, %v3710_v45  ;;  %v3716_v42 = vmul.f32 %v5158_v28, %v4740_v3 }
 0xab3   : > { %v3687_v2 = vpop.f32.mrf.mxu1 }
 0xab4   : > { %4752 = vmatprep.mubr.msk.bf16.mxu0 %vm1396_vm3, %v3722_v18  ;;  %v3714_v1 = vmul.f32 %v5152_v58, %v3687_v2 }
 0xab5   : > { %v4741_v36 = vpop.f32.mrf.mxu1  ;;  %4753 = vmatmul.mubr.msk.bf16.gmra.mxu0 %vm1396_vm3, %v3723_v60 }
 0xab6   : > { %v3717_v41 = vmul.f32 %v5154_v13, %v4741_v36 }
 0xab7   : > { %v3690_v22 = vpop.f32.mrf.mxu1 }
 0xab8   : > { %v3715_v10 = vmul.f32 %v5156_v37, %v3690_v22  ;;  %v3725_v29 = vpack.c.bf16 %v3717_v41, %v3716_v42 }
 0xaba   : > { %v3724_v54 = vpack.c.bf16 %v3715_v10, %v3714_v1 }
 0xabc   : > { %4756 = vmatprep.mubr.msk.bf16.mxu0 %vm1396_vm3, %v3724_v54 }
 0xabd   : > { %4757 = vmatmul.mubr.msk.bf16.gmra.mxu0 %vm1396_vm3, %v3725_v29 }
 0xb65   : > { %v4746_v38 = vpop.f32.mrf.mxu0 }
 0xb66   : > { %v3858_v61 = vadd.f32 %v4746_v38, %v6376_v4 }
 0xb67   : > { %v3793_v34 = vpop.f32.mrf.mxu0 }
 0xb68   : > { %v3881_v23 = vadd.f32 %v6457_v14, %v3858_v61  ;;  %v3856_v7 = vadd.f32 %v3793_v34, %v6381_v49 }
 0xb69   : > { %v4747_v0 = vpop.f32.mrf.mxu0 }
 0xb6a   : > { %3897 = vst.msk [vmem:[%s5316_s20 + $0x10] sm:$0xff] %vm1214_vm2, %v3881_v23  ;;  %v3879_v15 = vadd.f32 %v6457_v14, %v3856_v7  ;;  %v3859_v12 = vadd.f32 %v4747_v0, %v6385_v21 }
 0xb6b   : > { %v3796_v39 = vpop.f32.mrf.mxu0 }
 0xb6c   : > { %3895 = vst.msk [vmem:[%s5316_s20] sm:$0xff] %vm1214_vm2, %v3879_v15  ;;  %v3882_v4 = vadd.f32 %v6457_v14, %v3859_v12  ;;  %v3857_v56 = vadd.f32 %v3796_v39, %v6390_v6 }
 0xb6d   : > { %v4750_v47 = vpop.f32.mrf.mxu0 }
 0xb6e   : > { %3898 = vst.msk [vmem:[%s5316_s20 + $0x18] sm:$0xff] %vm1214_vm2, %v3882_v4  ;;  %v3880_v49 = vadd.f32 %v6457_v14, %v3857_v56  ;;  %v3862_v11 = vadd.f32 %v4750_v47, %v6395_v8 }
 0xb6f   : > { %v3809_v24 = vpop.f32.mrf.mxu0 }
 0xb70   : > { %3896 = vst.msk [vmem:[%s5316_s20 + $0x8] sm:$0xff] %vm1214_vm2, %v3880_v49  ;;  %v3885_v21 = vadd.f32 %v6457_v14, %v3862_v11  ;;  %v3860_v25 = vadd.f32 %v3809_v24, %v6400_v40 }
 0xb71   : > { %v4751_v31 = vpop.f32.mrf.mxu0 }
 0xb72   : > { %3901 = vst.msk [vmem:[%s5316_s20 + $0x30] sm:$0xff] %vm1214_vm2, %v3885_v21  ;;  %v3883_v6 = vadd.f32 %v6457_v14, %v3860_v25  ;;  %v3863_v19 = vadd.f32 %v4751_v31, %v6404_v51 }
 0xb73   : > { %v3812_v32 = vpop.f32.mrf.mxu0 }
 0xb74   : > { %3899 = vst.msk [vmem:[%s5316_s20 + $0x20] sm:$0xff] %vm1214_vm2, %v3883_v6  ;;  %v3886_v8 = vadd.f32 %v6457_v14, %v3863_v19  ;;  %v3861_v30 = vadd.f32 %v3812_v32, %v6409_v17 }
 0xb75   : > { %v4754_v46 = vpop.f32.mrf.mxu0 }
 0xb76   : > { %3902 = vst.msk [vmem:[%s5316_s20 + $0x38] sm:$0xff] %vm1214_vm2, %v3886_v8  ;;  %v3884_v40 = vadd.f32 %v6457_v14, %v3861_v30  ;;  %v3866_v59 = vadd.f32 %v4754_v46, %v6414_v63 }
 0xb77   : > { %v3825_v53 = vpop.f32.mrf.mxu0 }
 0xb78   : > { %3900 = vst.msk [vmem:[%s5316_s20 + $0x28] sm:$0xff] %vm1214_vm2, %v3884_v40  ;;  %v3889_v51 = vadd.f32 %v6457_v14, %v3866_v59  ;;  %v3864_v50 = vadd.f32 %v3825_v53, %v6420_v26 }
 0xb79   : > { %v4755_v5 = vpop.f32.mrf.mxu0 }
 0xb7a   : > { %3905 = vst.msk [vmem:[%s5316_s20 + $0x50] sm:$0xff] %vm1214_vm2, %v3889_v51  ;;  %v3887_v17 = vadd.f32 %v6457_v14, %v3864_v50  ;;  %v3867_v62 = vadd.f32 %v4755_v5, %v6423_v48  ;;  %v2605_v48 = vadd.f32 %v6294_v44, %v6107_v57 }
 0xb7b   : > { %v3828_v33 = vpop.f32.mrf.mxu0 }
 0xb7c   : > { %3903 = vst.msk [vmem:[%s5316_s20 + $0x40] sm:$0xff] %vm1214_vm2, %v3887_v17  ;;  %v3890_v63 = vadd.f32 %v6457_v14, %v3867_v62  ;;  %v3865_v9 = vadd.f32 %v3828_v33, %v6426_v55  ;;  %v3241_v60 = vadd.f32 %v6444_v20, %v2605_v48 }
 0xb7d   : > { %v4758_v45 = vpop.f32.mrf.mxu0 }
 0xb7e   : > { %3906 = vst.msk [vmem:[%s5316_s20 + $0x58] sm:$0xff] %vm1214_vm2, %v3890_v63  ;;  %v3888_v26 = vadd.f32 %v6457_v14, %v3865_v9  ;;  %v3870_v43 = vadd.f32 %v4758_v45, %v6431_v16 }
 0xb7f   : > { %v3841_v27 = vpop.f32.mrf.mxu0 }
 0xb80   : > { %3904 = vst.msk [vmem:[%s5316_s20 + $0x48] sm:$0xff] %vm1214_vm2, %v3888_v26  ;;  %v3893_v3 = vadd.f32 %v6457_v14, %v3870_v43  ;;  %v3868_v55 = vadd.f32 %v3841_v27, %v6435_v35 }
 0xb81   : > { %v4759_v18 = vpop.f32.mrf.mxu0 }
 0xb82   : > { %3909 = vst.msk [vmem:[%s5316_s20 + $0x70] sm:$0xff] %vm1214_vm2, %v3893_v3  ;;  %v3891_v2 = vadd.f32 %v6457_v14, %v3868_v55  ;;  %v3871_v16 = vadd.f32 %v4759_v18, %v6438_v52 }
 0xb83   : > { %v3844_v58 = vpop.f32.mrf.mxu0 }
 0xb84   : > { %3907 = vst.msk [vmem:[%s5316_s20 + $0x60] sm:$0xff] %vm1214_vm2, %v3891_v2  ;;  %v3894_v57 = vadd.f32 %v6457_v14, %v3871_v16  ;;  %v3869_v44 = vadd.f32 %v3844_v58, %v3241_v60 }
 0xb86   : > { %3910 = vst.msk [vmem:[%s5316_s20 + $0x78] sm:$0xff] %vm1214_vm2, %v3894_v57  ;;  %v3892_v36 = vadd.f32 %v6457_v14, %v3869_v44 }
 0xb88   : > { %3908 = vst.msk [vmem:[%s5316_s20 + $0x68] sm:$0xff] %vm1214_vm2, %v3892_v36 }
 0xb89 PF: > { %s21_s21 = sadd.s32 1, %s5205_s21   ;;  %s6556_s18 = sld [smem:[#allocation4_spill]] }
 0xb8a   : > { %p18_p8 = scmp.ge.s32.totalorder %s21_s21, 6   ;;  %s6557_s24 = sld [smem:[#allocation5_spill]] }
 0xb8b   : > { %s6558_s20 = sld [smem:[#allocation6_spill]]  ;;  %s6559_s17 = smov %s5197_s19 }
 0xb8c   :  { %20 = sbr.rel (!%p18_p8) target bundleno = 3 (0x3), region = 104 }
 0xb90   : > { %s6560_s19 = smov %s6557_s24 }

</bundles_post_ra>
